<compile_context>
chip_gen: v7x
topology: tpu7x:2x2x1
jax: 0.10.0
libtpu: 0.0.40
codegen_flags: <defaults>
</compile_context>

<pallas_src>
import functools
import math

import jax
import jax.numpy as jnp
from jax.experimental import pallas as pl
from jax.experimental.pallas import tpu as pltpu

_PI = math.pi
_PI_2 = math.pi / 2.0
_PI_4 = math.pi / 4.0
_TAN_PI_8 = 0.4142135623730950
_TAN_3PI_8 = 2.414213562373095

_ROW_F = 8     # sublane-aligned row offset of the feature block in the fused W matrix
_LANES = 128   # TPU lane width


# ---- in-kernel transcendentals ---------------------------------------------------
# Cephes-style f32 atan polynomial; acos/atan2 built from ops guaranteed to lower on
# Mosaic (mul/add/sqrt/select + EUP reciprocal).
def _atan_reduced(x):
    z = x * x
    p = jnp.float32(8.05374449538e-2)
    p = p * z - jnp.float32(1.38776856032e-1)
    p = p * z + jnp.float32(1.99777106478e-1)
    p = p * z - jnp.float32(3.33329491539e-1)
    return p * z * x + x


def _atan(x):
    ax = jnp.abs(x)
    big = ax > _TAN_3PI_8
    mid = jnp.logical_and(ax > _TAN_PI_8, jnp.logical_not(big))
    x_big = -pl.reciprocal(jnp.maximum(ax, 1e-30), approx=True)
    x_mid = (ax - 1.0) * pl.reciprocal(ax + 1.0, approx=True)
    xr = jnp.where(big, x_big, jnp.where(mid, x_mid, ax))
    off = jnp.where(big, jnp.float32(_PI_2),
                    jnp.where(mid, jnp.float32(_PI_4), jnp.float32(0.0)))
    r = off + _atan_reduced(xr)
    return jnp.where(x < 0.0, -r, r)


def _atan2(y, x):
    pi = jnp.float32(_PI)
    safe_x = jnp.where(x == 0.0, jnp.float32(1.0), x)
    t = _atan(y * pl.reciprocal(safe_x, approx=True))
    res_xneg = jnp.where(y >= 0.0, t + pi, t - pi)
    res_x0 = jnp.where(y > 0.0, jnp.float32(_PI_2),
                       jnp.where(y < 0.0, jnp.float32(-_PI_2), jnp.float32(0.0)))
    return jnp.where(x > 0.0, t, jnp.where(x < 0.0, res_xneg, res_x0))


def _acos(t):
    s = jnp.sqrt(jnp.maximum(1.0 - t * t, 0.0))
    return _atan2(s, t)


# ---- the Pallas kernel -------------------------------------------------------------
def _fuzzy_sphere_kernel(idx_ref, dist_ref, qc_ref, w_ref, rowiota_ref, binsiota_ref,
                         qmat_ref, qmat_t_ref, fw_t_ref, pw_ref, pb_ref, out_ref, *,
                         K, n_azimuth, n_elevation, n_radial, radius,
                         tile_m, c_inp, row_f):
    tile_p = tile_m * K
    total_bins = n_azimuth * n_elevation * n_radial
    az_scale = n_azimuth / (2.0 * math.pi)
    el_scale = n_elevation / math.pi

    idx_row = idx_ref[0]                      # (1, TILE_P) i32  global neighbor ids
    dist_row = dist_ref[0]                    # (1, TILE_P) f32  lane-major distances

    # Neighbor-only selection one-hot (N, TILE_P); row iota is a resident constant.
    sel = (rowiota_ref[...] == idx_row).astype(jnp.float32)

    # Fused gather (MXU): rows 0..2 = neighbor coords, rows row_f.. = neighbor feats.
    gathered = jnp.dot(w_ref[0], sel, preferred_element_type=jnp.float32)

    # Query coords repeated K-fold via the static repeat matrix Q (MXU).
    qc_t = jnp.transpose(qc_ref[0])                                    # (8, TILE_M)
    q_rep = jnp.dot(qc_t, qmat_ref[...], preferred_element_type=jnp.float32)  # (8, TILE_P)

    # Relative position in exact f32 (outside the matmul — no cancellation).
    x = gathered[0:1, :] - q_rep[0:1, :]
    y = gathered[1:2, :] - q_rep[1:2, :]
    z = gathered[2:3, :] - q_rep[2:3, :]
    nbr_feats_t = gathered[row_f:row_f + c_inp, :]                     # (C_inp, TILE_P)

    # --- fuzzy spherical binning (lane-major (1, TILE_P) math) ---
    azimuth = _atan2(y, x) + jnp.float32(math.pi)
    cos_el = jnp.clip(z / (dist_row + 1e-8), -1.0, 1.0)   # exact div: protects acos pole
    elevation = _acos(cos_el)

    a_bin = azimuth * jnp.float32(az_scale)
    e_bin = elevation * jnp.float32(el_scale)
    r_bin = jnp.clip(dist_row * jnp.float32(1.0 / radius), 0.0, n_radial - 1e-6)

    a_fl = jnp.floor(a_bin)
    e_fl = jnp.floor(e_bin)
    r_fl = jnp.floor(r_bin)
    a_fr = a_bin - a_fl
    e_fr = e_bin - e_fl
    r_fr = r_bin - r_fl
    a_fi = a_fl.astype(jnp.int32)
    e_fi = e_fl.astype(jnp.int32)
    r_fi = r_fl.astype(jnp.int32)
    a_fr_i = 1.0 - a_fr
    e_fr_i = 1.0 - e_fr
    r_fr_i = 1.0 - r_fr

    # Trilinear scatter of the 8 corner coefficients, transposed: (total_bins, TILE_P).
    bins_iota = binsiota_ref[...]                                      # resident constant
    accum_t = jnp.zeros((total_bins, tile_p), jnp.float32)
    for da in (0, 1):
        a_i = a_fi + da
        a_i = jnp.where(a_i >= n_azimuth, a_i - n_azimuth, a_i)       # == % n_azimuth
        ca = a_fr if da else a_fr_i
        for de in (0, 1):
            e_i = jnp.clip(e_fi + de, 0, n_elevation - 1)
            cae = ca * (e_fr if de else e_fr_i)
            for dr in (0, 1):
                r_i = jnp.clip(r_fi + dr, 0, n_radial - 1)
                coeff = cae * (r_fr if dr else r_fr_i)                # (1, TILE_P)
                bin_t = (a_i * n_elevation + e_i) * n_radial + r_i    # (1, TILE_P)
                accum_t = accum_t + jnp.where(bin_t == bins_iota, coeff, 0.0)

    # Per-neighbor effective depthwise weights and contributions.
    w_eff_t = jnp.dot(fw_t_ref[...], accum_t,
                      preferred_element_type=jnp.float32)             # (C_inp, TILE_P)
    contrib_t = nbr_feats_t * w_eff_t                                 # (C_inp, TILE_P)

    # Pool over the K neighbors of each query on the MXU: contrib_t @ Q^T.
    fuzzy_t = jnp.dot(contrib_t, qmat_t_ref[...],
                      preferred_element_type=jnp.float32)             # (C_inp, TILE_M)
    fuzzy = jnp.transpose(fuzzy_t)                                    # tiny (C_inp,TILE_M) xpose

    # Projection (nn.Linear), lane-dense (C_out padded to 128) output store.
    out = jnp.dot(fuzzy, pw_ref[...], preferred_element_type=jnp.float32) + pb_ref[...]
    out_ref[0] = out.astype(out_ref.dtype)


# ---- tile / VMEM sizing --------------------------------------------------------------
def _vmem_capacity_bytes():
    try:
        return int(pltpu.get_tpu_info().vmem_capacity_bytes)
    except Exception:
        return 64 * 1024 * 1024   # v7x-safe fallback


def _estimate_vmem_bytes(N, K, tile_m, total_bins, c_inp, c_out_pad, rows):
    tile_p = tile_m * K
    per_lane_rows = (
        2 * N              # row_iota (double-buffered constant input)
        + 2 * N            # sel + compare intermediate
        + 4 * tile_m       # Q + Q^T (double-buffered)
        + 2 * total_bins   # bins_iota (double-buffered)
        + 3 * total_bins   # accum + where temps
        + 4 * rows         # gathered / q_rep / w_eff / contrib
        + 48               # (1, TILE_P) scalar-row temporaries
    )
    fixed = 4 * (2 * rows * N + 4 * tile_m * (c_out_pad + 16)
                 + 2 * c_inp * (total_bins + c_out_pad) + 8 * c_out_pad)
    return 4 * tile_p * per_lane_rows + fixed


def _pick_tile_m(M, K, B, fits):
    cands = [c for c in (512, 256, 128, 64, 32, 16, 8)
             if c <= M and M % c == 0 and c % 8 == 0
             and ((c * K) % _LANES == 0 or c == M)]
    if not cands:
        return M
    good = [c for c in cands if fits(c)]
    if not good:
        return cands[-1]
    for c in good:                       # descending: largest tile keeping >=4 grid steps
        if B * (M // c) >= 4:
            return c
    return good[0]


# ---- wrapper -----------------------------------------------------------------------
def fuzzy_sphere_mlp_forward(coords, features, nn_index, nn_count, nn_dist,
                             filter_weights, proj_w, proj_b,
                             kernel_size=(4, 2, 2), radius=0.05, tile_m=None):
    # nn_count is accepted for signature parity with the PyTorch module; unused there too.
    del nn_count
    f32 = jnp.float32
    B, N, _ = coords.shape
    _, M, K = nn_index.shape
    C_in = features.shape[-1]
    C_out = proj_w.shape[-1]
    n_az, n_el, n_rad = kernel_size
    total_bins = n_az * n_el * n_rad
    P = M * K
    assert M == N, "FuzzySphereMLP uses coords as both database and query"

    C_inp = ((C_in + 7) // 8) * 8
    C_out_pad = ((C_out + _LANES - 1) // _LANES) * _LANES
    rows = _ROW_F + C_inp

    vmem_cap = _vmem_capacity_bytes()
    vmem_budget = int(0.45 * vmem_cap)
    vmem_limit = int(min(0.70 * vmem_cap, 112 * 1024 * 1024))

    if tile_m is None:
        tile_m = _pick_tile_m(
            M, K, B,
            lambda c: _estimate_vmem_bytes(N, K, c, total_bins, C_inp, C_out_pad,
                                           rows) <= vmem_budget)
    assert M % tile_m == 0
    assert (tile_m * K) % _LANES == 0 or tile_m == M
    assert tile_m % 8 == 0
    tile_p = tile_m * K

    coords_f = coords.astype(f32)
    feats_f = features.astype(f32)
    if C_inp != C_in:
        feats_f = jnp.pad(feats_f, ((0, 0), (0, 0), (0, C_inp - C_in)))

    # Fused gather weight matrix W (per batch):
    #   rows [0, 3)            : coords^T   -> gathered neighbor coords
    #   rows [3, _ROW_F)       : zero padding (sublane alignment)
    #   rows [_ROW_F, +C_inp)  : feats^T    -> gathered neighbor features
    coords_t = jnp.swapaxes(coords_f, 1, 2)                     # (B, 3, N)
    feats_t = jnp.swapaxes(feats_f, 1, 2)                       # (B, C_inp, N)
    w_mat = jnp.concatenate(
        [coords_t, jnp.zeros((B, _ROW_F - 3, N), f32), feats_t], axis=1)  # (B, rows, N)

    # Per-tile query coords, channel-padded to 8 lanes: (B, M, 8).
    qc = jnp.pad(coords_f, ((0, 0), (0, 0), (0, _ROW_F - 3)))

    idx_r = nn_index.reshape(B, 1, P).astype(jnp.int32)
    dist_r = nn_dist.reshape(B, 1, P).astype(f32)

    # Static, VMEM-resident helper matrices (constant block index -> DMA'd once).
    row_iota = jnp.broadcast_to(jnp.arange(N, dtype=jnp.int32)[:, None], (N, tile_p))
    bins_iota = jnp.broadcast_to(jnp.arange(total_bins, dtype=jnp.int32)[:, None],
                                 (total_bins, tile_p))
    q_of_p = jnp.arange(tile_p, dtype=jnp.int32) // K
    qmat = (jnp.arange(tile_m, dtype=jnp.int32)[:, None] == q_of_p[None, :]).astype(f32)
    qmat_t = jnp.transpose(qmat)                                 # (tile_p, tile_m)

    fw_t = jnp.swapaxes(filter_weights.astype(f32), 0, 1)       # (C_in, total_bins)
    if C_inp != C_in:
        fw_t = jnp.pad(fw_t, ((0, C_inp - C_in), (0, 0)))
    pw_pad = jnp.zeros((C_inp, C_out_pad), f32).at[:C_in, :C_out].set(proj_w.astype(f32))
    pb_pad = jnp.zeros((1, C_out_pad), f32).at[0, :C_out].set(proj_b.astype(f32))

    kernel = functools.partial(
        _fuzzy_sphere_kernel, K=K, n_azimuth=n_az, n_elevation=n_el,
        n_radial=n_rad, radius=radius, tile_m=tile_m, c_inp=C_inp, row_f=_ROW_F)

    grid_spec = pltpu.PrefetchScalarGridSpec(
        num_scalar_prefetch=0,
        grid=(B, M // tile_m),
        in_specs=[
            pl.BlockSpec((1, 1, tile_p), lambda b, m: (b, 0, m)),        # nn_index
            pl.BlockSpec((1, 1, tile_p), lambda b, m: (b, 0, m)),        # nn_dist
            pl.BlockSpec((1, tile_m, _ROW_F), lambda b, m: (b, m, 0)),   # query coords
            pl.BlockSpec((1, rows, N), lambda b, m: (b, 0, 0)),          # fused W (coords|feats)
            pl.BlockSpec((N, tile_p), lambda b, m: (0, 0)),              # row iota (static)
            pl.BlockSpec((total_bins, tile_p), lambda b, m: (0, 0)),     # bins iota (static)
            pl.BlockSpec((tile_m, tile_p), lambda b, m: (0, 0)),         # Q (static)
            pl.BlockSpec((tile_p, tile_m), lambda b, m: (0, 0)),         # Q^T (static)
            pl.BlockSpec((C_inp, total_bins), lambda b, m: (0, 0)),      # filter weights^T
            pl.BlockSpec((C_inp, C_out_pad), lambda b, m: (0, 0)),       # projection W
            pl.BlockSpec((1, C_out_pad), lambda b, m: (0, 0)),           # projection b
        ],
        out_specs=pl.BlockSpec((1, tile_m, C_out_pad), lambda b, m: (b, m, 0)),
    )
    out_pad = pl.pallas_call(
        kernel,
        out_shape=jax.ShapeDtypeStruct((B, M, C_out_pad), f32),
        grid_spec=grid_spec,
        compiler_params=pltpu.CompilerParams(
            dimension_semantics=("parallel", "parallel"),
            vmem_limit_bytes=vmem_limit,
        ),
    )(idx_r, dist_r, qc, w_mat, row_iota, bins_iota, qmat, qmat_t, fw_t, pw_pad, pb_pad)
    return out_pad[..., :C_out]


# ---- pure-JAX reference (mirrors the PyTorch forward) --------------------------------
def _reference_forward(coords, features, nn_index, nn_dist, fw, pw, pb,
                       kernel_size=(4, 2, 2), radius=0.05):
    n_az, n_el, n_rad = kernel_size
    az_scale = n_az / (2.0 * math.pi)
    el_scale = n_el / math.pi
    B, M, K = nn_index.shape
    b_idx = jnp.arange(B)[:, None, None]
    nbr = coords[b_idx, nn_index]                       # (B,M,K,3)
    rel = nbr - coords[:, :, None, :]
    x, y, z = rel[..., 0], rel[..., 1], rel[..., 2]
    azimuth = jnp.arctan2(y, x) + math.pi
    elevation = jnp.arccos(jnp.clip(z / (nn_dist + 1e-8), -1.0, 1.0))
    a_bin = azimuth * az_scale
    e_bin = elevation * el_scale
    r_bin = jnp.clip(nn_dist / radius, 0.0, n_rad - 1e-6)
    a_fl = jnp.floor(a_bin); e_fl = jnp.floor(e_bin); r_fl = jnp.floor(r_bin)
    a_fr = a_bin - a_fl; e_fr = e_bin - e_fl; r_fr = r_bin - r_fl
    a_fl = a_fl.astype(jnp.int32); e_fl = e_fl.astype(jnp.int32); r_fl = r_fl.astype(jnp.int32)
    nbr_feats = features[b_idx, nn_index]               # (B,M,K,C)
    out = jnp.zeros((B, M, features.shape[-1]), jnp.float32)
    for da in (0, 1):
        for de in (0, 1):
            for dr in (0, 1):
                ca = a_fr if da else 1.0 - a_fr
                ce = e_fr if de else 1.0 - e_fr
                cr = r_fr if dr else 1.0 - r_fr
                coeff = ca * ce * cr
                a_i = (a_fl + da) % n_az
                e_i = jnp.clip(e_fl + de, 0, n_el - 1)
                r_i = jnp.clip(r_fl + dr, 0, n_rad - 1)
                bins = (a_i * n_el + e_i) * n_rad + r_i
                w = fw[bins]                            # (B,M,K,C)
                out = out + jnp.sum(nbr_feats * w * coeff[..., None], axis=2)
    return out @ pw + pb[None, :]


if __name__ == "__main__":
    key = jax.random.PRNGKey(0)
    B, N, K = 2, 128, 8
    C_in, C_out = 8, 16
    kernel_size = (4, 2, 2)
    radius = 0.05
    total_bins = kernel_size[0] * kernel_size[1] * kernel_size[2]

    k1, k2, k3, k4, k5 = jax.random.split(key, 5)
    coords = jax.random.uniform(k1, (B, N, 3), jnp.float32) * 0.2
    features = jax.random.normal(k2, (B, N, C_in), jnp.float32)

    # brute-force kNN (self included), giving consistent nn_index / nn_dist
    d2 = jnp.sum((coords[:, :, None, :] - coords[:, None, :, :]) ** 2, axis=-1)
    neg_d2, nn_index = jax.lax.top_k(-d2, K)
    nn_dist = jnp.sqrt(jnp.maximum(-neg_d2, 0.0))
    nn_index = nn_index.astype(jnp.int32)
    nn_count = jnp.full((B, N), K, jnp.int32)

    # deterministic parameter init (matches shapes of the nn.Module)
    bound = math.sqrt(6.0 / (C_in + total_bins))                       # xavier_uniform-ish
    filter_weights = jax.random.uniform(k3, (total_bins, C_in), jnp.float32, -bound, bound)
    lin_bound = 1.0 / math.sqrt(C_in)
    proj_w = jax.random.uniform(k4, (C_in, C_out), jnp.float32, -lin_bound, lin_bound)
    proj_b = jax.random.uniform(k5, (C_out,), jnp.float32, -lin_bound, lin_bound)

    out = fuzzy_sphere_mlp_forward(coords, features, nn_index, nn_count, nn_dist,
                                   filter_weights, proj_w, proj_b,
                                   kernel_size=kernel_size, radius=radius)
    out = jax.block_until_ready(out)

    ref = _reference_forward(coords, features, nn_index, nn_dist,
                             filter_weights, proj_w, proj_b,
                             kernel_size=kernel_size, radius=radius)

    assert out.shape == (B, N, C_out)
    assert bool(jnp.all(jnp.isfinite(out)))
    max_err = float(jnp.max(jnp.abs(out - ref)))
    assert max_err < 5e-3, f"max_err={max_err}"
    print("KERNEL_OK")
</pallas_src>

<mosaic_0001>
module attributes {stable_mosaic.version = 11 : i64} {
  func.func @_fuzzy_sphere_kernel(%arg0: i32, %arg1: i32, %arg2: memref<1x1x512xi32, #tpu.memory_space<vmem>>, %arg3: memref<1x1x512xf32, #tpu.memory_space<vmem>>, %arg4: memref<1x64x8xf32, #tpu.memory_space<vmem>>, %arg5: memref<1x16x128xf32, #tpu.memory_space<vmem>>, %arg6: memref<128x512xi32, #tpu.memory_space<vmem>>, %arg7: memref<16x512xi32, #tpu.memory_space<vmem>>, %arg8: memref<64x512xf32, #tpu.memory_space<vmem>>, %arg9: memref<512x64xf32, #tpu.memory_space<vmem>>, %arg10: memref<8x16xf32, #tpu.memory_space<vmem>>, %arg11: memref<8x128xf32, #tpu.memory_space<vmem>>, %arg12: memref<1x128xf32, #tpu.memory_space<vmem>>, %arg13: memref<1x64x128xf32, #tpu.memory_space<vmem>>) attributes {dimension_semantics = [#tpu.dimension_semantics<parallel>, #tpu.dimension_semantics<parallel>], iteration_bounds = array<i64: 2, 2>, scalar_prefetch = 0 : i64, scratch_operands = 0 : i64, tpu.core_type = #tpu.core_type<tc>, window_params = [{transform_indices = @transform_0, window_bounds = array<i64: 1, 1, 512>}, {transform_indices = @transform_1, window_bounds = array<i64: 1, 1, 512>}, {transform_indices = @transform_2, window_bounds = array<i64: 1, 64, 8>}, {transform_indices = @transform_3, window_bounds = array<i64: 1, 16, 128>}, {pipeline_mode = #tpu.pipeline_mode<synchronous>, transform_indices = @transform_4, window_bounds = array<i64: 128, 512>}, {pipeline_mode = #tpu.pipeline_mode<synchronous>, transform_indices = @transform_5, window_bounds = array<i64: 16, 512>}, {pipeline_mode = #tpu.pipeline_mode<synchronous>, transform_indices = @transform_6, window_bounds = array<i64: 64, 512>}, {pipeline_mode = #tpu.pipeline_mode<synchronous>, transform_indices = @transform_7, window_bounds = array<i64: 512, 64>}, {pipeline_mode = #tpu.pipeline_mode<synchronous>, transform_indices = @transform_8, window_bounds = array<i64: 8, 16>}, {pipeline_mode = #tpu.pipeline_mode<synchronous>, transform_indices = @transform_9, window_bounds = array<i64: 8, 128>}, {pipeline_mode = #tpu.pipeline_mode<synchronous>, transform_indices = @transform_10, window_bounds = array<i64: 1, 128>}, {transform_indices = @transform_11, window_bounds = array<i64: 1, 64, 128>}]} {
    %c0 = arith.constant 0 : index
    %c0_0 = arith.constant 0 : index
    %c0_1 = arith.constant 0 : index
    %0 = vector.load %arg2[%c0, %c0_0, %c0_1] : memref<1x1x512xi32, #tpu.memory_space<vmem>>, vector<1x1x512xi32>
    %1 = vector.shape_cast %0 : vector<1x1x512xi32> to vector<1x512xi32>
    %c0_2 = arith.constant 0 : index
    %c0_3 = arith.constant 0 : index
    %c0_4 = arith.constant 0 : index
    %2 = vector.load %arg3[%c0_2, %c0_3, %c0_4] : memref<1x1x512xf32, #tpu.memory_space<vmem>>, vector<1x1x512xf32>
    %3 = vector.shape_cast %2 : vector<1x1x512xf32> to vector<1x512xf32>
    %c0_5 = arith.constant 0 : index
    %c0_6 = arith.constant 0 : index
    %4 = vector.load %arg6[%c0_5, %c0_6] : memref<128x512xi32, #tpu.memory_space<vmem>>, vector<128x512xi32>
    %5 = vector.broadcast %1 : vector<1x512xi32> to vector<128x512xi32>
    %6 = arith.cmpi eq, %4, %5 : vector<128x512xi32>
    %7 = arith.extui %6 : vector<128x512xi1> to vector<128x512xi32>
    %8 = arith.sitofp %7 : vector<128x512xi32> to vector<128x512xf32>
    %c0_7 = arith.constant 0 : index
    %c0_8 = arith.constant 0 : index
    %c0_9 = arith.constant 0 : index
    %9 = vector.load %arg5[%c0_7, %c0_8, %c0_9] : memref<1x16x128xf32, #tpu.memory_space<vmem>>, vector<1x16x128xf32>
    %10 = vector.shape_cast %9 : vector<1x16x128xf32> to vector<16x128xf32>
    %cst = arith.constant dense<0.000000e+00> : vector<16x512xf32>
    %11 = tpu.matmul %10, %8, %cst {dimension_numbers = #tpu.dot_dimension_numbers<[1], [0], [0], [1], [0, 0, 1, 1], [], []>} : vector<16x128xf32>, vector<128x512xf32>, vector<16x512xf32> -> vector<16x512xf32>
    %c0_10 = arith.constant 0 : index
    %c0_11 = arith.constant 0 : index
    %c0_12 = arith.constant 0 : index
    %12 = vector.load %arg4[%c0_10, %c0_11, %c0_12] : memref<1x64x8xf32, #tpu.memory_space<vmem>>, vector<1x64x8xf32>
    %13 = vector.shape_cast %12 : vector<1x64x8xf32> to vector<64x8xf32>
    %14 = tpu.transpose %13, [1, 0] : vector<64x8xf32> -> vector<8x64xf32>
    %c0_13 = arith.constant 0 : index
    %c0_14 = arith.constant 0 : index
    %15 = vector.load %arg8[%c0_13, %c0_14] : memref<64x512xf32, #tpu.memory_space<vmem>>, vector<64x512xf32>
    %cst_15 = arith.constant dense<0.000000e+00> : vector<8x512xf32>
    %16 = tpu.matmul %14, %15, %cst_15 {dimension_numbers = #tpu.dot_dimension_numbers<[1], [0], [0], [1], [0, 0, 1, 1], [], []>} : vector<8x64xf32>, vector<64x512xf32>, vector<8x512xf32> -> vector<8x512xf32>
    %17 = vector.extract_strided_slice %11 {offsets = [0, 0], sizes = [1, 512], strides = [1, 1]} : vector<16x512xf32> to vector<1x512xf32>
    %18 = vector.extract_strided_slice %16 {offsets = [0, 0], sizes = [1, 512], strides = [1, 1]} : vector<8x512xf32> to vector<1x512xf32>
    %19 = arith.subf %17, %18 : vector<1x512xf32>
    %20 = vector.extract_strided_slice %11 {offsets = [1, 0], sizes = [1, 512], strides = [1, 1]} : vector<16x512xf32> to vector<1x512xf32>
    %21 = vector.extract_strided_slice %16 {offsets = [1, 0], sizes = [1, 512], strides = [1, 1]} : vector<8x512xf32> to vector<1x512xf32>
    %22 = arith.subf %20, %21 : vector<1x512xf32>
    %23 = vector.extract_strided_slice %11 {offsets = [2, 0], sizes = [1, 512], strides = [1, 1]} : vector<16x512xf32> to vector<1x512xf32>
    %24 = vector.extract_strided_slice %16 {offsets = [2, 0], sizes = [1, 512], strides = [1, 1]} : vector<8x512xf32> to vector<1x512xf32>
    %25 = arith.subf %23, %24 : vector<1x512xf32>
    %26 = vector.extract_strided_slice %11 {offsets = [8, 0], sizes = [8, 512], strides = [1, 1]} : vector<16x512xf32> to vector<8x512xf32>
    %cst_16 = arith.constant 0.000000e+00 : f32
    %27 = vector.broadcast %cst_16 : f32 to vector<1x512xf32>
    %28 = arith.cmpf oeq, %19, %27 : vector<1x512xf32>
    %cst_17 = arith.constant 1.000000e+00 : f32
    %29 = vector.broadcast %cst_17 : f32 to vector<1x512xf32>
    %30 = arith.select %28, %29, %19 : vector<1x512xi1>, vector<1x512xf32>
    %31 = tpu.reciprocal %30 {approx = true} : vector<1x512xf32> -> vector<1x512xf32>
    %32 = arith.mulf %22, %31 : vector<1x512xf32>
    %33 = math.absf %32 : vector<1x512xf32>
    %cst_18 = arith.constant 2.41421366 : f32
    %34 = vector.broadcast %cst_18 : f32 to vector<1x512xf32>
    %35 = arith.cmpf ogt, %33, %34 : vector<1x512xf32>
    %cst_19 = arith.constant 0.414213568 : f32
    %36 = vector.broadcast %cst_19 : f32 to vector<1x512xf32>
    %37 = arith.cmpf ogt, %33, %36 : vector<1x512xf32>
    %cst_20 = arith.constant dense<true> : vector<1x512xi1>
    %38 = arith.xori %35, %cst_20 : vector<1x512xi1>
    %39 = arith.andi %37, %38 : vector<1x512xi1>
    %cst_21 = arith.constant 1.000000e-30 : f32
    %40 = vector.broadcast %cst_21 : f32 to vector<1x512xf32>
    %41 = arith.maximumf %33, %40 : vector<1x512xf32>
    %42 = tpu.reciprocal %41 {approx = true} : vector<1x512xf32> -> vector<1x512xf32>
    %cst_22 = arith.constant 0.000000e+00 : f32
    %43 = vector.broadcast %cst_22 : f32 to vector<1x512xf32>
    %44 = arith.subf %43, %42 : vector<1x512xf32>
    %cst_23 = arith.constant 1.000000e+00 : f32
    %45 = vector.broadcast %cst_23 : f32 to vector<1x512xf32>
    %46 = arith.subf %33, %45 : vector<1x512xf32>
    %cst_24 = arith.constant 1.000000e+00 : f32
    %47 = vector.broadcast %cst_24 : f32 to vector<1x512xf32>
    %48 = arith.addf %33, %47 : vector<1x512xf32>
    %49 = tpu.reciprocal %48 {approx = true} : vector<1x512xf32> -> vector<1x512xf32>
    %50 = arith.mulf %46, %49 : vector<1x512xf32>
    %51 = arith.select %39, %50, %33 : vector<1x512xi1>, vector<1x512xf32>
    %52 = arith.select %35, %44, %51 : vector<1x512xi1>, vector<1x512xf32>
    %cst_25 = arith.constant 0.785398185 : f32
    %cst_26 = arith.constant 0.000000e+00 : f32
    %53 = vector.broadcast %cst_25 : f32 to vector<1x512xf32>
    %54 = vector.broadcast %cst_26 : f32 to vector<1x512xf32>
    %55 = arith.select %39, %53, %54 : vector<1x512xi1>, vector<1x512xf32>
    %cst_27 = arith.constant 1.57079637 : f32
    %56 = vector.broadcast %cst_27 : f32 to vector<1x512xf32>
    %57 = arith.select %35, %56, %55 : vector<1x512xi1>, vector<1x512xf32>
    %58 = arith.mulf %52, %52 : vector<1x512xf32>
    %cst_28 = arith.constant 0.0805374458 : f32
    %59 = vector.broadcast %cst_28 : f32 to vector<1x512xf32>
    %60 = arith.mulf %59, %58 : vector<1x512xf32>
    %cst_29 = arith.constant 0.138776854 : f32
    %61 = vector.broadcast %cst_29 : f32 to vector<1x512xf32>
    %62 = arith.subf %60, %61 : vector<1x512xf32>
    %63 = arith.mulf %62, %58 : vector<1x512xf32>
    %cst_30 = arith.constant 0.199777111 : f32
    %64 = vector.broadcast %cst_30 : f32 to vector<1x512xf32>
    %65 = arith.addf %63, %64 : vector<1x512xf32>
    %66 = arith.mulf %65, %58 : vector<1x512xf32>
    %cst_31 = arith.constant 0.333329499 : f32
    %67 = vector.broadcast %cst_31 : f32 to vector<1x512xf32>
    %68 = arith.subf %66, %67 : vector<1x512xf32>
    %69 = arith.mulf %68, %58 : vector<1x512xf32>
    %70 = arith.mulf %69, %52 : vector<1x512xf32>
    %71 = arith.addf %70, %52 : vector<1x512xf32>
    %72 = arith.addf %57, %71 : vector<1x512xf32>
    %cst_32 = arith.constant 0.000000e+00 : f32
    %73 = vector.broadcast %cst_32 : f32 to vector<1x512xf32>
    %74 = arith.cmpf olt, %32, %73 : vector<1x512xf32>
    %cst_33 = arith.constant 0.000000e+00 : f32
    %75 = vector.broadcast %cst_33 : f32 to vector<1x512xf32>
    %76 = arith.subf %75, %72 : vector<1x512xf32>
    %77 = arith.select %74, %76, %72 : vector<1x512xi1>, vector<1x512xf32>
    %cst_34 = arith.constant 0.000000e+00 : f32
    %78 = vector.broadcast %cst_34 : f32 to vector<1x512xf32>
    %79 = arith.cmpf oge, %22, %78 : vector<1x512xf32>
    %cst_35 = arith.constant 3.14159274 : f32
    %80 = vector.broadcast %cst_35 : f32 to vector<1x512xf32>
    %81 = arith.addf %77, %80 : vector<1x512xf32>
    %cst_36 = arith.constant 3.14159274 : f32
    %82 = vector.broadcast %cst_36 : f32 to vector<1x512xf32>
    %83 = arith.subf %77, %82 : vector<1x512xf32>
    %84 = arith.select %79, %81, %83 : vector<1x512xi1>, vector<1x512xf32>
    %cst_37 = arith.constant 0.000000e+00 : f32
    %85 = vector.broadcast %cst_37 : f32 to vector<1x512xf32>
    %86 = arith.cmpf ogt, %22, %85 : vector<1x512xf32>
    %cst_38 = arith.constant 0.000000e+00 : f32
    %87 = vector.broadcast %cst_38 : f32 to vector<1x512xf32>
    %88 = arith.cmpf olt, %22, %87 : vector<1x512xf32>
    %cst_39 = arith.constant -1.57079637 : f32
    %cst_40 = arith.constant 0.000000e+00 : f32
    %89 = vector.broadcast %cst_39 : f32 to vector<1x512xf32>
    %90 = vector.broadcast %cst_40 : f32 to vector<1x512xf32>
    %91 = arith.select %88, %89, %90 : vector<1x512xi1>, vector<1x512xf32>
    %cst_41 = arith.constant 1.57079637 : f32
    %92 = vector.broadcast %cst_41 : f32 to vector<1x512xf32>
    %93 = arith.select %86, %92, %91 : vector<1x512xi1>, vector<1x512xf32>
    %cst_42 = arith.constant 0.000000e+00 : f32
    %94 = vector.broadcast %cst_42 : f32 to vector<1x512xf32>
    %95 = arith.cmpf ogt, %19, %94 : vector<1x512xf32>
    %cst_43 = arith.constant 0.000000e+00 : f32
    %96 = vector.broadcast %cst_43 : f32 to vector<1x512xf32>
    %97 = arith.cmpf olt, %19, %96 : vector<1x512xf32>
    %98 = arith.select %97, %84, %93 : vector<1x512xi1>, vector<1x512xf32>
    %99 = arith.select %95, %77, %98 : vector<1x512xi1>, vector<1x512xf32>
    %cst_44 = arith.constant 3.14159274 : f32
    %100 = vector.broadcast %cst_44 : f32 to vector<1x512xf32>
    %101 = arith.addf %99, %100 : vector<1x512xf32>
    %cst_45 = arith.constant 9.99999993E-9 : f32
    %102 = vector.broadcast %cst_45 : f32 to vector<1x512xf32>
    %103 = arith.addf %3, %102 : vector<1x512xf32>
    %104 = arith.divf %25, %103 : vector<1x512xf32>
    %cst_46 = arith.constant -1.000000e+00 : f32
    %cst_47 = arith.constant 1.000000e+00 : f32
    %105 = vector.broadcast %cst_46 : f32 to vector<1x512xf32>
    %106 = arith.maximumf %105, %104 : vector<1x512xf32>
    %107 = vector.broadcast %cst_47 : f32 to vector<1x512xf32>
    %108 = arith.minimumf %107, %106 : vector<1x512xf32>
    %109 = arith.mulf %108, %108 : vector<1x512xf32>
    %cst_48 = arith.constant 1.000000e+00 : f32
    %110 = vector.broadcast %cst_48 : f32 to vector<1x512xf32>
    %111 = arith.subf %110, %109 : vector<1x512xf32>
    %cst_49 = arith.constant 0.000000e+00 : f32
    %112 = vector.broadcast %cst_49 : f32 to vector<1x512xf32>
    %113 = arith.maximumf %111, %112 : vector<1x512xf32>
    %114 = math.sqrt %113 : vector<1x512xf32>
    %cst_50 = arith.constant 0.000000e+00 : f32
    %115 = vector.broadcast %cst_50 : f32 to vector<1x512xf32>
    %116 = arith.cmpf oeq, %108, %115 : vector<1x512xf32>
    %cst_51 = arith.constant 1.000000e+00 : f32
    %117 = vector.broadcast %cst_51 : f32 to vector<1x512xf32>
    %118 = arith.select %116, %117, %108 : vector<1x512xi1>, vector<1x512xf32>
    %119 = tpu.reciprocal %118 {approx = true} : vector<1x512xf32> -> vector<1x512xf32>
    %120 = arith.mulf %114, %119 : vector<1x512xf32>
    %121 = math.absf %120 : vector<1x512xf32>
    %cst_52 = arith.constant 2.41421366 : f32
    %122 = vector.broadcast %cst_52 : f32 to vector<1x512xf32>
    %123 = arith.cmpf ogt, %121, %122 : vector<1x512xf32>
    %cst_53 = arith.constant 0.414213568 : f32
    %124 = vector.broadcast %cst_53 : f32 to vector<1x512xf32>
    %125 = arith.cmpf ogt, %121, %124 : vector<1x512xf32>
    %cst_54 = arith.constant dense<true> : vector<1x512xi1>
    %126 = arith.xori %123, %cst_54 : vector<1x512xi1>
    %127 = arith.andi %125, %126 : vector<1x512xi1>
    %cst_55 = arith.constant 1.000000e-30 : f32
    %128 = vector.broadcast %cst_55 : f32 to vector<1x512xf32>
    %129 = arith.maximumf %121, %128 : vector<1x512xf32>
    %130 = tpu.reciprocal %129 {approx = true} : vector<1x512xf32> -> vector<1x512xf32>
    %cst_56 = arith.constant 0.000000e+00 : f32
    %131 = vector.broadcast %cst_56 : f32 to vector<1x512xf32>
    %132 = arith.subf %131, %130 : vector<1x512xf32>
    %cst_57 = arith.constant 1.000000e+00 : f32
    %133 = vector.broadcast %cst_57 : f32 to vector<1x512xf32>
    %134 = arith.subf %121, %133 : vector<1x512xf32>
    %cst_58 = arith.constant 1.000000e+00 : f32
    %135 = vector.broadcast %cst_58 : f32 to vector<1x512xf32>
    %136 = arith.addf %121, %135 : vector<1x512xf32>
    %137 = tpu.reciprocal %136 {approx = true} : vector<1x512xf32> -> vector<1x512xf32>
    %138 = arith.mulf %134, %137 : vector<1x512xf32>
    %139 = arith.select %127, %138, %121 : vector<1x512xi1>, vector<1x512xf32>
    %140 = arith.select %123, %132, %139 : vector<1x512xi1>, vector<1x512xf32>
    %cst_59 = arith.constant 0.785398185 : f32
    %cst_60 = arith.constant 0.000000e+00 : f32
    %141 = vector.broadcast %cst_59 : f32 to vector<1x512xf32>
    %142 = vector.broadcast %cst_60 : f32 to vector<1x512xf32>
    %143 = arith.select %127, %141, %142 : vector<1x512xi1>, vector<1x512xf32>
    %cst_61 = arith.constant 1.57079637 : f32
    %144 = vector.broadcast %cst_61 : f32 to vector<1x512xf32>
    %145 = arith.select %123, %144, %143 : vector<1x512xi1>, vector<1x512xf32>
    %146 = arith.mulf %140, %140 : vector<1x512xf32>
    %cst_62 = arith.constant 0.0805374458 : f32
    %147 = vector.broadcast %cst_62 : f32 to vector<1x512xf32>
    %148 = arith.mulf %147, %146 : vector<1x512xf32>
    %cst_63 = arith.constant 0.138776854 : f32
    %149 = vector.broadcast %cst_63 : f32 to vector<1x512xf32>
    %150 = arith.subf %148, %149 : vector<1x512xf32>
    %151 = arith.mulf %150, %146 : vector<1x512xf32>
    %cst_64 = arith.constant 0.199777111 : f32
    %152 = vector.broadcast %cst_64 : f32 to vector<1x512xf32>
    %153 = arith.addf %151, %152 : vector<1x512xf32>
    %154 = arith.mulf %153, %146 : vector<1x512xf32>
    %cst_65 = arith.constant 0.333329499 : f32
    %155 = vector.broadcast %cst_65 : f32 to vector<1x512xf32>
    %156 = arith.subf %154, %155 : vector<1x512xf32>
    %157 = arith.mulf %156, %146 : vector<1x512xf32>
    %158 = arith.mulf %157, %140 : vector<1x512xf32>
    %159 = arith.addf %158, %140 : vector<1x512xf32>
    %160 = arith.addf %145, %159 : vector<1x512xf32>
    %cst_66 = arith.constant 0.000000e+00 : f32
    %161 = vector.broadcast %cst_66 : f32 to vector<1x512xf32>
    %162 = arith.cmpf olt, %120, %161 : vector<1x512xf32>
    %cst_67 = arith.constant 0.000000e+00 : f32
    %163 = vector.broadcast %cst_67 : f32 to vector<1x512xf32>
    %164 = arith.subf %163, %160 : vector<1x512xf32>
    %165 = arith.select %162, %164, %160 : vector<1x512xi1>, vector<1x512xf32>
    %cst_68 = arith.constant 0.000000e+00 : f32
    %166 = vector.broadcast %cst_68 : f32 to vector<1x512xf32>
    %167 = arith.cmpf oge, %114, %166 : vector<1x512xf32>
    %cst_69 = arith.constant 3.14159274 : f32
    %168 = vector.broadcast %cst_69 : f32 to vector<1x512xf32>
    %169 = arith.addf %165, %168 : vector<1x512xf32>
    %cst_70 = arith.constant 3.14159274 : f32
    %170 = vector.broadcast %cst_70 : f32 to vector<1x512xf32>
    %171 = arith.subf %165, %170 : vector<1x512xf32>
    %172 = arith.select %167, %169, %171 : vector<1x512xi1>, vector<1x512xf32>
    %cst_71 = arith.constant 0.000000e+00 : f32
    %173 = vector.broadcast %cst_71 : f32 to vector<1x512xf32>
    %174 = arith.cmpf ogt, %114, %173 : vector<1x512xf32>
    %cst_72 = arith.constant 0.000000e+00 : f32
    %175 = vector.broadcast %cst_72 : f32 to vector<1x512xf32>
    %176 = arith.cmpf olt, %114, %175 : vector<1x512xf32>
    %cst_73 = arith.constant -1.57079637 : f32
    %cst_74 = arith.constant 0.000000e+00 : f32
    %177 = vector.broadcast %cst_73 : f32 to vector<1x512xf32>
    %178 = vector.broadcast %cst_74 : f32 to vector<1x512xf32>
    %179 = arith.select %176, %177, %178 : vector<1x512xi1>, vector<1x512xf32>
    %cst_75 = arith.constant 1.57079637 : f32
    %180 = vector.broadcast %cst_75 : f32 to vector<1x512xf32>
    %181 = arith.select %174, %180, %179 : vector<1x512xi1>, vector<1x512xf32>
    %cst_76 = arith.constant 0.000000e+00 : f32
    %182 = vector.broadcast %cst_76 : f32 to vector<1x512xf32>
    %183 = arith.cmpf ogt, %108, %182 : vector<1x512xf32>
    %cst_77 = arith.constant 0.000000e+00 : f32
    %184 = vector.broadcast %cst_77 : f32 to vector<1x512xf32>
    %185 = arith.cmpf olt, %108, %184 : vector<1x512xf32>
    %186 = arith.select %185, %172, %181 : vector<1x512xi1>, vector<1x512xf32>
    %187 = arith.select %183, %165, %186 : vector<1x512xi1>, vector<1x512xf32>
    %cst_78 = arith.constant 0.636619746 : f32
    %188 = vector.broadcast %cst_78 : f32 to vector<1x512xf32>
    %189 = arith.mulf %101, %188 : vector<1x512xf32>
    %cst_79 = arith.constant 0.636619746 : f32
    %190 = vector.broadcast %cst_79 : f32 to vector<1x512xf32>
    %191 = arith.mulf %187, %190 : vector<1x512xf32>
    %cst_80 = arith.constant 2.000000e+01 : f32
    %192 = vector.broadcast %cst_80 : f32 to vector<1x512xf32>
    %193 = arith.mulf %3, %192 : vector<1x512xf32>
    %cst_81 = arith.constant 0.000000e+00 : f32
    %cst_82 = arith.constant 1.99999905 : f32
    %194 = vector.broadcast %cst_81 : f32 to vector<1x512xf32>
    %195 = arith.maximumf %194, %193 : vector<1x512xf32>
    %196 = vector.broadcast %cst_82 : f32 to vector<1x512xf32>
    %197 = arith.minimumf %196, %195 : vector<1x512xf32>
    %198 = math.floor %189 : vector<1x512xf32>
    %199 = math.floor %191 : vector<1x512xf32>
    %200 = math.floor %197 : vector<1x512xf32>
    %201 = arith.subf %189, %198 : vector<1x512xf32>
    %202 = arith.subf %191, %199 : vector<1x512xf32>
    %203 = arith.subf %197, %200 : vector<1x512xf32>
    %204 = arith.fptosi %198 : vector<1x512xf32> to vector<1x512xi32>
    %205 = arith.fptosi %199 : vector<1x512xf32> to vector<1x512xi32>
    %206 = arith.fptosi %200 : vector<1x512xf32> to vector<1x512xi32>
    %cst_83 = arith.constant 1.000000e+00 : f32
    %207 = vector.broadcast %cst_83 : f32 to vector<1x512xf32>
    %208 = arith.subf %207, %201 : vector<1x512xf32>
    %cst_84 = arith.constant 1.000000e+00 : f32
    %209 = vector.broadcast %cst_84 : f32 to vector<1x512xf32>
    %210 = arith.subf %209, %202 : vector<1x512xf32>
    %cst_85 = arith.constant 1.000000e+00 : f32
    %211 = vector.broadcast %cst_85 : f32 to vector<1x512xf32>
    %212 = arith.subf %211, %203 : vector<1x512xf32>
    %c0_86 = arith.constant 0 : index
    %c0_87 = arith.constant 0 : index
    %213 = vector.load %arg7[%c0_86, %c0_87] : memref<16x512xi32, #tpu.memory_space<vmem>>, vector<16x512xi32>
    %cst_88 = arith.constant 0.000000e+00 : f32
    %214 = vector.broadcast %cst_88 : f32 to vector<16x512xf32>
    %c0_i32 = arith.constant 0 : i32
    %215 = vector.broadcast %c0_i32 : i32 to vector<1x512xi32>
    %216 = arith.addi %204, %215 : vector<1x512xi32>
    %c4_i32 = arith.constant 4 : i32
    %217 = vector.broadcast %c4_i32 : i32 to vector<1x512xi32>
    %218 = arith.cmpi sge, %216, %217 : vector<1x512xi32>
    %c4_i32_89 = arith.constant 4 : i32
    %219 = vector.broadcast %c4_i32_89 : i32 to vector<1x512xi32>
    %220 = arith.subi %216, %219 : vector<1x512xi32>
    %221 = arith.select %218, %220, %216 : vector<1x512xi1>, vector<1x512xi32>
    %c0_i32_90 = arith.constant 0 : i32
    %222 = vector.broadcast %c0_i32_90 : i32 to vector<1x512xi32>
    %223 = arith.addi %205, %222 : vector<1x512xi32>
    %c0_i32_91 = arith.constant 0 : i32
    %c1_i32 = arith.constant 1 : i32
    %224 = vector.broadcast %c0_i32_91 : i32 to vector<1x512xi32>
    %225 = arith.maxsi %224, %223 : vector<1x512xi32>
    %226 = vector.broadcast %c1_i32 : i32 to vector<1x512xi32>
    %227 = arith.minsi %226, %225 : vector<1x512xi32>
    %228 = arith.mulf %208, %210 : vector<1x512xf32>
    %c0_i32_92 = arith.constant 0 : i32
    %229 = vector.broadcast %c0_i32_92 : i32 to vector<1x512xi32>
    %230 = arith.addi %206, %229 : vector<1x512xi32>
    %c0_i32_93 = arith.constant 0 : i32
    %c1_i32_94 = arith.constant 1 : i32
    %231 = vector.broadcast %c0_i32_93 : i32 to vector<1x512xi32>
    %232 = arith.maxsi %231, %230 : vector<1x512xi32>
    %233 = vector.broadcast %c1_i32_94 : i32 to vector<1x512xi32>
    %234 = arith.minsi %233, %232 : vector<1x512xi32>
    %235 = arith.mulf %228, %212 : vector<1x512xf32>
    %c2_i32 = arith.constant 2 : i32
    %236 = vector.broadcast %c2_i32 : i32 to vector<1x512xi32>
    %237 = arith.muli %221, %236 : vector<1x512xi32>
    %238 = arith.addi %237, %227 : vector<1x512xi32>
    %c2_i32_95 = arith.constant 2 : i32
    %239 = vector.broadcast %c2_i32_95 : i32 to vector<1x512xi32>
    %240 = arith.muli %238, %239 : vector<1x512xi32>
    %241 = arith.addi %240, %234 : vector<1x512xi32>
    %242 = vector.broadcast %241 : vector<1x512xi32> to vector<16x512xi32>
    %243 = arith.cmpi eq, %242, %213 : vector<16x512xi32>
    %cst_96 = arith.constant 0.000000e+00 : f32
    %244 = vector.shape_cast %235 : vector<1x512xf32> to vector<1x512xf32>
    %245 = vector.broadcast %244 : vector<1x512xf32> to vector<16x512xf32>
    %246 = vector.broadcast %cst_96 : f32 to vector<16x512xf32>
    %247 = arith.select %243, %245, %246 : vector<16x512xi1>, vector<16x512xf32>
    %248 = arith.addf %214, %247 : vector<16x512xf32>
    %c1_i32_97 = arith.constant 1 : i32
    %249 = vector.broadcast %c1_i32_97 : i32 to vector<1x512xi32>
    %250 = arith.addi %206, %249 : vector<1x512xi32>
    %c0_i32_98 = arith.constant 0 : i32
    %c1_i32_99 = arith.constant 1 : i32
    %251 = vector.broadcast %c0_i32_98 : i32 to vector<1x512xi32>
    %252 = arith.maxsi %251, %250 : vector<1x512xi32>
    %253 = vector.broadcast %c1_i32_99 : i32 to vector<1x512xi32>
    %254 = arith.minsi %253, %252 : vector<1x512xi32>
    %255 = arith.mulf %228, %203 : vector<1x512xf32>
    %c2_i32_100 = arith.constant 2 : i32
    %256 = vector.broadcast %c2_i32_100 : i32 to vector<1x512xi32>
    %257 = arith.muli %221, %256 : vector<1x512xi32>
    %258 = arith.addi %257, %227 : vector<1x512xi32>
    %c2_i32_101 = arith.constant 2 : i32
    %259 = vector.broadcast %c2_i32_101 : i32 to vector<1x512xi32>
    %260 = arith.muli %258, %259 : vector<1x512xi32>
    %261 = arith.addi %260, %254 : vector<1x512xi32>
    %262 = vector.broadcast %261 : vector<1x512xi32> to vector<16x512xi32>
    %263 = arith.cmpi eq, %262, %213 : vector<16x512xi32>
    %cst_102 = arith.constant 0.000000e+00 : f32
    %264 = vector.shape_cast %255 : vector<1x512xf32> to vector<1x512xf32>
    %265 = vector.broadcast %264 : vector<1x512xf32> to vector<16x512xf32>
    %266 = vector.broadcast %cst_102 : f32 to vector<16x512xf32>
    %267 = arith.select %263, %265, %266 : vector<16x512xi1>, vector<16x512xf32>
    %268 = arith.addf %248, %267 : vector<16x512xf32>
    %c1_i32_103 = arith.constant 1 : i32
    %269 = vector.broadcast %c1_i32_103 : i32 to vector<1x512xi32>
    %270 = arith.addi %205, %269 : vector<1x512xi32>
    %c0_i32_104 = arith.constant 0 : i32
    %c1_i32_105 = arith.constant 1 : i32
    %271 = vector.broadcast %c0_i32_104 : i32 to vector<1x512xi32>
    %272 = arith.maxsi %271, %270 : vector<1x512xi32>
    %273 = vector.broadcast %c1_i32_105 : i32 to vector<1x512xi32>
    %274 = arith.minsi %273, %272 : vector<1x512xi32>
    %275 = arith.mulf %208, %202 : vector<1x512xf32>
    %c0_i32_106 = arith.constant 0 : i32
    %276 = vector.broadcast %c0_i32_106 : i32 to vector<1x512xi32>
    %277 = arith.addi %206, %276 : vector<1x512xi32>
    %c0_i32_107 = arith.constant 0 : i32
    %c1_i32_108 = arith.constant 1 : i32
    %278 = vector.broadcast %c0_i32_107 : i32 to vector<1x512xi32>
    %279 = arith.maxsi %278, %277 : vector<1x512xi32>
    %280 = vector.broadcast %c1_i32_108 : i32 to vector<1x512xi32>
    %281 = arith.minsi %280, %279 : vector<1x512xi32>
    %282 = arith.mulf %275, %212 : vector<1x512xf32>
    %c2_i32_109 = arith.constant 2 : i32
    %283 = vector.broadcast %c2_i32_109 : i32 to vector<1x512xi32>
    %284 = arith.muli %221, %283 : vector<1x512xi32>
    %285 = arith.addi %284, %274 : vector<1x512xi32>
    %c2_i32_110 = arith.constant 2 : i32
    %286 = vector.broadcast %c2_i32_110 : i32 to vector<1x512xi32>
    %287 = arith.muli %285, %286 : vector<1x512xi32>
    %288 = arith.addi %287, %281 : vector<1x512xi32>
    %289 = vector.broadcast %288 : vector<1x512xi32> to vector<16x512xi32>
    %290 = arith.cmpi eq, %289, %213 : vector<16x512xi32>
    %cst_111 = arith.constant 0.000000e+00 : f32
    %291 = vector.shape_cast %282 : vector<1x512xf32> to vector<1x512xf32>
    %292 = vector.broadcast %291 : vector<1x512xf32> to vector<16x512xf32>
    %293 = vector.broadcast %cst_111 : f32 to vector<16x512xf32>
    %294 = arith.select %290, %292, %293 : vector<16x512xi1>, vector<16x512xf32>
    %295 = arith.addf %268, %294 : vector<16x512xf32>
    %c1_i32_112 = arith.constant 1 : i32
    %296 = vector.broadcast %c1_i32_112 : i32 to vector<1x512xi32>
    %297 = arith.addi %206, %296 : vector<1x512xi32>
    %c0_i32_113 = arith.constant 0 : i32
    %c1_i32_114 = arith.constant 1 : i32
    %298 = vector.broadcast %c0_i32_113 : i32 to vector<1x512xi32>
    %299 = arith.maxsi %298, %297 : vector<1x512xi32>
    %300 = vector.broadcast %c1_i32_114 : i32 to vector<1x512xi32>
    %301 = arith.minsi %300, %299 : vector<1x512xi32>
    %302 = arith.mulf %275, %203 : vector<1x512xf32>
    %c2_i32_115 = arith.constant 2 : i32
    %303 = vector.broadcast %c2_i32_115 : i32 to vector<1x512xi32>
    %304 = arith.muli %221, %303 : vector<1x512xi32>
    %305 = arith.addi %304, %274 : vector<1x512xi32>
    %c2_i32_116 = arith.constant 2 : i32
    %306 = vector.broadcast %c2_i32_116 : i32 to vector<1x512xi32>
    %307 = arith.muli %305, %306 : vector<1x512xi32>
    %308 = arith.addi %307, %301 : vector<1x512xi32>
    %309 = vector.broadcast %308 : vector<1x512xi32> to vector<16x512xi32>
    %310 = arith.cmpi eq, %309, %213 : vector<16x512xi32>
    %cst_117 = arith.constant 0.000000e+00 : f32
    %311 = vector.shape_cast %302 : vector<1x512xf32> to vector<1x512xf32>
    %312 = vector.broadcast %311 : vector<1x512xf32> to vector<16x512xf32>
    %313 = vector.broadcast %cst_117 : f32 to vector<16x512xf32>
    %314 = arith.select %310, %312, %313 : vector<16x512xi1>, vector<16x512xf32>
    %315 = arith.addf %295, %314 : vector<16x512xf32>
    %c1_i32_118 = arith.constant 1 : i32
    %316 = vector.broadcast %c1_i32_118 : i32 to vector<1x512xi32>
    %317 = arith.addi %204, %316 : vector<1x512xi32>
    %c4_i32_119 = arith.constant 4 : i32
    %318 = vector.broadcast %c4_i32_119 : i32 to vector<1x512xi32>
    %319 = arith.cmpi sge, %317, %318 : vector<1x512xi32>
    %c4_i32_120 = arith.constant 4 : i32
    %320 = vector.broadcast %c4_i32_120 : i32 to vector<1x512xi32>
    %321 = arith.subi %317, %320 : vector<1x512xi32>
    %322 = arith.select %319, %321, %317 : vector<1x512xi1>, vector<1x512xi32>
    %c0_i32_121 = arith.constant 0 : i32
    %323 = vector.broadcast %c0_i32_121 : i32 to vector<1x512xi32>
    %324 = arith.addi %205, %323 : vector<1x512xi32>
    %c0_i32_122 = arith.constant 0 : i32
    %c1_i32_123 = arith.constant 1 : i32
    %325 = vector.broadcast %c0_i32_122 : i32 to vector<1x512xi32>
    %326 = arith.maxsi %325, %324 : vector<1x512xi32>
    %327 = vector.broadcast %c1_i32_123 : i32 to vector<1x512xi32>
    %328 = arith.minsi %327, %326 : vector<1x512xi32>
    %329 = arith.mulf %201, %210 : vector<1x512xf32>
    %c0_i32_124 = arith.constant 0 : i32
    %330 = vector.broadcast %c0_i32_124 : i32 to vector<1x512xi32>
    %331 = arith.addi %206, %330 : vector<1x512xi32>
    %c0_i32_125 = arith.constant 0 : i32
    %c1_i32_126 = arith.constant 1 : i32
    %332 = vector.broadcast %c0_i32_125 : i32 to vector<1x512xi32>
    %333 = arith.maxsi %332, %331 : vector<1x512xi32>
    %334 = vector.broadcast %c1_i32_126 : i32 to vector<1x512xi32>
    %335 = arith.minsi %334, %333 : vector<1x512xi32>
    %336 = arith.mulf %329, %212 : vector<1x512xf32>
    %c2_i32_127 = arith.constant 2 : i32
    %337 = vector.broadcast %c2_i32_127 : i32 to vector<1x512xi32>
    %338 = arith.muli %322, %337 : vector<1x512xi32>
    %339 = arith.addi %338, %328 : vector<1x512xi32>
    %c2_i32_128 = arith.constant 2 : i32
    %340 = vector.broadcast %c2_i32_128 : i32 to vector<1x512xi32>
    %341 = arith.muli %339, %340 : vector<1x512xi32>
    %342 = arith.addi %341, %335 : vector<1x512xi32>
    %343 = vector.broadcast %342 : vector<1x512xi32> to vector<16x512xi32>
    %344 = arith.cmpi eq, %343, %213 : vector<16x512xi32>
    %cst_129 = arith.constant 0.000000e+00 : f32
    %345 = vector.shape_cast %336 : vector<1x512xf32> to vector<1x512xf32>
    %346 = vector.broadcast %345 : vector<1x512xf32> to vector<16x512xf32>
    %347 = vector.broadcast %cst_129 : f32 to vector<16x512xf32>
    %348 = arith.select %344, %346, %347 : vector<16x512xi1>, vector<16x512xf32>
    %349 = arith.addf %315, %348 : vector<16x512xf32>
    %c1_i32_130 = arith.constant 1 : i32
    %350 = vector.broadcast %c1_i32_130 : i32 to vector<1x512xi32>
    %351 = arith.addi %206, %350 : vector<1x512xi32>
    %c0_i32_131 = arith.constant 0 : i32
    %c1_i32_132 = arith.constant 1 : i32
    %352 = vector.broadcast %c0_i32_131 : i32 to vector<1x512xi32>
    %353 = arith.maxsi %352, %351 : vector<1x512xi32>
    %354 = vector.broadcast %c1_i32_132 : i32 to vector<1x512xi32>
    %355 = arith.minsi %354, %353 : vector<1x512xi32>
    %356 = arith.mulf %329, %203 : vector<1x512xf32>
    %c2_i32_133 = arith.constant 2 : i32
    %357 = vector.broadcast %c2_i32_133 : i32 to vector<1x512xi32>
    %358 = arith.muli %322, %357 : vector<1x512xi32>
    %359 = arith.addi %358, %328 : vector<1x512xi32>
    %c2_i32_134 = arith.constant 2 : i32
    %360 = vector.broadcast %c2_i32_134 : i32 to vector<1x512xi32>
    %361 = arith.muli %359, %360 : vector<1x512xi32>
    %362 = arith.addi %361, %355 : vector<1x512xi32>
    %363 = vector.broadcast %362 : vector<1x512xi32> to vector<16x512xi32>
    %364 = arith.cmpi eq, %363, %213 : vector<16x512xi32>
    %cst_135 = arith.constant 0.000000e+00 : f32
    %365 = vector.shape_cast %356 : vector<1x512xf32> to vector<1x512xf32>
    %366 = vector.broadcast %365 : vector<1x512xf32> to vector<16x512xf32>
    %367 = vector.broadcast %cst_135 : f32 to vector<16x512xf32>
    %368 = arith.select %364, %366, %367 : vector<16x512xi1>, vector<16x512xf32>
    %369 = arith.addf %349, %368 : vector<16x512xf32>
    %c1_i32_136 = arith.constant 1 : i32
    %370 = vector.broadcast %c1_i32_136 : i32 to vector<1x512xi32>
    %371 = arith.addi %205, %370 : vector<1x512xi32>
    %c0_i32_137 = arith.constant 0 : i32
    %c1_i32_138 = arith.constant 1 : i32
    %372 = vector.broadcast %c0_i32_137 : i32 to vector<1x512xi32>
    %373 = arith.maxsi %372, %371 : vector<1x512xi32>
    %374 = vector.broadcast %c1_i32_138 : i32 to vector<1x512xi32>
    %375 = arith.minsi %374, %373 : vector<1x512xi32>
    %376 = arith.mulf %201, %202 : vector<1x512xf32>
    %c0_i32_139 = arith.constant 0 : i32
    %377 = vector.broadcast %c0_i32_139 : i32 to vector<1x512xi32>
    %378 = arith.addi %206, %377 : vector<1x512xi32>
    %c0_i32_140 = arith.constant 0 : i32
    %c1_i32_141 = arith.constant 1 : i32
    %379 = vector.broadcast %c0_i32_140 : i32 to vector<1x512xi32>
    %380 = arith.maxsi %379, %378 : vector<1x512xi32>
    %381 = vector.broadcast %c1_i32_141 : i32 to vector<1x512xi32>
    %382 = arith.minsi %381, %380 : vector<1x512xi32>
    %383 = arith.mulf %376, %212 : vector<1x512xf32>
    %c2_i32_142 = arith.constant 2 : i32
    %384 = vector.broadcast %c2_i32_142 : i32 to vector<1x512xi32>
    %385 = arith.muli %322, %384 : vector<1x512xi32>
    %386 = arith.addi %385, %375 : vector<1x512xi32>
    %c2_i32_143 = arith.constant 2 : i32
    %387 = vector.broadcast %c2_i32_143 : i32 to vector<1x512xi32>
    %388 = arith.muli %386, %387 : vector<1x512xi32>
    %389 = arith.addi %388, %382 : vector<1x512xi32>
    %390 = vector.broadcast %389 : vector<1x512xi32> to vector<16x512xi32>
    %391 = arith.cmpi eq, %390, %213 : vector<16x512xi32>
    %cst_144 = arith.constant 0.000000e+00 : f32
    %392 = vector.shape_cast %383 : vector<1x512xf32> to vector<1x512xf32>
    %393 = vector.broadcast %392 : vector<1x512xf32> to vector<16x512xf32>
    %394 = vector.broadcast %cst_144 : f32 to vector<16x512xf32>
    %395 = arith.select %391, %393, %394 : vector<16x512xi1>, vector<16x512xf32>
    %396 = arith.addf %369, %395 : vector<16x512xf32>
    %c1_i32_145 = arith.constant 1 : i32
    %397 = vector.broadcast %c1_i32_145 : i32 to vector<1x512xi32>
    %398 = arith.addi %206, %397 : vector<1x512xi32>
    %c0_i32_146 = arith.constant 0 : i32
    %c1_i32_147 = arith.constant 1 : i32
    %399 = vector.broadcast %c0_i32_146 : i32 to vector<1x512xi32>
    %400 = arith.maxsi %399, %398 : vector<1x512xi32>
    %401 = vector.broadcast %c1_i32_147 : i32 to vector<1x512xi32>
    %402 = arith.minsi %401, %400 : vector<1x512xi32>
    %403 = arith.mulf %376, %203 : vector<1x512xf32>
    %c2_i32_148 = arith.constant 2 : i32
    %404 = vector.broadcast %c2_i32_148 : i32 to vector<1x512xi32>
    %405 = arith.muli %322, %404 : vector<1x512xi32>
    %406 = arith.addi %405, %375 : vector<1x512xi32>
    %c2_i32_149 = arith.constant 2 : i32
    %407 = vector.broadcast %c2_i32_149 : i32 to vector<1x512xi32>
    %408 = arith.muli %406, %407 : vector<1x512xi32>
    %409 = arith.addi %408, %402 : vector<1x512xi32>
    %410 = vector.broadcast %409 : vector<1x512xi32> to vector<16x512xi32>
    %411 = arith.cmpi eq, %410, %213 : vector<16x512xi32>
    %cst_150 = arith.constant 0.000000e+00 : f32
    %412 = vector.shape_cast %403 : vector<1x512xf32> to vector<1x512xf32>
    %413 = vector.broadcast %412 : vector<1x512xf32> to vector<16x512xf32>
    %414 = vector.broadcast %cst_150 : f32 to vector<16x512xf32>
    %415 = arith.select %411, %413, %414 : vector<16x512xi1>, vector<16x512xf32>
    %416 = arith.addf %396, %415 : vector<16x512xf32>
    %c0_151 = arith.constant 0 : index
    %c0_152 = arith.constant 0 : index
    %417 = vector.load %arg10[%c0_151, %c0_152] : memref<8x16xf32, #tpu.memory_space<vmem>>, vector<8x16xf32>
    %cst_153 = arith.constant dense<0.000000e+00> : vector<8x512xf32>
    %418 = tpu.matmul %417, %416, %cst_153 {dimension_numbers = #tpu.dot_dimension_numbers<[1], [0], [0], [1], [0, 0, 1, 1], [], []>} : vector<8x16xf32>, vector<16x512xf32>, vector<8x512xf32> -> vector<8x512xf32>
    %419 = arith.mulf %26, %418 : vector<8x512xf32>
    %c0_154 = arith.constant 0 : index
    %c0_155 = arith.constant 0 : index
    %420 = vector.load %arg9[%c0_154, %c0_155] : memref<512x64xf32, #tpu.memory_space<vmem>>, vector<512x64xf32>
    %cst_156 = arith.constant dense<0.000000e+00> : vector<8x64xf32>
    %421 = tpu.matmul %419, %420, %cst_156 {dimension_numbers = #tpu.dot_dimension_numbers<[1], [0], [0], [1], [0, 0, 1, 1], [], []>} : vector<8x512xf32>, vector<512x64xf32>, vector<8x64xf32> -> vector<8x64xf32>
    %422 = tpu.transpose %421, [1, 0] : vector<8x64xf32> -> vector<64x8xf32>
    %c0_157 = arith.constant 0 : index
    %c0_158 = arith.constant 0 : index
    %423 = vector.load %arg11[%c0_157, %c0_158] : memref<8x128xf32, #tpu.memory_space<vmem>>, vector<8x128xf32>
    %cst_159 = arith.constant dense<0.000000e+00> : vector<64x128xf32>
    %424 = tpu.matmul %422, %423, %cst_159 {dimension_numbers = #tpu.dot_dimension_numbers<[1], [0], [0], [1], [0, 0, 1, 1], [], []>} : vector<64x8xf32>, vector<8x128xf32>, vector<64x128xf32> -> vector<64x128xf32>
    %c0_160 = arith.constant 0 : index
    %c0_161 = arith.constant 0 : index
    %425 = vector.load %arg12[%c0_160, %c0_161] : memref<1x128xf32, #tpu.memory_space<vmem>>, vector<1x128xf32>
    %426 = vector.broadcast %425 : vector<1x128xf32> to vector<64x128xf32>
    %427 = arith.addf %424, %426 : vector<64x128xf32>
    %c0_162 = arith.constant 0 : index
    %c0_163 = arith.constant 0 : index
    %c0_164 = arith.constant 0 : index
    %428 = vector.load %arg13[%c0_162, %c0_163, %c0_164] : memref<1x64x128xf32, #tpu.memory_space<vmem>>, vector<1x64x128xf32>
    %429 = vector.shape_cast %428 : vector<1x64x128xf32> to vector<64x128xf32>
    %430 = vector.shape_cast %427 : vector<64x128xf32> to vector<1x64x128xf32>
    tpu.vector_store %arg13[%c0_162, %c0_163, %c0_164], %430 {strides = array<i32>} : memref<1x64x128xf32, #tpu.memory_space<vmem>>, vector<1x64x128xf32>,
    return
  }
  func.func @transform_0(%arg0: i32, %arg1: i32) -> (i32, i32, i32) {
    %c0_i32 = arith.constant 0 : i32
    %c0_i32_0 = arith.constant 0 : i32
    return %arg0, %c0_i32, %arg1 : i32, i32, i32
  }
  func.func @transform_1(%arg0: i32, %arg1: i32) -> (i32, i32, i32) {
    %c0_i32 = arith.constant 0 : i32
    %c0_i32_0 = arith.constant 0 : i32
    return %arg0, %c0_i32, %arg1 : i32, i32, i32
  }
  func.func @transform_2(%arg0: i32, %arg1: i32) -> (i32, i32, i32) {
    %c0_i32 = arith.constant 0 : i32
    %c0_i32_0 = arith.constant 0 : i32
    return %arg0, %arg1, %c0_i32 : i32, i32, i32
  }
  func.func @transform_3(%arg0: i32, %arg1: i32) -> (i32, i32, i32) {
    %c0_i32 = arith.constant 0 : i32
    %c0_i32_0 = arith.constant 0 : i32
    %c0_i32_1 = arith.constant 0 : i32
    return %arg0, %c0_i32, %c0_i32_0 : i32, i32, i32
  }
  func.func @transform_4(%arg0: i32, %arg1: i32) -> (i32, i32) {
    %c0_i32 = arith.constant 0 : i32
    %c0_i32_0 = arith.constant 0 : i32
    %c0_i32_1 = arith.constant 0 : i32
    return %c0_i32, %c0_i32_0 : i32, i32
  }
  func.func @transform_5(%arg0: i32, %arg1: i32) -> (i32, i32) {
    %c0_i32 = arith.constant 0 : i32
    %c0_i32_0 = arith.constant 0 : i32
    %c0_i32_1 = arith.constant 0 : i32
    return %c0_i32, %c0_i32_0 : i32, i32
  }
  func.func @transform_6(%arg0: i32, %arg1: i32) -> (i32, i32) {
    %c0_i32 = arith.constant 0 : i32
    %c0_i32_0 = arith.constant 0 : i32
    %c0_i32_1 = arith.constant 0 : i32
    return %c0_i32, %c0_i32_0 : i32, i32
  }
  func.func @transform_7(%arg0: i32, %arg1: i32) -> (i32, i32) {
    %c0_i32 = arith.constant 0 : i32
    %c0_i32_0 = arith.constant 0 : i32
    %c0_i32_1 = arith.constant 0 : i32
    return %c0_i32, %c0_i32_0 : i32, i32
  }
  func.func @transform_8(%arg0: i32, %arg1: i32) -> (i32, i32) {
    %c0_i32 = arith.constant 0 : i32
    %c0_i32_0 = arith.constant 0 : i32
    %c0_i32_1 = arith.constant 0 : i32
    return %c0_i32, %c0_i32_0 : i32, i32
  }
  func.func @transform_9(%arg0: i32, %arg1: i32) -> (i32, i32) {
    %c0_i32 = arith.constant 0 : i32
    %c0_i32_0 = arith.constant 0 : i32
    %c0_i32_1 = arith.constant 0 : i32
    return %c0_i32, %c0_i32_0 : i32, i32
  }
  func.func @transform_10(%arg0: i32, %arg1: i32) -> (i32, i32) {
    %c0_i32 = arith.constant 0 : i32
    %c0_i32_0 = arith.constant 0 : i32
    %c0_i32_1 = arith.constant 0 : i32
    return %c0_i32, %c0_i32_0 : i32, i32
  }
  func.func @transform_11(%arg0: i32, %arg1: i32) -> (i32, i32, i32) {
    %c0_i32 = arith.constant 0 : i32
    %c0_i32_0 = arith.constant 0 : i32
    return %arg0, %arg1, %c0_i32 : i32, i32, i32
  }
}

</mosaic_0001>

<bundles_post_ra>
// kernel: tpu_custom_call.1
= control target key start
LH: loop header
LB: loop body
LE: loop exit
PB: predicated region body
PF: predicated region fallthrough
CT: control target
= control target key end

     0   :  { %s5934_s0 = inlined_call_operand.hbm [shape: s32[2,1,1024], index: 0, kind: input, shape index: {}]   ;;  %s5935_s1 = inlined_call_operand.hbm [shape: f32[2,1,1024], index: 1, kind: input, shape index: {}]   ;;  %s5936_s2 = inlined_call_operand.vmem [shape: f32[2,128,8], index: 2, kind: input, shape index: {}]   ;;  %s5937_s3 = inlined_call_operand.vmem [shape: f32[2,16,128], index: 3, kind: input, shape index: {}]   ;;  %s5938_s4 = inlined_call_operand.vmem [shape: s32[128,512], index: 4, kind: input, shape index: {}]   ;;  %s5939_s5 = inlined_call_operand.hbm [shape: s32[16,512], index: 5, kind: input, shape index: {}]   ;;  %s5940_s6 = inlined_call_operand.vmem [shape: f32[64,512], index: 6, kind: input, shape index: {}]   ;;  %s5941_s7 = inlined_call_operand.vmem [shape: f32[512,64], index: 7, kind: input, shape index: {}]   ;;  %s5942_s8 = inlined_call_operand.vmem [shape: f32[8,16], index: 8, kind: input, shape index: {}]   ;;  %s5943_s9 = inlined_call_operand.vmem [shape: f32[8,128], index: 9, kind: input, shape index: {}]   ;;  %s5944_s10 = inlined_call_operand.vmem [shape: f32[1,128], index: 10, kind: input, shape index: {}]   ;;  %s5945_s11 = inlined_call_operand.hbm [shape: f32[2,128,128], index: 11, kind: output, shape index: {}]  }
   0x1   :  { %5971 = sst [smem:[#allocation25_spill]] %s5934_s0 }
   0x2   :  { %5972 = sst [smem:[#allocation26_spill]] %s5939_s5 }
   0x3   :  { %5973 = sst [smem:[#allocation27_spill]] %s5940_s6 }
   0x4   :  { %5974 = sst [smem:[#allocation28_spill]] %s5941_s7 }
   0x5   :  { %5975 = sst [smem:[#allocation29_spill]] %s5942_s8 }
   0x6   :  { %5976 = sst [smem:[#allocation30_spill]] %s5943_s9 }
   0x7   :  { %5977 = sst [smem:[#allocation31_spill]] %s5944_s10 }
   0x8   :  { %5978 = sst [smem:[#allocation32_spill]] %s5945_s11 }
   0x9   :  { %16 = vsyncpa [#allocation3], 0 }
   0xa   :  { %18 = vsyncpa [#allocation3 + $0x1], 0 }
   0xb   :  { %19 = vsyncpa [#allocation6], 0 }
   0xc   :  { %21 = vsyncpa [#allocation6 + $0x1], 0 }
   0xd   :  { %22 = vsyncpa [#allocation4], 0 }
   0xe   :  { %24 = vsyncpa [#allocation4 + $0x1], 0  ;;  %s4112_s17 = smov 0   ;;  %s4114_s18 = smov 0  }
   0xf   :  { %s4116_s19 = smov 0   ;;  %s4118_s20 = smov 0  }
  0x10   :  { %s4120_s21 = smov 0   ;;  %s4122_s22 = smov 0  }
  0x11   :  { %s4124_s23 = smov 0   ;;  %s4126_s24 = smov 0  }
  0x12 LB: > { %5979 = sst [smem:[#allocation13_spill]] %s4011_s17  ;;  %s4153_s25 = sadd.s32 4294967295, %s4039_s24   ;;  %s4039_s24 = sphi %s4126_s24, %s30_s24   ;;  %s4035_s23 = sphi %s4124_s23, %s6060_s23   ;;  %s4031_s22 = sphi %s4122_s22, %s6059_s22   ;;  %s4027_s21 = sphi %s4120_s21, %s6058_s21   ;;  %s4023_s20 = sphi %s4118_s20, %s6057_s20   ;;  %s4019_s19 = sphi %s4116_s19, %s6056_s19   ;;  %s4015_s18 = sphi %s4114_s18, %s6055_s18   ;;  %s4011_s17 = sphi %s4112_s17, %s6054_s17  }
  0x13   : > { %s3185_s26 = sadd.s32 4294967294, %s4039_s24   ;;  %p64_p0 = scmp.ne.s32.totalorder %s4015_s18, %s4011_s17 }
  0x14   : > { %p5949_p1 = scmp.eq.s32.totalorder %s4153_s25, 0  ;;  %p325_p3 = scmp.eq.s32.totalorder %s3185_s26, 3 }
  0x15   : > { %p3186_p5 = scmp.ge.s32.totalorder %s4039_s24, 1  ;;  %p332_p7 = scmp.lt.s32.totalorder %s4039_s24, 5 }
  0x16   : > { %p4162_p4 = por %p5949_p1, %p64_p0  ;;  %p4167_p6 = por %p325_p3, %p64_p0 }
  0x17   : > { %p4172_p8 = pnand %p3186_p5, %p332_p7  ;;  %s4041_s30 = smov [#allocation7]  }
  0x18   : > { %s5980_s27 = scalar_select %p4162_p4, 1, 0 }
  0x19   : > { %s5981_s28 = scalar_select %p4167_p6, 1, 0 }
  0x1a   : > { %s5983_s29 = scalar_select %p4172_p8, 1, 0 }
  0x1b   : > { %5982 = sst [smem:[#allocation14_spill]] %s5981_s28  ;;  %s347_s12 = sshll.u32 %s4041_s30, 4  ;;  %s348_s12 = int_to_ptr.vmem [resolvable:$true] %s347_s12 }
  0x1c   : > { %p3690_p9 = pneg %p4172_p8  ;;  %s5985_s5 = sld [smem:[#allocation26_spill]] }
  0x1e   : > { %p4180_p10 = pnand %p3690_p9, %p5949_p1 }
  0x20   : > { %p3847_p12 = pneg %p4180_p10 }
  0x22   : > { %s3845_s16 = scalar_lea.hbm %s5985_s5, 1024 }
  0x23   : > { %p3846_p11 = scmp.ne.s32.totalorder %s5985_s5, %s3845_s16  ;;  %p3852_p3 = scmp.lt.u32.totalorder %s3845_s16, %s5985_s5 }
  0x25   : > { %p3848_p13 = pnand %p3847_p12, %p3846_p11 }
  0x27   : > { %p3849_p0 = pneg %p3848_p13 }
  0x29   : > { %p3854_p5 = pnand %p3852_p3, %p3849_p0 }
  0x2b   : > { %3857 = shalt.err (!%p3854_p5)
}
  0x2c   : > { %s3858_s11 = scalar_lea.vmem %s348_s12, 1024  ;;  %p3866_p2 = scmp.lt.s32.totalorder %s348_s12, %s348_s12 }
  0x2d   : > { %p3859_p7 = scmp.ne.s32.totalorder %s348_s12, %s3858_s11  ;;  %p3867_p6 = scmp.lt.s32.totalorder %s3858_s11, %s3858_s11 }
  0x2f   : > { %p3861_p9 = pnand %p3859_p7, %p3847_p12  ;;  %p3868_p4 = por %p3867_p6, %p3866_p2 }
  0x31   : > { %p3862_p1 = pneg %p3861_p9 }
  0x33   : > { %p3869_p8 = pnand %p3868_p4, %p3862_p1 }
  0x35   : > { %3872 = shalt.err (!%p3869_p8)
}
  0x36   : > { %s4042_s28 = smov 512   ;;  %s4043_s17 = smov 32  }
  0x37   : > { %3693 = dma.hbm_to_vmem [thread:$0]  (!%p4180_p10), %s5985_s5, 1024, %s348_s12, [#allocation6], %s4042_s28, %s4042_s28, %s4043_s17  }
  0x38   : > { %s39_s11 = sadd.s32 1, %s4031_s22  ;;  %s42_s16 = sadd.s32 1, %s4035_s23 }
  0x39   : > { %p40_p1 = scmp.ge.s32.totalorder %s39_s11, 2  ;;  %s51_s26 = sadd.s32 1, %s4019_s19 }
  0x3a   : > { %p58_p2 = scmp.ne.s32.totalorder %s4019_s19, %s4015_s18  ;;  %p59_p4 = scmp.eq.s32.totalorder %s4039_s24, 0 }
  0x3b   : > { %s6062_s11 = smov (%p40_p1, %s39_s11), 0  ;;  %s6064_s16 = smov (!%p40_p1, %s42_s16), %s4035_s23 }
  0x3c   : > { %5986 = sst [smem:[#allocation15_spill]] %s6062_s11  ;;  %s47_s30 = ssub.s32 %s4031_s22, %s6062_s11 }
  0x3d   : > { %p44_p6 = scmp.ge.s32.totalorder %s6064_s16, 2  ;;  %p5987_p8 = scmp.eq.s32.totalorder %s4153_s25, 3 }
  0x3e   : > { %p4217_p10 = por %p59_p4, %p58_p2  ;;  %p3706_p12 = scmp.lt.s32.totalorder %s4039_s24, 4 }
  0x3f   : > { %p4213_p11 = por %p5987_p8, %p58_p2  ;;  %s6066_s16 = smov (%p44_p6, %s6064_s16), 0 }
  0x40   : > { %5991 = sst [smem:[#allocation17_spill]] %s6066_s16  ;;  %s376_s28 = sand.u32 1, %s4019_s19  }
  0x41   : > { %s5988_s13 = scalar_select %p4213_p11, 1, 0 }
  0x42   : > { %s3190_s17 = sshll.u32 %s4031_s22, 2  ;;  %s46_s14 = ssub.s32 %s4035_s23, %s6066_s16 }
  0x43   : > { %5989 = sst [smem:[#allocation16_spill]] %s5988_s13  ;;  %s48_s15 = sor.u32 %s47_s30, %s46_s14 }
  0x44   : > { %s4228_s5 = sshll.u32 %s376_s28, 2  ;;  %p49_p13 = scmp.eq.s32.totalorder %s48_s15, 0 }
  0x45   : > { %s3191_s11 = sshll.u32 %s4035_s23, 3  ;;  %s380_s13 = scalar_lea.vmem [#allocation2], %s4228_s5 }
  0x46   : > { %s390_s10 = sshll.u32 %s380_s13, 4  ;;  %s386_s8 = sadd.s32 %s3191_s11, %s3190_s17  ;;  %s4235_s10 = int_to_ptr.vmem [resolvable:$true] %s390_s10 }
  0x47   : > { %s4233_s9 = scalar_select %p49_p13, %s4019_s19, %s51_s26  }
  0x48   : > { %s3192_s7 = sshll.u32 %s386_s8, 4  ;;  %p4241_p0 = pnand %p3706_p12, %p4217_p10 }
  0x49   : > { %s5993_s0 = sld [smem:[#allocation25_spill]]  ;;  %s4253_s8 = scalar_lea.hbm %s5935_s1, %s3192_s7 }
  0x4a   : > { %s377_s11 = scalar_lea.sflag [#allocation3], %s376_s28  ;;  %p3875_p5 = pneg %p4241_p0 }
  0x4f   : > { %s4248_s15 = scalar_lea.hbm %s5993_s0, %s3192_s7  ;;  %s3878_s14 = scalar_lea.hbm %s5993_s0, 256 }
  0x50   : > { %s3873_s12 = scalar_lea.hbm %s4248_s15, 64  ;;  %p3879_p1 = scmp.lt.u32.totalorder %s4248_s15, %s5993_s0 }
  0x51   : > { %p3874_p3 = scmp.ne.s32.totalorder %s4248_s15, %s3873_s12  ;;  %p3880_p2 = scmp.lt.u32.totalorder %s3878_s14, %s3873_s12 }
  0x52   : > { %p3882_p6 = scmp.lt.u32.totalorder %s3873_s12, %s4248_s15 }
  0x53   : > { %p3876_p7 = pnand %p3875_p5, %p3874_p3  ;;  %p3881_p4 = por %p3880_p2, %p3879_p1 }
  0x55   : > { %p3877_p9 = pneg %p3876_p7  ;;  %p3883_p8 = por %p3882_p6, %p3881_p4 }
  0x57   : > { %p3884_p10 = pnand %p3883_p8, %p3877_p9 }
  0x59   : > { %3887 = shalt.err (!%p3884_p10)
}
  0x5a   : > { %s3888_s7 = scalar_lea.vmem %s4235_s10, 64  ;;  %s4044_s28 = smov [#allocation2]  }
  0x5b   : > { %p3889_p12 = scmp.ne.s32.totalorder %s4235_s10, %s3888_s7  ;;  %s3893_s17 = sshll.u32 %s4044_s28, 4  ;;  %s3894_s17 = int_to_ptr.vmem [resolvable:$false] %s3893_s17 }
  0x5c   : > { %s3895_s30 = scalar_lea.vmem %s3894_s17, 128  ;;  %p3896_p7 = scmp.lt.s32.totalorder %s4235_s10, %s3894_s17 }
  0x5d   : > { %p3891_p13 = pnand %p3889_p12, %p3875_p5  ;;  %p3897_p1 = scmp.lt.s32.totalorder %s3895_s30, %s3888_s7 }
  0x5f   : > { %p3892_p3 = pneg %p3891_p13  ;;  %p3898_p2 = por %p3897_p1, %p3896_p7 }
  0x61   : > { %p3899_p4 = pnand %p3898_p2, %p3892_p3 }
  0x63   : > { %3902 = shalt.err (!%p3899_p4)
}
  0x64   : > { %3697 = dma.hbm_to_vmem [thread:$0]  (!%p4241_p0), %s4248_s15, 64, %s4235_s10, %s377_s11  }
  0x65   : > { %s397_s12 = sand.u32 1, %s4039_s24   ;;  %s401_s14 = scalar_lea.vmem [#allocation5], %s4228_s5 }
  0x66   : > { %s411_s13 = sshll.u32 %s401_s14, 4  ;;  %s398_s26 = scalar_lea.sflag [#allocation6], %s397_s12  ;;  %s412_s13 = int_to_ptr.vmem [resolvable:$true] %s411_s13 }
  0x67   : > { %s3903_s7 = scalar_lea.hbm %s4253_s8, 64  ;;  %s3908_s30 = scalar_lea.hbm %s5935_s1, 256 }
  0x68   : > { %p3904_p9 = scmp.ne.s32.totalorder %s4253_s8, %s3903_s7  ;;  %p3909_p10 = scmp.lt.u32.totalorder %s4253_s8, %s5935_s1 }
  0x69   : > { %p3910_p12 = scmp.lt.u32.totalorder %s3908_s30, %s3903_s7  ;;  %p3912_p3 = scmp.lt.u32.totalorder %s3903_s7, %s4253_s8 }
  0x6a   : > { %p3906_p6 = pnand %p3904_p9, %p3875_p5 }
  0x6b   : > { %p3911_p13 = por %p3910_p12, %p3909_p10 }
  0x6c   : > { %p3907_p8 = pneg %p3906_p6 }
  0x6d   : > { %p3913_p7 = por %p3912_p3, %p3911_p13 }
  0x6f   : > { %p3914_p1 = pnand %p3913_p7, %p3907_p8 }
  0x71   : > { %3917 = shalt.err (!%p3914_p1)
}
  0x72   : > { %s3918_s5 = scalar_lea.vmem %s412_s13, 64  ;;  %s4045_s10 = smov [#allocation5]  }
  0x73   : > { %p3919_p2 = scmp.ne.s32.totalorder %s412_s13, %s3918_s5  ;;  %s3923_s15 = sshll.u32 %s4045_s10, 4  ;;  %s3924_s15 = int_to_ptr.vmem [resolvable:$false] %s3923_s15 }
  0x74   : > { %s3925_s11 = scalar_lea.vmem %s3924_s15, 128  ;;  %p3926_p6 = scmp.lt.s32.totalorder %s412_s13, %s3924_s15 }
  0x75   : > { %p3921_p4 = pnand %p3919_p2, %p3875_p5  ;;  %p3927_p11 = scmp.lt.s32.totalorder %s3925_s11, %s3918_s5 }
  0x77   : > { %p3922_p9 = pneg %p3921_p4  ;;  %p3928_p10 = por %p3927_p11, %p3926_p6 }
  0x79   : > { %p3929_p12 = pnand %p3928_p10, %p3922_p9 }
  0x7b   : > { %3932 = shalt.err (!%p3929_p12)
}
  0x7c   : > { %3700 = dma.hbm_to_vmem [thread:$0]  (!%p4241_p0), %s4253_s8, 64, %s412_s13, %s398_s26  }
  0x7d   : > { %p5994_p8 = scmp.ne.s32.totalorder %s5983_s29, 0 }
  0x7f   : > { %441 = sbr.rel (%p5994_p8) target bundleno = 1589 (0x635), region = 64 }
  0x86   : > { %s4304_s0 = sand.u32 1, %s4015_s18   ;;  %p5995_p5 = scmp.ne.s32.totalorder %s5980_s27, 0 }
  0x87   : > { %s3198_s16 = sshll.u32 %s4304_s0, 2  ;;  %s444_s12 = scalar_lea.sflag [#allocation3], %s4304_s0 }
  0x88   : > { %s447_s14 = scalar_lea.vmem [#allocation2], %s3198_s16 }
  0x89   : > { %3994 = dma.done.wait (%p5995_p5), %s444_s12, 64  }
  0x8a   : > { %3996 = vsyncadd (%p5995_p5), %s444_s12, 4294967232  ;;  %s452_s6 = sand.u32 1, %s4153_s25   ;;  %s4313_s29 = scalar_lea.vmem [#allocation5], %s3198_s16 }
  0x8b   : > { %s453_s8 = scalar_lea.sflag [#allocation6], %s452_s6 }
  0x8c   : > { %3998 = dma.done.wait (%p5995_p5), %s453_s8, 64  }
  0x8d   : > { %4000 = vsyncadd (%p5995_p5), %s453_s8, 4294967232  ;;  %p5996_p11 = scmp.eq.s32.totalorder %s4153_s25, 0 }
  0x8f   : > { %4002 = dma.done.wait (%p5996_p11), [#allocation6], 1024   ;;  %p5997_p0 = pmov %p5996_p11 }
  0x90   : > { %s4324_s13 = sshll.u32 %s4023_s20, 3  ;;  %p521_p13 = scmp.lt.s32.totalorder %s4027_s21, 1  ;;  %v602_v0 = vlaneseq  ;;  %v5961_v2 = vmov 0.0   ;;  %v536_v7 = vld [vmem:[%s447_s14] sm:$0xf]  ;;  %v539_v8 = vld [vmem:[%s5938_s4 + $0x8] sm:$0xff] }
  0x91   : > { %4004 = vsyncadd (%p5997_p0), [#allocation6], 4294966272  ;;  %p523_p3 = scmp.lt.s32.totalorder %s4324_s13, 15  ;;  %876 = vmatprep.mubr.f32.mxu0 %v5961_v2  ;;  %953 = vmatprep.mubr.f32.mxu1 %v5961_v2  ;;  %v543_v9 = vld [vmem:[%s5938_s4 + $0x28] sm:$0xff]  ;;  %v541_v16 = vld [vmem:[%s5938_s4 + $0x18] sm:$0xff]  ;;  %s5999_s15 = sld [smem:[#allocation27_spill]] }
  0x92   : > { %s4329_s26 = scalar_select %p521_p13, %s4027_s21, 1  ;;  %v603_v1 = vshrl.u32 %v602_v0, 7  ;;  %v545_v17 = vld [vmem:[%s5938_s4 + $0x38] sm:$0xff]  ;;  %v538_v18 = vld [vmem:[%s5938_s4] sm:$0xff]  ;;  %v4047_v20 = vmov 1.0|1.0  }
  0x93   : > { %s524_s25 = scalar_select %p523_p3, %s4324_s13, 15  ;;  %v542_v21 = vld [vmem:[%s5938_s4 + $0x20] sm:$0xff]  ;;  %v540_v22 = vld [vmem:[%s5938_s4 + $0x10] sm:$0xff]  ;;  %v547_v24 = vld [vmem:[%s5938_s4 + $0x48] sm:$0xff] }
  0x94   : > { %s3203_s27 = sshll.u32 %s4329_s26, 4  ;;  %v4335_v3 = vsub.s32 0, %v603_v1  ;;  %v4337_v4 = vsub.s32 1, %v603_v1  ;;  %v4339_v5 = vsub.s32 3, %v603_v1  ;;  %v4343_v6 = vsub.s32 2, %v603_v1  ;;  %v544_v23 = vld [vmem:[%s5938_s4 + $0x30] sm:$0xff] }
  0x95   : > { %s526_s20 = sadd.s32 %s3203_s27, %s524_s25  ;;  %v551_v25 = vld [vmem:[%s5938_s4 + $0x68] sm:$0xff]  ;;  %v549_v26 = vld [vmem:[%s5938_s4 + $0x58] sm:$0xff]  ;;  %v546_v28 = vld [vmem:[%s5938_s4 + $0x40] sm:$0xff]  ;;  %s4639_s8 = scalar_lea.vmem %s5937_s3, %s3203_s27 }
  0x96   : > { %5998 = vst [vmem:[#allocation18_spill] sm:$0xff] %v4343_v6  ;;  %s3204_s7 = sshll.u32 %s526_s20, 3  ;;  %v4358_v11 = vrot.slane %v536_v7, %v4337_v4  ;;  %v4361_v12 = vrot.slane %v536_v7, %v4339_v5  ;;  %v4364_v13 = vrot.slane %v536_v7, %v4335_v3  ;;  %v4367_v14 = vrot.slane %v536_v7, %v4343_v6  ;;  %v553_v27 = vld [vmem:[%s5938_s4 + $0x78] sm:$0xff]  ;;  %v550_v29 = vld [vmem:[%s5938_s4 + $0x60] sm:$0xff]  ;;  %v548_v31 = vld [vmem:[%s5938_s4 + $0x50] sm:$0xff]  ;;  %s6036_s12 = sld [smem:[#allocation28_spill]] }
  0x97   : > { %s4348_s30 = scalar_lea.vmem %s5936_s2, %s3204_s7  ;;  %v552_v32 = vld [vmem:[%s5938_s4 + $0x70] sm:$0xff]  ;;  %v555_v33 = vld [vmem:[%s5938_s4 + $0x88] sm:$0xff]  ;;  %v557_v35 = vld [vmem:[%s5938_s4 + $0x98] sm:$0xff]  ;;  %s6037_s10 = sld [smem:[#allocation29_spill]] }
  0x98   : > { %v966_v10 = vld [vmem:[%s4348_s30] sm:$0xff]  ;;  %v967_v15 = vld [vmem:[%s4348_s30 + $0x8] sm:$0xff]  ;;  %vm619_vm0 = vcmp.eq.s32.totalorder %v539_v8, %v4358_v11  ;;  %vm623_vm1 = vcmp.eq.s32.totalorder %v543_v9, %v4358_v11  ;;  %vm621_vm3 = vcmp.eq.s32.totalorder %v541_v16, %v4361_v12  ;;  %v968_v19 = vld [vmem:[%s4348_s30 + $0x10] sm:$0xff]  ;;  %vm625_vm4 = vcmp.eq.s32.totalorder %v545_v17, %v4361_v12  ;;  %s6044_s20 = sld [smem:[#allocation30_spill]]  ;;  %s3201_s7 = sshll.u32 %s4304_s0, 6 }
  0x99   : > { %974 = vxpose.xlu0.b32.start [1/8] (short) (narrow) %v966_v10, 8  ;;  %vm3492_vm2 = vmpackc.low %vm623_vm1, %vm619_vm0  ;;  %vm618_vm5 = vcmp.eq.s32.totalorder %v538_v18, %v4364_v13  ;;  %vm622_vm7 = vcmp.eq.s32.totalorder %v542_v21, %v4364_v13  ;;  %vm620_vm8 = vcmp.eq.s32.totalorder %v540_v22, %v4367_v14  ;;  %vm624_vm9 = vcmp.eq.s32.totalorder %v544_v23, %v4367_v14  ;;  %v969_v30 = vld [vmem:[%s4348_s30 + $0x18] sm:$0xff]  ;;  %v559_v34 = vld [vmem:[%s5938_s4 + $0xa8] sm:$0xff]  ;;  %s6045_s26 = sld [smem:[#allocation31_spill]]  ;;  %s517_s27 = scalar_lea.vmem [#allocation8], %s3201_s7 }
  0x9a   : > { %3493 = vmatprep.subr.msk.bf16.mxu0 %vm3492_vm2, %v4047_v20  ;;  %vm3524_vm6 = vmpackc.low %vm625_vm4, %vm621_vm3  ;;  %vm627_vm11 = vcmp.eq.s32.totalorder %v547_v24, %v4358_v11  ;;  %vm631_vm12 = vcmp.eq.s32.totalorder %v551_v25, %v4358_v11  ;;  %vm629_vm14 = vcmp.eq.s32.totalorder %v549_v26, %v4361_v12  ;;  %vm633_vm15 = vcmp.eq.s32.totalorder %v553_v27, %v4361_v12  ;;  %v561_v36 = vld [vmem:[%s5938_s4 + $0xb8] sm:$0xff]  ;;  %v554_v37 = vld [vmem:[%s5938_s4 + $0x80] sm:$0xff]  ;;  %s3394_s28 = sshll.u32 %s4027_s21, 4  ;;  %s6046_s5 = sld [smem:[#allocation16_spill]] }
  0x9b   : > { %3525 = vmatprep.subr.msk.bf16.mxu1 %vm3524_vm6, %v4047_v20  ;;  %vm3494_vm10 = vmpackc.low %vm622_vm7, %vm618_vm5  ;;  %vm626_vm1 = vcmp.eq.s32.totalorder %v546_v28, %v4364_v13  ;;  %vm630_vm2 = vcmp.eq.s32.totalorder %v550_v29, %v4364_v13  ;;  %vm628_vm4 = vcmp.eq.s32.totalorder %v548_v31, %v4367_v14  ;;  %vm632_vm5 = vcmp.eq.s32.totalorder %v552_v32, %v4367_v14  ;;  %v558_v38 = vld [vmem:[%s5938_s4 + $0xa0] sm:$0xff]  ;;  %v556_v40 = vld [vmem:[%s5938_s4 + $0x90] sm:$0xff]  ;;  %s3026_s17 = sadd.s32 %s3394_s28, %s4324_s13  ;;  %s3029_s11 = sshll.u32 %s517_s27, 4  ;;  %s5880_s11 = int_to_ptr.vmem [resolvable:$true] %s3029_s11 }
  0x9c   : > { %3495 = vmatpush1.bf16.msk.msra.mxu0 %vm3494_vm10, %v4047_v20  ;;  %vm3526_vm13 = vmpackc.low %vm624_vm9, %vm620_vm8  ;;  %vm635_vm7 = vcmp.eq.s32.totalorder %v555_v33, %v4358_v11  ;;  %vm639_vm8 = vcmp.eq.s32.totalorder %v559_v34, %v4358_v11  ;;  %vm637_vm10 = vcmp.eq.s32.totalorder %v557_v35, %v4361_v12  ;;  %v970_v39 = vld [vmem:[%s4348_s30 + $0x20] sm:$0xff]  ;;  %v560_v41 = vld [vmem:[%s5938_s4 + $0xb0] sm:$0xff]  ;;  %s6047_s14 = sld [smem:[#allocation32_spill]]  ;;  %s3014_s21 = scalar_lea.sflag [#allocation4], %s4304_s0 }
  0x9d   : > { %975 = vxpose.xlu0.b32.cont [2/8] (short) (narrow) %v967_v15, 8  ;;  %3527 = vmatpush1.bf16.msk.msra.mxu1 %vm3526_vm13, %v4047_v20  ;;  %vm3496_vm0 = vmpackc.low %vm631_vm12, %vm627_vm11  ;;  %vm641_vm11 = vcmp.eq.s32.totalorder %v561_v36, %v4361_v12  ;;  %vm634_vm13 = vcmp.eq.s32.totalorder %v554_v37, %v4364_v13  ;;  %v563_v42 = vld [vmem:[%s5938_s4 + $0xc8] sm:$0xff]  ;;  %v565_v44 = vld [vmem:[%s5938_s4 + $0xd8] sm:$0xff]  ;;  %s3933_s13 = scalar_lea.vmem %s5880_s11, 1024  ;;  %s4049_s25 = smov [#allocation8]  }
  0x9e   : > { %3497 = vmatprep.subr.msk.bf16.mxu0 %vm3496_vm0, %v4047_v20  ;;  %vm3528_vm3 = vmpackc.low %vm633_vm15, %vm629_vm14  ;;  %vm638_vm14 = vcmp.eq.s32.totalorder %v558_v38, %v4364_v13  ;;  %vm636_vm0 = vcmp.eq.s32.totalorder %v556_v40, %v4367_v14  ;;  %v567_v43 = vld [vmem:[%s5938_s4 + $0xe8] sm:$0xff]  ;;  %v569_v45 = vld [vmem:[%s5938_s4 + $0xf8] sm:$0xff]  ;;  %p3934_p7 = scmp.ne.s32.totalorder %s5880_s11, %s3933_s13 }
  0x9f   : > { %3529 = vmatprep.subr.msk.bf16.mxu1 %vm3528_vm3, %v4047_v20  ;;  %vm3498_vm6 = vmpackc.low %vm630_vm2, %vm626_vm1  ;;  %vm640_vm1 = vcmp.eq.s32.totalorder %v560_v41, %v4367_v14  ;;  %vm643_vm3 = vcmp.eq.s32.totalorder %v563_v42, %v4358_v11  ;;  %v562_v46 = vld [vmem:[%s5938_s4 + $0xc0] sm:$0xff]  ;;  %v971_v48 = vld [vmem:[%s4348_s30 + $0x28] sm:$0xff] }
  0xa0   : > { %3499 = vmatpush1.bf16.msk.msra.mxu0 %vm3498_vm6, %v4047_v20  ;;  %vm3530_vm9 = vmpackc.low %vm632_vm5, %vm628_vm4  ;;  %vm647_vm4 = vcmp.eq.s32.totalorder %v567_v43, %v4358_v11  ;;  %vm645_vm6 = vcmp.eq.s32.totalorder %v565_v44, %v4361_v12  ;;  %v566_v47 = vld [vmem:[%s5938_s4 + $0xe0] sm:$0xff]  ;;  %v564_v49 = vld [vmem:[%s5938_s4 + $0xd0] sm:$0xff]  ;;  %p6048_p1 = scmp.ne.s32.totalorder %s6046_s5, 0 }
  0xa1   : > { %976 = vxpose.xlu0.b32.cont [3/8] (short) (narrow) %v968_v19, 8  ;;  %3531 = vmatpush1.bf16.msk.msra.mxu1 %vm3530_vm9, %v4047_v20  ;;  %vm3500_vm12 = vmpackc.low %vm639_vm8, %vm635_vm7  ;;  %vm649_vm7 = vcmp.eq.s32.totalorder %v569_v45, %v4361_v12  ;;  %vm642_vm9 = vcmp.eq.s32.totalorder %v562_v46, %v4364_v13  ;;  %v568_v50 = vld [vmem:[%s5938_s4 + $0xf0] sm:$0xff]  ;;  %v571_v51 = vld [vmem:[%s5938_s4 + $0x108] sm:$0xff] }
  0xa2   : > { %3501 = vmatprep.subr.msk.bf16.mxu0 %vm3500_vm12, %v4047_v20  ;;  %vm3532_vm15 = vmpackc.low %vm641_vm11, %vm637_vm10  ;;  %vm646_vm10 = vcmp.eq.s32.totalorder %v566_v47, %v4364_v13  ;;  %vm644_vm12 = vcmp.eq.s32.totalorder %v564_v49, %v4367_v14  ;;  %v575_v52 = vld [vmem:[%s5938_s4 + $0x128] sm:$0xff]  ;;  %v573_v53 = vld [vmem:[%s5938_s4 + $0x118] sm:$0xff]  ;;  %p3935_p2 = pnand %p3934_p7, %p6048_p1 }
  0xa3   : > { %3533 = vmatprep.subr.msk.bf16.mxu1 %vm3532_vm15, %v4047_v20  ;;  %vm3502_vm2 = vmpackc.low %vm638_vm14, %vm634_vm13  ;;  %vm648_vm13 = vcmp.eq.s32.totalorder %v568_v50, %v4367_v14  ;;  %vm651_vm15 = vcmp.eq.s32.totalorder %v571_v51, %v4358_v11  ;;  %v577_v54 = vld [vmem:[%s5938_s4 + $0x138] sm:$0xff]  ;;  %v570_v55 = vld [vmem:[%s5938_s4 + $0x100] sm:$0xff] }
  0xa4   : > { %3503 = vmatpush1.bf16.msk.msra.mxu0 %vm3502_vm2, %v4047_v20  ;;  %vm3534_vm5 = vmpackc.low %vm640_vm1, %vm636_vm0  ;;  %vm655_vm0 = vcmp.eq.s32.totalorder %v575_v52, %v4358_v11  ;;  %vm653_vm2 = vcmp.eq.s32.totalorder %v573_v53, %v4361_v12  ;;  %v574_v56 = vld [vmem:[%s5938_s4 + $0x120] sm:$0xff]  ;;  %v972_v57 = vld [vmem:[%s4348_s30 + $0x30] sm:$0xff]  ;;  %p3936_p4 = pneg %p3935_p2 }
  0xa5   : > { %977 = vxpose.xlu0.b32.cont [4/8] (short) (narrow) %v969_v30, 8  ;;  %3535 = vmatpush1.bf16.msk.msra.mxu1 %vm3534_vm5, %v4047_v20  ;;  %vm3504_vm8 = vmpackc.low %vm647_vm4, %vm643_vm3  ;;  %vm657_vm3 = vcmp.eq.s32.totalorder %v577_v54, %v4361_v12  ;;  %vm650_vm5 = vcmp.eq.s32.totalorder %v570_v55, %v4364_v13  ;;  %v572_v58 = vld [vmem:[%s5938_s4 + $0x110] sm:$0xff]  ;;  %v579_v60 = vld [vmem:[%s5938_s4 + $0x148] sm:$0xff] }
  0xa6   : > { %3505 = vmatprep.subr.msk.bf16.mxu0 %vm3504_vm8, %v4047_v20  ;;  %vm3536_vm11 = vmpackc.low %vm649_vm7, %vm645_vm6  ;;  %vm654_vm6 = vcmp.eq.s32.totalorder %v574_v56, %v4364_v13  ;;  %v576_v59 = vld [vmem:[%s5938_s4 + $0x130] sm:$0xff]  ;;  %vm652_vm8 = vcmp.eq.s32.totalorder %v572_v58, %v4367_v14  ;;  %v583_v61 = vld [vmem:[%s5938_s4 + $0x168] sm:$0xff] }
  0xa7   : > { %3537 = vmatprep.subr.msk.bf16.mxu1 %vm3536_vm11, %v4047_v20  ;;  %vm3506_vm14 = vmpackc.low %vm646_vm10, %vm642_vm9  ;;  %vm656_vm9 = vcmp.eq.s32.totalorder %v576_v59, %v4367_v14  ;;  %vm659_vm11 = vcmp.eq.s32.totalorder %v579_v60, %v4358_v11  ;;  %v581_v62 = vld [vmem:[%s5938_s4 + $0x158] sm:$0xff]  ;;  %v578_v0 = vld [vmem:[%s5938_s4 + $0x140] sm:$0xff] }
  0xa8   : > { %3507 = vmatpush1.bf16.msk.msra.mxu0 %vm3506_vm14, %v4047_v20  ;;  %vm3538_vm1 = vmpackc.low %vm648_vm13, %vm644_vm12  ;;  %vm663_vm12 = vcmp.eq.s32.totalorder %v583_v61, %v4358_v11  ;;  %v585_v63 = vld [vmem:[%s5938_s4 + $0x178] sm:$0xff]  ;;  %vm661_vm14 = vcmp.eq.s32.totalorder %v581_v62, %v4361_v12  ;;  %v582_v1 = vld [vmem:[%s5938_s4 + $0x160] sm:$0xff] }
  0xa9   : > { %978 = vxpose.xlu0.b32.cont [5/8] (short) (narrow) %v970_v39, 8  ;;  %3539 = vmatpush1.bf16.msk.msra.mxu1 %vm3538_vm1, %v4047_v20  ;;  %vm3508_vm4 = vmpackc.low %vm655_vm0, %vm651_vm15  ;;  %vm665_vm15 = vcmp.eq.s32.totalorder %v585_v63, %v4361_v12  ;;  %v973_v7 = vld [vmem:[%s4348_s30 + $0x38] sm:$0xff]  ;;  %vm658_vm1 = vcmp.eq.s32.totalorder %v578_v0, %v4364_v13  ;;  %v580_v8 = vld [vmem:[%s5938_s4 + $0x150] sm:$0xff] }
  0xaa   : > { %3509 = vmatprep.subr.msk.bf16.mxu0 %vm3508_vm4, %v4047_v20  ;;  %vm3540_vm7 = vmpackc.low %vm657_vm3, %vm653_vm2  ;;  %vm662_vm2 = vcmp.eq.s32.totalorder %v582_v1, %v4364_v13  ;;  %v584_v9 = vld [vmem:[%s5938_s4 + $0x170] sm:$0xff]  ;;  %vm660_vm4 = vcmp.eq.s32.totalorder %v580_v8, %v4367_v14  ;;  %v587_v10 = vld [vmem:[%s5938_s4 + $0x188] sm:$0xff] }
  0xab   : > { %3541 = vmatprep.subr.msk.bf16.mxu1 %vm3540_vm7, %v4047_v20  ;;  %vm3510_vm10 = vmpackc.low %vm654_vm6, %vm650_vm5  ;;  %vm664_vm5 = vcmp.eq.s32.totalorder %v584_v9, %v4367_v14  ;;  %v591_v15 = vld [vmem:[%s5938_s4 + $0x1a8] sm:$0xff]  ;;  %vm667_vm7 = vcmp.eq.s32.totalorder %v587_v10, %v4358_v11  ;;  %v589_v16 = vld [vmem:[%s5938_s4 + $0x198] sm:$0xff] }
  0xac   : > { %3511 = vmatpush1.bf16.msk.msra.mxu0 %vm3510_vm10, %v4047_v20  ;;  %vm3542_vm13 = vmpackc.low %vm656_vm9, %vm652_vm8  ;;  %vm671_vm8 = vcmp.eq.s32.totalorder %v591_v15, %v4358_v11  ;;  %v593_v17 = vld [vmem:[%s5938_s4 + $0x1b8] sm:$0xff]  ;;  %vm669_vm10 = vcmp.eq.s32.totalorder %v589_v16, %v4361_v12  ;;  %v586_v18 = vld [vmem:[%s5938_s4 + $0x180] sm:$0xff] }
  0xad   : > { %979 = vxpose.xlu0.b32.cont [6/8] (short) (narrow) %v971_v48, 8  ;;  %3543 = vmatpush1.bf16.msk.msra.mxu1 %vm3542_vm13, %v4047_v20  ;;  %vm3512_vm0 = vmpackc.low %vm663_vm12, %vm659_vm11  ;;  %vm673_vm11 = vcmp.eq.s32.totalorder %v593_v17, %v4361_v12  ;;  %v590_v19 = vld [vmem:[%s5938_s4 + $0x1a0] sm:$0xff]  ;;  %vm666_vm13 = vcmp.eq.s32.totalorder %v586_v18, %v4364_v13  ;;  %v588_v21 = vld [vmem:[%s5938_s4 + $0x190] sm:$0xff] }
  0xae   : > { %3513 = vmatprep.subr.msk.bf16.mxu0 %vm3512_vm0, %v4047_v20  ;;  %vm3544_vm3 = vmpackc.low %vm665_vm15, %vm661_vm14  ;;  %vm670_vm14 = vcmp.eq.s32.totalorder %v590_v19, %v4364_v13  ;;  %v592_v22 = vld [vmem:[%s5938_s4 + $0x1b0] sm:$0xff]  ;;  %vm668_vm0 = vcmp.eq.s32.totalorder %v588_v21, %v4367_v14  ;;  %v595_v23 = vld [vmem:[%s5938_s4 + $0x1c8] sm:$0xff] }
  0xaf   : > { %3545 = vmatprep.subr.msk.bf16.mxu1 %vm3544_vm3, %v4047_v20  ;;  %vm3514_vm6 = vmpackc.low %vm662_vm2, %vm658_vm1  ;;  %vm672_vm1 = vcmp.eq.s32.totalorder %v592_v22, %v4367_v14  ;;  %v599_v24 = vld [vmem:[%s5938_s4 + $0x1e8] sm:$0xff]  ;;  %vm675_vm3 = vcmp.eq.s32.totalorder %v595_v23, %v4358_v11  ;;  %v597_v25 = vld [vmem:[%s5938_s4 + $0x1d8] sm:$0xff] }
  0xb0   : > { %3515 = vmatpush1.bf16.msk.msra.mxu0 %vm3514_vm6, %v4047_v20  ;;  %vm3546_vm9 = vmpackc.low %vm664_vm5, %vm660_vm4  ;;  %vm679_vm4 = vcmp.eq.s32.totalorder %v599_v24, %v4358_v11  ;;  %v601_v26 = vld [vmem:[%s5938_s4 + $0x1f8] sm:$0xff]  ;;  %vm677_vm6 = vcmp.eq.s32.totalorder %v597_v25, %v4361_v12  ;;  %v594_v11 = vld [vmem:[%s5938_s4 + $0x1c0] sm:$0xff] }
  0xb1   : > { %980 = vxpose.xlu0.b32.cont [7/8] (short) (narrow) %v972_v57, 8  ;;  %3547 = vmatpush1.bf16.msk.msra.mxu1 %vm3546_vm9, %v4047_v20  ;;  %vm3516_vm12 = vmpackc.low %vm671_vm8, %vm667_vm7  ;;  %vm681_vm7 = vcmp.eq.s32.totalorder %v601_v26, %v4361_v12  ;;  %v598_v27 = vld [vmem:[%s5938_s4 + $0x1e0] sm:$0xff]  ;;  %vm674_vm9 = vcmp.eq.s32.totalorder %v594_v11, %v4364_v13  ;;  %v596_v28 = vld [vmem:[%s5938_s4 + $0x1d0] sm:$0xff] }
  0xb2   : > { %3517 = vmatprep.subr.msk.bf16.mxu0 %vm3516_vm12, %v4047_v20  ;;  %vm3548_vm15 = vmpackc.low %vm673_vm11, %vm669_vm10  ;;  %vm678_vm10 = vcmp.eq.s32.totalorder %v598_v27, %v4364_v13  ;;  %v600_v12 = vld [vmem:[%s5938_s4 + $0x1f0] sm:$0xff]  ;;  %vm676_vm12 = vcmp.eq.s32.totalorder %v596_v28, %v4367_v14  ;;  %v810_v29 = vld [vmem:[%s4639_s8] sm:$0xff] }
  0xb3   : > { %3549 = vmatprep.subr.msk.bf16.mxu1 %vm3548_vm15, %v4047_v20  ;;  %vm3518_vm2 = vmpackc.low %vm670_vm14, %vm666_vm13  ;;  %vm680_vm13 = vcmp.eq.s32.totalorder %v600_v12, %v4367_v14  ;;  %v1007_v13 = vld [vmem:[%s5999_s15 + $0x8] sm:$0xff]  ;;  %v1009_v31 = vld [vmem:[%s5999_s15 + $0x18] sm:$0xff] }
  0xb4   : > { %3519 = vmatpush1.bf16.msk.msra.mxu0 %vm3518_vm2, %v4047_v20  ;;  %vm3550_vm5 = vmpackc.low %vm672_vm1, %vm668_vm0  ;;  %v1011_v30 = vld [vmem:[%s5999_s15 + $0x28] sm:$0xff]  ;;  %v1013_v32 = vld [vmem:[%s5999_s15 + $0x38] sm:$0xff]  ;;  %vm1038_vm0 = vcmask 523264  }
  0xb5   : > { %981 = vxpose.xlu0.b32.end [8/8] (short) (narrow) %v973_v7, 8  ;;  %3551 = vmatpush1.bf16.msk.msra.mxu1 %vm3550_vm5, %v4047_v20  ;;  %vm3520_vm8 = vmpackc.low %vm679_vm4, %vm675_vm3  ;;  %v3556_v14 = vpack.c.bf16 %v1011_v30, %v1007_v13  ;;  %v1006_v33 = vld [vmem:[%s5999_s15] sm:$0xff]  ;;  %v3572_v34 = vpack.c.bf16 %v1013_v32, %v1009_v31  ;;  %v1008_v36 = vld [vmem:[%s5999_s15 + $0x10] sm:$0xff] }
  0xb6   : > { %3521 = vmatprep.subr.msk.bf16.mxu0 %vm3520_vm8, %v4047_v20  ;;  %vm3552_vm11 = vmpackc.low %vm681_vm7, %vm677_vm6  ;;  %v1010_v35 = vld [vmem:[%s5999_s15 + $0x20] sm:$0xff]  ;;  %v1012_v37 = vld [vmem:[%s5999_s15 + $0x30] sm:$0xff] }
  0xb7   : > { %3553 = vmatprep.subr.msk.bf16.mxu1 %vm3552_vm11, %v4047_v20  ;;  %vm3522_vm14 = vmpackc.low %vm678_vm10, %vm674_vm9  ;;  %v3558_v38 = vpack.c.bf16 %v1010_v35, %v1006_v33  ;;  %v3574_v39 = vpack.c.bf16 %v1012_v37, %v1008_v36  ;;  %v1019_v40 = vld [vmem:[%s5999_s15 + $0x68] sm:$0xff]  ;;  %v1017_v41 = vld [vmem:[%s5999_s15 + $0x58] sm:$0xff] }
  0xb8   : > { %3523 = vmatpush1.bf16.msk.msra.mxu0 %vm3522_vm14, %v4047_v20  ;;  %vm3554_vm15 = vmpackc.low %vm680_vm13, %vm676_vm12  ;;  %v1021_v43 = vld [vmem:[%s5999_s15 + $0x78] sm:$0xff]  ;;  %v1014_v44 = vld [vmem:[%s5999_s15 + $0x40] sm:$0xff] }
  0xb9   : > { %3555 = vmatpush1.bf16.msk.msra.mxu1 %vm3554_vm15, %v4047_v20  ;;  %3557 = vmatprep.subr.bf16.mxu0 %v3556_v14  ;;  %v1015_v20 = vld [vmem:[%s5999_s15 + $0x48] sm:$0xff]  ;;  %v1018_v45 = vld [vmem:[%s5999_s15 + $0x60] sm:$0xff]  ;;  %v3576_v46 = vpack.c.bf16 %v1021_v43, %v1017_v41  ;;  %v1016_v48 = vld [vmem:[%s5999_s15 + $0x50] sm:$0xff] }
  0xba   : > { %3573 = vmatprep.subr.bf16.mxu1 %v3572_v34  ;;  %v3560_v42 = vpack.c.bf16 %v1019_v40, %v1015_v20  ;;  %v3562_v47 = vpack.c.bf16 %v1018_v45, %v1014_v44  ;;  %v1020_v49 = vld [vmem:[%s5999_s15 + $0x70] sm:$0xff]  ;;  %v1023_v50 = vld [vmem:[%s5999_s15 + $0x88] sm:$0xff]  ;;  %v1025_v53 = vld [vmem:[%s5999_s15 + $0x98] sm:$0xff] }
  0xbb   : > { %877 = vmatmul.mubr.f32.vlgmr.msra.gmra.mrb[0].mxu0 %v810_v29  ;;  %v3578_v51 = vpack.c.bf16 %v1020_v49, %v1016_v48  ;;  %v1027_v52 = vld [vmem:[%s5999_s15 + $0xa8] sm:$0xff]  ;;  %v1029_v54 = vld [vmem:[%s5999_s15 + $0xb8] sm:$0xff]  ;;  %v1022_v57 = vld [vmem:[%s5999_s15 + $0x80] sm:$0xff] }
  0xbc   : > { %954 = vmatmul.mubr.f32.vlgmr.msra.gmra.mrb[0].mxu1 %v810_v29  ;;  %3559 = vmatpush1.bf16.msra.mxu0 %v3558_v38  ;;  %v3564_v55 = vpack.c.bf16 %v1027_v52, %v1023_v50  ;;  %v3580_v56 = vpack.c.bf16 %v1029_v54, %v1025_v53  ;;  %v1026_v58 = vld [vmem:[%s5999_s15 + $0xa0] sm:$0xff]  ;;  %v1024_v59 = vld [vmem:[%s5999_s15 + $0x90] sm:$0xff]  ;;  %v811_v61 = vld [vmem:[%s4639_s8 + $0x8] sm:$0xff] }
  0xbd   : > { %3575 = vmatpush1.bf16.msra.mxu1 %v3574_v39  ;;  %3561 = vmatprep.subr.bf16.mxu0 %v3560_v42  ;;  %v1028_v60 = vld [vmem:[%s5999_s15 + $0xb0] sm:$0xff]  ;;  %v1031_v62 = vld [vmem:[%s5999_s15 + $0xc8] sm:$0xff]  ;;  %v3566_v63 = vpack.c.bf16 %v1026_v58, %v1022_v57  ;;  %v1033_v1 = vld [vmem:[%s5999_s15 + $0xd8] sm:$0xff] }
  0xbe   : > { %3577 = vmatprep.subr.bf16.mxu1 %v3576_v46  ;;  %882 = vmatprep.mubr.f32.mxu0 %v5961_v2  ;;  %v1035_v0 = vld [vmem:[%s5999_s15 + $0xe8] sm:$0xff]  ;;  %v1037_v7 = vld [vmem:[%s5999_s15 + $0xf8] sm:$0xff]  ;;  %v3582_v8 = vpack.c.bf16 %v1028_v60, %v1024_v59  ;;  %v1030_v10 = vld [vmem:[%s5999_s15 + $0xc0] sm:$0xff] }
  0xbf   : > { %959 = vmatprep.mubr.f32.mxu1 %v5961_v2  ;;  %v3568_v9 = vpack.c.bf16 %v1035_v0, %v1031_v62  ;;  %v1034_v15 = vld [vmem:[%s5999_s15 + $0xe0] sm:$0xff]  ;;  %883 = vmatmul.mubr.f32.gmra.mrb[2].mxu0 %v811_v61  ;;  %v3584_v16 = vpack.c.bf16 %v1037_v7, %v1033_v1  ;;  %v1032_v17 = vld [vmem:[%s5999_s15 + $0xd0] sm:$0xff]  ;;  %v537_v29 = vld [vmem:[%s4313_s29] sm:$0xf] }
  0xc0   : > { %3563 = vmatpush1.bf16.msra.mxu0 %v3562_v47  ;;  %960 = vmatmul.mubr.f32.gmra.mrb[2].mxu1 %v811_v61  ;;  %v1036_v18 = vld [vmem:[%s5999_s15 + $0xf0] sm:$0xff]  ;;  %v3570_v19 = vpack.c.bf16 %v1034_v15, %v1030_v10  ;;  %v1416_v13 = vadd.f32 1e-08, %v537_v29  ;;  %v1686_v32 = vmul.f32 20.0, %v537_v29 }
  0xc1   : > { %3579 = vmatpush1.bf16.msra.mxu1 %v3578_v51  ;;  %3565 = vmatprep.subr.bf16.mxu0 %v3564_v55  ;;  %v3586_v21 = vpack.c.bf16 %v1036_v18, %v1032_v17 }
  0xc2   : > { %3581 = vmatprep.subr.bf16.mxu1 %v3580_v56  ;;  %1106 = vmatprep.mubr.f32.mxu0 %v5961_v2  ;;  %v1421_v30 = vrot.slane %v1416_v13, %v4335_v3  ;;  %v1429_v31 = vrot.slane %v1416_v13, %v4343_v6  ;;  %v1425_v14 = vrot.slane %v1416_v13, %v4337_v4  ;;  %v1687_v34 = vmax.f32 %v1686_v32, 0.0 }
  0xc3   : > { %1177 = vmatprep.mubr.f32.mxu1 %v5961_v2  ;;  %v1433_v33 = vrot.slane %v1416_v13, %v4339_v5 }
  0xc4   : > { %3567 = vmatpush1.bf16.msra.mxu0 %v3566_v63  ;;  %3781 = vrcp.f32 %v1421_v30  ;;  %v1688_v43 = vmin.f32 %v1687_v34, 1.999999 }
  0xc5   : > { %3583 = vmatpush1.bf16.msra.mxu1 %v3582_v8  ;;  %3569 = vmatprep.subr.bf16.mxu0 %v3568_v9  ;;  %3783 = vrcp.f32 %v1429_v31 }
  0xc6   : > { %3585 = vmatprep.subr.bf16.mxu1 %v3584_v16  ;;  %3785 = vrcp.f32 %v1425_v14  ;;  %v1697_v50 = vfloor.f32 %v1688_v43 }
  0xc7   : > { %3787 = vrcp.f32 %v1433_v33 }
  0xc8   : > { %3571 = vmatpush1.bf16.msra.mxu0 %v3570_v19  ;;  %v3678_v52 = vtrunc.f32 %v1697_v50  ;;  %v4840_v14 = vsub.f32 %v1688_v43, %v1697_v50 }
  0xc9   : > { %3587 = vmatpush1.bf16.msra.mxu1 %v3586_v21 }
  0xca   : > { %v3679_v58 = vcvt.f32.s32 %v3678_v52 }
  0xcc   : > { %v1898_v7 = vadd.s32 1, %v3679_v58  ;;  %vm1777_vm6 = vcmp.gt.s32.totalorder %v3679_v58, 0 }
  0xce   : > { %v3782_v37 = vpop.eup %3781  ;;  %vm1899_vm7 = vcmp.gt.s32.totalorder %v1898_v7, 0 }
  0xcf   : > { %v3784_v44 = vpop.eup %3783  ;;  %v1900_v13 = vsel %vm1899_vm7, %v1898_v7, 0  ;;  %v4898_v7 = vrot.slane %v4840_v14, %v4337_v4 }
  0xd0   : > { %v3786_v48 = vpop.eup %3785  ;;  %vm1901_vm10 = vcmp.lt.s32.totalorder %v1900_v13, 1 }
  0xd1   : > { %v3788_v53 = vpop.eup %3787 }
 0x119   : > { %v990_v22 = vpop.trf.xlu0 }
 0x11a   : > { %3335 = vmatmul.mubr.msk.f32.vlgmr.msra.gmra.mrb[4].mxu0 %vm1038_vm0, %v990_v22  ;;  %3336 = vmatmul.mubr.msk.f32.vlgmr.msra.gmra.mrb[4].mxu1 %vm1038_vm0, %v990_v22  ;;  %vm5963_vm0 = vmmov 1  }
 0x11b   : > { %2549 = vmatprep.mubr.f32.mxu0 %v5961_v2  ;;  %2620 = vmatprep.mubr.f32.mxu1 %v5961_v2 }
 0x18e   : > { %v878_v23 = vpop.f32.mrb[0].mxu0 }
 0x18f   : > { %v955_v24 = vpop.f32.mrb[0].mxu1  ;;  %v880_v25 = vpop.f32.mrb[1].mxu0 }
 0x190   : > { %v957_v26 = vpop.f32.mrb[1].mxu1 }
 0x192   : > { %v4773_v28 = vpop.f32.mrb[2].mxu0 }
 0x193   : > { %v4769_v11 = vpop.f32.mrb[2].mxu1  ;;  %6002 = vst [vmem:[#allocation21_spill] sm:$0xff] %v4773_v28  ;;  %v4775_v12 = vpop.f32.mrb[3].mxu0 }
 0x194   : > { %6000 = vst [vmem:[#allocation19_spill] sm:$0xff] %v4769_v11  ;;  %v4771_v27 = vpop.f32.mrb[3].mxu1  ;;  %6003 = vst [vmem:[#allocation22_spill] sm:$0xff] %v4775_v12 }
 0x195   : > { %6001 = vst [vmem:[#allocation20_spill] sm:$0xff] %v4771_v27 }
 0x1ed   : > { %v1108_v35 = vpop.f32.mrb[4].mxu0  ;;  %v1179_v36 = vpop.f32.mrb[4].mxu1 }
 0x1ee   : > { %v4782_v38 = vsub.f32 %v878_v23, %v1108_v35  ;;  %v4784_v39 = vsub.f32 %v955_v24, %v1179_v36  ;;  %v1110_v20 = vpop.f32.mrb[5].mxu0  ;;  %v1181_v40 = vpop.f32.mrb[5].mxu1 }
 0x1ef   : > { %v4786_v41 = vsub.f32 %v880_v25, %v1110_v20  ;;  %v4788_v42 = vsub.f32 %v957_v26, %v1181_v40  ;;  %v1778_v25 = vsel %vm1777_vm6, %v3679_v58, 0  ;;  %v4852_v20 = vsub.f32 1.0, %v4840_v14 }
 0x1f0   : > { %vm1188_vm1 = vcmp.eq.f32.partialorder %v4782_v38, 0.0  ;;  %v4793_v46 = vmul.f32 %v3782_v37, %v4782_v38  ;;  %vm1190_vm2 = vcmp.eq.f32.partialorder %v4784_v39, 0.0  ;;  %v4798_v49 = vmul.f32 %v3784_v44, %v4784_v39 }
 0x1f1   : > { %v1192_v45 = vsel %vm1188_vm1, 1.0, %v4782_v38  ;;  %v1194_v47 = vsel %vm1190_vm2, 1.0, %v4784_v39  ;;  %vm1189_vm3 = vcmp.eq.f32.partialorder %v4786_v41, 0.0  ;;  %v1441_v54 = vmul.f32 %v3786_v48, %v4786_v41 }
 0x1f2   : > { %3789 = vrcp.f32 %v1192_v45  ;;  %v1193_v51 = vsel %vm1189_vm3, 1.0, %v4786_v41  ;;  %vm1191_vm4 = vcmp.eq.f32.partialorder %v4788_v42, 0.0  ;;  %v1445_v57 = vmul.f32 %v3788_v53, %v4788_v42 }
 0x1f3   : > { %3791 = vrcp.f32 %v1194_v47  ;;  %v4804_v55 = vclamps-f32 %v1441_v54, 1.0  ;;  %v1195_v56 = vsel %vm1191_vm4, 1.0, %v4788_v42  ;;  %vm1779_vm8 = vcmp.lt.s32.totalorder %v1778_v25, 1 }
 0x1f4   : > { %3793 = vrcp.f32 %v1193_v51  ;;  %v4810_v1 = vclamps-f32 %v1445_v57, 1.0  ;;  %vm5960_vm9 = vcmp.lt.f32.partialorder %v4782_v38, 0.0  ;;  %v4854_v40 = vsel %vm1779_vm8, %v1778_v25, 1 }
 0x1f5   : > { %v1455_v59 = vmul.f32 %v4804_v55, %v4804_v55  ;;  %3795 = vrcp.f32 %v1195_v56  ;;  %vm1495_vm5 = vcmp.eq.f32.partialorder %v4804_v55, 0.0  ;;  %vm5959_vm11 = vcmp.gt.f32.partialorder %v4782_v38, 0.0 }
 0x1f6   : > { %v1499_v18 = vsel %vm1495_vm5, 1.0, %v4804_v55  ;;  %v1457_v21 = vmul.f32 %v4810_v1, %v4810_v1  ;;  %v4860_v45 = vsel %vm1901_vm10, %v1900_v13, 1  ;;  %v1360_v47 = vsel %vm5960_vm9, -1.5707964, %v5961_v2 }
 0x1f7   : > { %v1459_v63 = vsub.f32 1.0, %v1455_v59  ;;  %v4867_v48 = vclamps-f32 %v4793_v46, 1.0  ;;  %vm1497_vm10 = vcmp.eq.f32.partialorder %v4810_v1, 0.0 }
 0x1f8   : > { %v1461_v31 = vsub.f32 1.0, %v1457_v21  ;;  %v4919_v21 = vrot.slane %v4860_v45, %v4337_v4 }
 0x1f9   : > { %v4816_v9 = vmax.f32 %v1459_v63, 0.0  ;;  %6004 = vst [vmem:[#allocation23_spill] sm:$0xff] %v4867_v48  ;;  %vm1494_vm4 = vcmp.eq.f32.partialorder %v4867_v48, 0.0 }
 0x1fa   : > { %v4849_v37 = vmax.f32 %v1461_v31, 0.0 }
 0x1fb   : > { %3797 = vrsqrt.f32 %v4816_v9  ;;  %vm1475_vm13 = vcmp.eq.f32.partialorder %v4816_v9, inf  ;;  %v1478_v52 = vand.u32 2147483648, %v4816_v9  ;;  %vm1477_vm14 = vcmp.eq.f32.partialorder %v4816_v9, 0.0 }
 0x1fc   : > { %v3790_v60 = vpop.eup %3789  ;;  %3799 = vrcp.f32 %v1499_v18 }
 0x1fd   : > { %v3792_v61 = vpop.eup %3791  ;;  %v1204_v62 = vrot.slane %v3790_v60, 7 }
 0x1fe   : > { %v1206_v0 = vrot.slane %v3792_v61, 7  ;;  %v3794_v10 = vpop.eup %3793 }
 0x1ff   : > { %v4814_v8 = vmul.f32 %v1204_v62, %v4782_v38  ;;  %v1205_v17 = vrot.slane %v3794_v10, 7  ;;  %v3796_v26 = vpop.eup %3795  ;;  %v4890_v62 = vrot.slane %v4852_v20, %v4337_v4  ;;  %v4908_v10 = vsel %vm5959_vm11, 1.5707964, %v1360_v47 }
 0x200   : > { %v4819_v15 = vmul.f32 %v1206_v0, %v4784_v39  ;;  %v1207_v32 = vrot.slane %v3796_v26, 7  ;;  %v4894_v0 = vrot.slane %v4854_v40, %v4337_v4 }
 0x201   : > { %v4822_v16 = vand.u32 2147483647, %v4814_v8  ;;  %v4833_v23 = vmul.f32 %v1205_v17, %v4786_v41  ;;  %v4912_v17 = vmul.f32 %v4867_v48, %v4867_v48 }
 0x202   : > { %v4827_v19 = vand.u32 2147483647, %v4819_v15  ;;  %v4846_v35 = vmul.f32 %v1207_v32, %v4788_v42 }
 0x203   : > { %v1236_v22 = vmax.f32 %v4822_v16, 1e-30  ;;  %v1252_v24 = vadd.f32 1.0, %v4822_v16  ;;  %v4838_v30 = vand.u32 2147483647, %v4833_v23  ;;  %v3337_v57 = vadd.f32 -1.0, %v4822_v16 }
 0x204   : > { %v1254_v29 = vadd.f32 1.0, %v4827_v19  ;;  %v1238_v34 = vmax.f32 %v4827_v19, 1e-30  ;;  %v4858_v44 = vand.u32 2147483647, %v4846_v35 }
 0x205   : > { %3801 = vrcp.f32 %v1236_v22  ;;  %v1253_v33 = vadd.f32 1.0, %v4838_v30  ;;  %v1237_v36 = vmax.f32 %v4838_v30, 1e-30  ;;  %v3798_v43 = vpop.eup %3797  ;;  %vm1220_vm12 = vcmp.gt.f32.partialorder %v4822_v16, 2.4142137 }
 0x206   : > { %3803 = vrcp.f32 %v1252_v24  ;;  %v1474_v50 = vmul.f32 %v3798_v43, %v4816_v9  ;;  %v1255_v51 = vadd.f32 1.0, %v4858_v44  ;;  %v3800_v53 = vpop.eup %3799  ;;  %v1239_v56 = vmax.f32 %v4858_v44, 1e-30  ;;  %vm1228_vm1 = vmxor %vm1220_vm12, %vm5963_vm0 }
 0x207   : > { %3805 = vrcp.f32 %v1254_v29  ;;  %vm1224_vm15 = vcmp.gt.f32.partialorder %v4822_v16, 0.41421357  ;;  %vm1221_vm2 = vcmp.gt.f32.partialorder %v4838_v30, 2.4142137  ;;  %vm1225_vm5 = vcmp.gt.f32.partialorder %v4838_v30, 0.41421357 }
 0x208   : > { %3807 = vrcp.f32 %v1253_v33  ;;  %v1476_v54 = vsel %vm1475_vm13, %v4816_v9, %v1474_v50  ;;  %vm4902_vm3 = vmand %vm1224_vm15, %vm1228_vm1  ;;  %v3338_v25 = vadd.f32 -1.0, %v4838_v30  ;;  %vm1222_vm7 = vcmp.gt.f32.partialorder %v4827_v19, 2.4142137 }
 0x209   : > { %3809 = vrcp.f32 %v1237_v36  ;;  %v4882_v58 = vsel %vm1477_vm14, %v1478_v52, %v1476_v54  ;;  %vm1229_vm6 = vmxor %vm1221_vm2, %vm5963_vm0  ;;  %v4936_v29 = vclamps-f32 %v4798_v49, 1.0  ;;  %vm1223_vm8 = vcmp.gt.f32.partialorder %v4858_v44, 2.4142137 }
 0x20a   : > { %3811 = vrcp.f32 %v1238_v34  ;;  %v4886_v61 = vmul.f32 %v3800_v53, %v4882_v58  ;;  %v3339_v34 = vadd.f32 -1.0, %v4827_v19  ;;  %vm4946_vm13 = vmand %vm1225_vm5, %vm1229_vm6  ;;  %vm1226_vm14 = vcmp.gt.f32.partialorder %v4827_v19, 0.41421357 }
 0x20b   : > { %3813 = vrsqrt.f32 %v4849_v37  ;;  %6007 = vst [vmem:[#allocation24_spill] sm:$0xff] %v4936_v29  ;;  %vm4956_vm15 = vmxor %vm1222_vm7, %vm5963_vm0  ;;  %vm1227_vm1 = vcmp.gt.f32.partialorder %v4858_v44, 0.41421357 }
 0x20c   : > { %3815 = vrcp.f32 %v1255_v51  ;;  %v4915_v18 = vand.u32 2147483647, %v4886_v61  ;;  %vm4971_vm5 = vmxor %vm1223_vm8, %vm5963_vm0 }
 0x20d   : > { %3817 = vrcp.f32 %v1239_v56  ;;  %vm4990_vm6 = vmand %vm1226_vm14, %vm4956_vm15  ;;  %vm1357_vm14 = vcmp.lt.f32.partialorder %v4786_v41, 0.0 }
 0x20e   : > { %v1531_v13 = vmax.f32 %v4915_v18, 1e-30  ;;  %v1547_v43 = vadd.f32 1.0, %v4915_v18  ;;  %vm1515_vm15 = vcmp.gt.f32.partialorder %v4915_v18, 2.4142137 }
 0x20f   : > { %v3802_v46 = vpop.eup %3801  ;;  %vm1519_vm11 = vcmp.gt.f32.partialorder %v4915_v18, 0.41421357  ;;  %vm5038_vm9 = vmxor %vm1515_vm15, %vm5963_vm0 }
 0x210   : > { %v3804_v59 = vpop.eup %3803  ;;  %v1244_v60 = vsub.f32 0.0, %v3802_v46  ;;  %3819 = vrcp.f32 %v1531_v13  ;;  %vm5062_vm0 = vmand %vm1519_vm11, %vm5038_vm9  ;;  %vm1359_vm9 = vcmp.lt.f32.partialorder %v4788_v42, 0.0  ;;  %vm1355_vm11 = vcmp.gt.f32.partialorder %v4788_v42, 0.0 }
 0x211   : > { %v1260_v63 = vmul.f32 %v3804_v59, %v3337_v57  ;;  %v3806_v22 = vpop.eup %3805  ;;  %3821 = vrcp.f32 %v1547_v43  ;;  %v3340_v57 = vadd.f32 -1.0, %v4858_v44 }
 0x212   : > { %v3808_v26 = vpop.eup %3807  ;;  %v1262_v54 = vmul.f32 %v3806_v22, %v3339_v34 }
 0x213   : > { %v1264_v24 = vsel %vm4902_vm3, %v1260_v63, %v4822_v16  ;;  %v3810_v31 = vpop.eup %3809  ;;  %v1261_v33 = vmul.f32 %v3808_v26, %v3338_v25  ;;  %v1458_v25 = vsub.f32 1.0, %v4912_v17  ;;  %v1498_v26 = vsel %vm1494_vm4, 1.0, %v4867_v48  ;;  %vm5001_vm4 = vmand %vm1227_vm1, %vm4971_vm5 }
 0x214   : > { %v4932_v4 = vsel %vm1220_vm12, %v1244_v60, %v1264_v24  ;;  %v1245_v49 = vsub.f32 0.0, %v3810_v31  ;;  %v3812_v47 = vpop.eup %3811  ;;  %v1501_v24 = vsel %vm1497_vm10, 1.0, %v4810_v1  ;;  %v1456_v31 = vmul.f32 %v4936_v29, %v4936_v29 }
 0x215   : > { %v4941_v32 = vmul.f32 %v4932_v4, %v4932_v4  ;;  %v1265_v52 = vsel %vm4946_vm13, %v1261_v33, %v4838_v30  ;;  %v3814_v53 = vpop.eup %3813  ;;  %v1246_v17 = vsub.f32 0.0, %v3812_v47  ;;  %3823 = vrcp.f32 %v1501_v24 }
 0x216   : > { %v4966_v56 = vsel %vm1221_vm2, %v1245_v49, %v1265_v52  ;;  %v3816_v59 = vpop.eup %3815  ;;  %v1266_v51 = vsel %vm4990_vm6, %v1262_v54, %v4827_v19  ;;  %v1488_v47 = vmul.f32 %v3814_v53, %v4849_v37  ;;  %vm1496_vm10 = vcmp.eq.f32.partialorder %v4936_v29, 0.0 }
 0x217   : > { %v1284_v50 = vmul.f32 0.080537446, %v4941_v32  ;;  %v1281_v22 = vmul.f32 %v4966_v56, %v4966_v56  ;;  %v1263_v33 = vmul.f32 %v3816_v59, %v3340_v57  ;;  %v3818_v34 = vpop.eup %3817  ;;  %vm1489_vm1 = vcmp.eq.f32.partialorder %v4849_v37, inf }
 0x218   : > { %v1247_v52 = vsub.f32 0.0, %v3818_v34  ;;  %v5023_v53 = vsel %vm1222_vm7, %v1246_v17, %v1266_v51  ;;  %vm1353_vm5 = vcmp.gt.f32.partialorder %v4786_v41, 0.0  ;;  %v3358_v51 = vadd.f32 -1.0, %v4915_v18 }
 0x219   : > { %v3341_v60 = vadd.f32 -0.13877685, %v1284_v50  ;;  %v1285_v43 = vmul.f32 0.080537446, %v1281_v22  ;;  %v1267_v57 = vsel %vm5001_vm4, %v1263_v33, %v4858_v44  ;;  %v5046_v63 = vmul.f32 %v5023_v53, %v5023_v53 }
 0x21a   : > { %v5017_v24 = vsel %vm1223_vm8, %v1247_v52, %v1267_v57  ;;  %3825 = vrcp.f32 %v1498_v26  ;;  %v1500_v28 = vsel %vm1496_vm10, 1.0, %v4936_v29 }
 0x21b   : > { %v1292_v49 = vmul.f32 %v3341_v60, %v4941_v32  ;;  %v3342_v46 = vadd.f32 -0.13877685, %v1285_v43  ;;  %v1460_v60 = vsub.f32 1.0, %v1456_v31  ;;  %v5027_v34 = vmul.f32 %v5017_v24, %v5017_v24  ;;  %v3820_v31 = vpop.eup %3819 }
 0x21c   : > { %v1490_v43 = vsel %vm1489_vm1, %v4849_v37, %v1488_v47  ;;  %vm1491_vm1 = vcmp.eq.f32.partialorder %v4849_v37, 0.0 }
 0x21d   : > { %v1296_v59 = vadd.f32 0.19977711, %v1292_v49  ;;  %v1293_v33 = vmul.f32 %v3342_v46, %v1281_v22  ;;  %v1361_v49 = vsel %vm1357_vm14, -1.5707964, %v5961_v2  ;;  %v3822_v46 = vpop.eup %3821  ;;  %v1539_v2 = vsub.f32 0.0, %v3820_v31 }
 0x21e   : > { %v1287_v47 = vmul.f32 0.080537446, %v5027_v34  ;;  %v1555_v27 = vmul.f32 %v3822_v46, %v3358_v51  ;;  %v6022_v46 = vmov 0.0  }
 0x21f   : > { %v1300_v54 = vmul.f32 %v1296_v59, %v4941_v32  ;;  %v1297_v57 = vadd.f32 0.19977711, %v1293_v33  ;;  %v1492_v59 = vand.u32 2147483648, %v4849_v37  ;;  %v1363_v6 = vsel %vm1359_vm9, -1.5707964, %v6022_v46 }
 0x220   : > { %v3344_v37 = vadd.f32 -0.13877685, %v1287_v47  ;;  %v1559_v26 = vsel %vm5062_vm0, %v1555_v27, %v4915_v18  ;;  %v1567_v19 = vsel %vm5062_vm0, 0.7853982, %v6022_v46 }
 0x221   : > { %v3345_v52 = vadd.f32 -0.3333295, %v1300_v54  ;;  %v5050_v54 = vmax.f32 %v1458_v25, 0.0  ;;  %v1301_v33 = vmul.f32 %v1297_v57, %v1281_v22  ;;  %v5052_v11 = vsel %vm1491_vm1, %v1492_v59, %v1490_v43  ;;  %v3824_v25 = vpop.eup %3823 }
 0x222   : > { %v5066_v57 = vmax.f32 %v1460_v60, 0.0  ;;  %v5078_v17 = vsel %vm1515_vm15, %v1539_v2, %v1559_v26  ;;  %v1295_v51 = vmul.f32 %v3344_v37, %v5027_v34  ;;  %v5082_v60 = vmul.f32 %v3824_v25, %v5052_v11 }
 0x223   : > { %v1308_v12 = vmul.f32 %v3345_v52, %v4941_v32  ;;  %v3346_v43 = vadd.f32 -0.3333295, %v1301_v33  ;;  %v5070_v32 = vsel %vm1353_vm5, 1.5707964, %v1361_v49  ;;  %v1286_v52 = vmul.f32 0.080537446, %v5046_v63 }
 0x224   : > { %v5086_v49 = vmul.f32 %v5078_v17, %v5078_v17  ;;  %3827 = vrsqrt.f32 %v5050_v54  ;;  %v1273_v2 = vsel %vm4946_vm13, 0.7853982, %v6022_v46  ;;  %v1299_v47 = vadd.f32 0.19977711, %v1295_v51 }
 0x225   : > { %v1309_v59 = vmul.f32 %v3346_v43, %v1281_v22  ;;  %v1312_v27 = vmul.f32 %v1308_v12, %v4932_v4  ;;  %v5095_v33 = vand.u32 2147483647, %v5082_v60  ;;  %v1272_v22 = vsel %vm4902_vm3, 0.7853982, %v6022_v46 }
 0x226   : > { %v1579_v25 = vmul.f32 0.080537446, %v5086_v49  ;;  %v1274_v12 = vsel %vm4990_vm6, 0.7853982, %v6022_v46  ;;  %v3343_v36 = vadd.f32 -0.13877685, %v1286_v52  ;;  %v1303_v43 = vmul.f32 %v1299_v47, %v5027_v34 }
 0x227   : > { %v1313_v37 = vmul.f32 %v1309_v59, %v4966_v56  ;;  %v1533_v26 = vmax.f32 %v5095_v33, 1e-30  ;;  %vm1337_vm13 = vcmp.ge.f32.partialorder %v4786_v41, 0.0  ;;  %v1277_v9 = vsel %vm1221_vm2, 1.5707964, %v1273_v2 }
 0x228   : > { %v3362_v59 = vadd.f32 -0.13877685, %v1579_v25  ;;  %v1316_v13 = vadd.f32 %v1312_v27, %v4932_v4  ;;  %v3348_v29 = vadd.f32 -0.3333295, %v1303_v43  ;;  %v1549_v52 = vadd.f32 1.0, %v5095_v33 }
 0x229   : > { %v1317_v51 = vadd.f32 %v1313_v37, %v4966_v56  ;;  %3829 = vrcp.f32 %v1533_v26  ;;  %v1276_v47 = vsel %vm1220_vm12, 1.5707964, %v1272_v22  ;;  %v1385_v30 = vrot.slane %v5070_v32, 1  ;;  %v5121_v56 = vpop.eup %3825 }
 0x22a   : > { %v1587_v2 = vmul.f32 %v3362_v59, %v5086_v49  ;;  %v1294_v37 = vmul.f32 %v3343_v36, %v5046_v63  ;;  %v1311_v25 = vmul.f32 %v3348_v29, %v5027_v34  ;;  %v5127_v4 = vsel %vm1355_vm11, 1.5707964, %v1363_v6 }
 0x22b   : > { %v1321_v48 = vadd.f32 %v1317_v51, %v1277_v9  ;;  %3831 = vrcp.f32 %v1549_v52  ;;  %vm1324_vm2 = vcmp.lt.f32.partialorder %v4814_v8, 0.0  ;;  %v5132_v16 = vsel %vm1222_vm7, 1.5707964, %v1274_v12 }
 0x22c   : > { %vm1325_vm12 = vcmp.lt.f32.partialorder %v4833_v23, 0.0  ;;  %v1591_v27 = vadd.f32 0.19977711, %v1587_v2  ;;  %v1320_v22 = vadd.f32 %v1316_v13, %v1276_v47  ;;  %vm1327_vm3 = vcmp.lt.f32.partialorder %v4846_v35, 0.0 }
 0x22d   : > { %v1329_v32 = vsub.f32 0.0, %v1321_v48  ;;  %vm1651_vm6 = vcmp.lt.f32.partialorder %v4882_v58, 0.0  ;;  %v1275_v6 = vsel %vm5001_vm4, 0.7853982, %v6022_v46  ;;  %v1315_v29 = vmul.f32 %v1311_v25, %v5017_v24 }
 0x22e   : > { %v3828_v34 = vpop.eup %3827  ;;  %v1595_v23 = vmul.f32 %v1591_v27, %v5086_v49  ;;  %v1387_v12 = vrot.slane %v5127_v4, 1  ;;  %v1298_v43 = vadd.f32 0.19977711, %v1294_v37  ;;  %3833 = vrcp.f32 %v1500_v28 }
 0x22f   : > { %v1333_v36 = vsel %vm1325_vm12, %v1329_v32, %v1321_v48  ;;  %vm1339_vm7 = vcmp.ge.f32.partialorder %v4788_v42, 0.0  ;;  %vm1647_vm4 = vcmp.gt.f32.partialorder %v4882_v58, 0.0  ;;  %v1655_v51 = vsel %vm1651_vm6, -1.5707964, %v6022_v46 }
 0x230   : > { %v1341_v26 = vadd.f32 3.1415927, %v1333_v36  ;;  %v3350_v9 = vadd.f32 -3.1415927, %v1333_v36  ;;  %v3366_v50 = vadd.f32 -0.3333295, %v1595_v23  ;;  %v1319_v31 = vadd.f32 %v1315_v29, %v5017_v24 }
 0x231   : > { %v1279_v48 = vsel %vm1223_vm8, 1.5707964, %v1275_v6  ;;  %v1328_v59 = vsub.f32 0.0, %v1320_v22  ;;  %vm1517_vm0 = vcmp.gt.f32.partialorder %v5095_v33, 2.4142137  ;;  %v1467_v28 = vmul.f32 %v3828_v34, %v5050_v54 }
 0x232   : > { %v1349_v13 = vsel %vm1337_vm13, %v1341_v26, %v3350_v9  ;;  %v1571_v47 = vsel %vm1515_vm15, 1.5707964, %v1567_v19  ;;  %v1603_v2 = vmul.f32 %v3366_v50, %v5086_v49  ;;  %v1323_v37 = vadd.f32 %v1319_v31, %v1279_v48 }
 0x233   : > { %v1373_v52 = vrot.slane %v1349_v13, 1  ;;  %v3830_v25 = vpop.eup %3829  ;;  %v1302_v44 = vmul.f32 %v1298_v43, %v5046_v63  ;;  %v1401_v32 = vrot.slane %v1333_v36, 1  ;;  %vm1619_vm8 = vcmp.lt.f32.partialorder %v4886_v61, 0.0 }
 0x234   : > { %vm1521_vm10 = vcmp.gt.f32.partialorder %v5095_v33, 0.41421357  ;;  %vm1468_vm1 = vcmp.eq.f32.partialorder %v5050_v54, inf  ;;  %v1607_v27 = vmul.f32 %v1603_v2, %v5078_v17  ;;  %v1331_v18 = vsub.f32 0.0, %v1323_v37 }
 0x235   : > { %v1393_v24 = vsel %vm1357_vm14, %v1373_v52, %v1385_v30  ;;  %vm6023_vm15 = vmmov 1   ;;  %v3360_v6 = vadd.f32 -1.0, %v5095_v33  ;;  %v3832_v29 = vpop.eup %3831  ;;  %v5176_v34 = vsel %vm1324_vm2, %v1328_v59, %v1320_v22 }
 0x236   : > { %vm5169_vm13 = vmxor %vm1517_vm0, %vm6023_vm15  ;;  %vm1336_vm12 = vcmp.ge.f32.partialorder %v4782_v38, 0.0  ;;  %v1409_v30 = vsel %vm1353_vm5, %v1401_v32, %v1393_v24  ;;  %v1541_v36 = vsub.f32 0.0, %v3830_v25  ;;  %v1469_v19 = vsel %vm1468_vm1, %v5050_v54, %v1467_v28 }
 0x237   : > { %v1413_v23 = vadd.f32 3.1415927, %v1409_v30  ;;  %v1611_v43 = vadd.f32 %v1607_v27, %v5078_v17  ;;  %vm1631_vm14 = vcmp.ge.f32.partialorder %v4882_v58, 0.0  ;;  %v1335_v26 = vsel %vm1327_vm3, %v1331_v18, %v1323_v37  ;;  %vm5191_vm5 = vmand %vm1521_vm10, %vm5169_vm13 }
 0x238   : > { %v1557_v9 = vmul.f32 %v3832_v29, %v3360_v6  ;;  %vm1667_vm2 = vcmp.lt.f32.partialorder %v4804_v55, 0.0  ;;  %v1343_v8 = vadd.f32 3.1415927, %v1335_v26  ;;  %v3352_v22 = vadd.f32 -3.1415927, %v1335_v26  ;;  %v5202_v59 = vpop.eup %3833 }
 0x239   : > { %vm1470_vm6 = vcmp.eq.f32.partialorder %v5050_v54, 0.0  ;;  %v1471_v17 = vand.u32 2147483648, %v5050_v54  ;;  %v1340_v35 = vadd.f32 3.1415927, %v5176_v34  ;;  %v1615_v50 = vadd.f32 %v1611_v43, %v1571_v47 }
 0x23a   : > { %vm1663_vm3 = vcmp.gt.f32.partialorder %v4804_v55, 0.0  ;;  %v1679_v48 = vmul.f32 0.63661975, %v1413_v23  ;;  %v1561_v31 = vsel %vm5191_vm5, %v1557_v9, %v5095_v33  ;;  %v3349_v13 = vadd.f32 -3.1415927, %v5176_v34 }
 0x23b   : > { %v1351_v28 = vsel %vm1339_vm7, %v1343_v8, %v3352_v22  ;;  %v5209_v54 = vsel %vm1517_vm0, %v1541_v36, %v1561_v31  ;;  %v5211_v52 = vsel %vm1470_vm6, %v1471_v17, %v1469_v19  ;;  %v1623_v47 = vsub.f32 0.0, %v1615_v50 }
 0x23c   : > { %v1690_v2 = vfloor.f32 %v1679_v48  ;;  %v1375_v37 = vrot.slane %v1351_v28, 1  ;;  %v5215_v25 = vmul.f32 %v5209_v54, %v5209_v54  ;;  %v3347_v32 = vadd.f32 -0.3333295, %v1302_v44 }
 0x23d   : > { %v1659_v24 = vsel %vm1647_vm4, 1.5707964, %v1655_v51  ;;  %v1403_v27 = vrot.slane %v1335_v26, 1  ;;  %vm1653_vm7 = vcmp.lt.f32.partialorder %v5052_v11, 0.0  ;;  %v1627_v18 = vsel %vm1619_vm8, %v1623_v47, %v1615_v50 }
 0x23e   : > { %v3664_v49 = vtrunc.f32 %v1690_v2  ;;  %v1395_v6 = vsel %vm1359_vm9, %v1375_v37, %v1387_v12  ;;  %v5228_v29 = vmul.f32 %v5121_v56, %v5211_v52  ;;  %v1635_v44 = vadd.f32 3.1415927, %v1627_v18 }
 0x23f   : > { %v3370_v30 = vadd.f32 -3.1415927, %v1627_v18  ;;  %v1411_v51 = vsel %vm1355_vm11, %v1403_v27, %v1395_v6  ;;  %v1581_v36 = vmul.f32 0.080537446, %v5215_v25  ;;  %v1348_v61 = vsel %vm1336_vm12, %v1340_v35, %v3349_v13 }
 0x240   : > { %v3665_v19 = vcvt.f32.s32 %v3664_v49  ;;  %v1415_v23 = vadd.f32 3.1415927, %v1411_v51  ;;  %v5236_v4 = vsel %vm1653_vm7, -1.5707964, %v6022_v46  ;;  %v1310_v12 = vmul.f32 %v3347_v32, %v5046_v63 }
 0x241   : > { %v1643_v56 = vsel %vm1631_vm14, %v1635_v44, %v3370_v30  ;;  %v3364_v43 = vadd.f32 -0.13877685, %v1581_v36  ;;  %v5243_v42 = vrot.slane %v4852_v20, %v4339_v5  ;;  %v1569_v8 = vsel %vm5191_vm5, 0.7853982, %v6022_v46 }
 0x242   : > { %v1671_v26 = vsel %vm1667_vm2, %v1643_v56, %v1659_v24  ;;  %v2181_v9 = vadd.s32 1, %v3665_v19  ;;  %v5251_v22 = vand.u32 2147483647, %v5228_v29  ;;  %v1372_v63 = vrot.slane %v1348_v61, 1 }
 0x243   : > { %v1675_v58 = vsel %vm1663_vm3, %v1627_v18, %v1671_v26  ;;  %v1589_v17 = vmul.f32 %v3364_v43, %v5215_v25  ;;  %v5256_v35 = vmul.f32 0.63661975, %v1415_v23  ;;  %v1699_v31 = vsub.f32 %v1679_v48, %v1690_v2 }
 0x244   : > { %v1683_v50 = vmul.f32 0.63661975, %v1675_v58  ;;  %v3374_v13 = vadd.s32 4294967292, %v3665_v19  ;;  %v3378_v28 = vadd.s32 4294967292, %v2181_v9  ;;  %vm1734_vm9 = vcmp.ge.s32.totalorder %v3665_v19, 4 }
 0x245   : > { %vm2185_vm11 = vcmp.ge.s32.totalorder %v2181_v9, 4  ;;  %v1593_v47 = vadd.f32 0.19977711, %v1589_v17  ;;  %v1692_v41 = vfloor.f32 %v5256_v35  ;;  %v5260_v37 = vmul.f32 %v1310_v12, %v5023_v53 }
 0x246   : > { %v1694_v32 = vfloor.f32 %v1683_v50  ;;  %v5264_v55 = vsel %vm1517_vm0, 1.5707964, %v1569_v8  ;;  %v1530_v24 = vmax.f32 %v5251_v22, 1e-30  ;;  %v6028_v48 = vrot.slane %v4908_v10, 1 }
 0x247   : > { %v1597_v27 = vmul.f32 %v1593_v47, %v5215_v25  ;;  %vm6029_vm4 = vcmp.lt.f32.partialorder %v4782_v38, 0.0  ;;  %v1400_v18 = vrot.slane %v5176_v34, 1  ;;  %v1546_v49 = vadd.f32 1.0, %v5251_v22 }
 0x248   : > { %v1392_v2 = vsel %vm6029_vm4, %v1372_v63, %v6028_v48  ;;  %v1703_v6 = vsub.f32 %v1683_v50, %v1694_v32  ;;  %v3672_v44 = vtrunc.f32 %v1694_v32  ;;  %v1742_v30 = vsel %vm1734_vm9, %v3374_v13, %v3665_v19 }
 0x249   : > { %v2193_v51 = vsel %vm2185_vm11, %v3378_v28, %v2181_v9  ;;  %v1717_v33 = vsub.f32 1.0, %v1699_v31  ;;  %v3368_v36 = vadd.f32 -0.3333295, %v1597_v27  ;;  %v3668_v61 = vtrunc.f32 %v1692_v41 }
 0x24a   : > { %3835 = vrsqrt.f32 %v5066_v57  ;;  %v3673_v23 = vcvt.f32.s32 %v3672_v44  ;;  %v1721_v10 = vsub.f32 1.0, %v1703_v6  ;;  %v2029_v12 = vrot.slane %v1703_v6, 2 }
 0x24b   : > { %3837 = vrcp.f32 %v1530_v24  ;;  %v1807_v56 = vmul.u32 2, %v1742_v30  ;;  %v2205_v43 = vmul.u32 2, %v2193_v51  ;;  %vm6030_vm0 = vcmp.gt.f32.partialorder %v4782_v38, 0.0 }
 0x24c   : > { %v5279_v34 = vsel %vm6030_vm0, %v1400_v18, %v1392_v2  ;;  %3839 = vrcp.f32 %v1546_v49  ;;  %vm1747_vm8 = vcmp.gt.s32.totalorder %v3673_v23, 0  ;;  %v1766_v19 = vrot.slane %v1721_v10, 2 }
 0x24d   : > { %v2005_v26 = vadd.s32 1, %v3673_v23  ;;  %v2037_v9 = vmul.f32 %v2029_v12, %v1717_v33  ;;  %v1748_v8 = vsel %vm1747_vm8, %v3673_v23, 0  ;;  %v2341_v63 = vmul.f32 %v2029_v12, %v1699_v31 }
 0x24e   : > { %v1605_v58 = vmul.f32 %v3368_v36, %v5215_v25  ;;  %v5282_v17 = vcvt.f32.s32 %v3668_v61  ;;  %vm1755_vm10 = vcmp.lt.s32.totalorder %v1748_v8, 1  ;;  %v1774_v50 = vmul.f32 %v1766_v19, %v1717_v33 }
 0x24f   : > { %vm2010_vm1 = vcmp.gt.s32.totalorder %v2005_v26, 0  ;;  %v2041_v13 = vmul.f32 %v2037_v9, %v4890_v62  ;;  %v1756_v28 = vsel %vm1755_vm10, %v1748_v8, 1  ;;  %v2117_v47 = vmul.f32 %v2037_v9, %v4898_v7 }
 0x250   : > { %v2011_v38 = vsel %vm2010_vm1, %v2005_v26, 0  ;;  %v2197_v32 = vmul.f32 %v1766_v19, %v1699_v31  ;;  %v1803_v24 = vmul.f32 %v4890_v62, %v1774_v50  ;;  %v1811_v27 = vrot.slane %v1756_v28, 2 }
 0x251   : > { %v1925_v48 = vmul.f32 %v4898_v7, %v1774_v50  ;;  %vm2018_vm13 = vcmp.lt.s32.totalorder %v2011_v38, 1  ;;  %v5289_v25 = vrot.slane %v2041_v13, %v4335_v3  ;;  %v1609_v49 = vmul.f32 %v1605_v58, %v5209_v54 }
 0x252   : > { %v2019_v2 = vsel %vm2018_vm13, %v2011_v38, 1  ;;  %v2201_v18 = vmul.f32 %v2197_v32, %v4890_v62  ;;  %v1815_v6 = vadd.s32 %v1811_v27, %v1807_v56  ;;  %v1873_v44 = vrot.slane %v1803_v24, %v4335_v3  ;;  %v5310_v24 = vld [vmem:[#allocation7 + $0x8] sm:$0xff] }
 0x253   : > { %v2045_v30 = vrot.slane %v2019_v2, 2  ;;  %v2155_v31 = vrot.slane %v2117_v47, %v4335_v3  ;;  %v1979_v33 = vrot.slane %v1925_v48, %v4335_v3  ;;  %v2209_v36 = vadd.s32 %v2205_v43, %v1811_v27 }
 0x254   : > { %v5295_v51 = vpop.eup %3835  ;;  %v2277_v61 = vmul.f32 %v2197_v32, %v4898_v7  ;;  %v2345_v23 = vmul.f32 %v2341_v63, %v4890_v62  ;;  %v1819_v12 = vmul.u32 2, %v1815_v6  ;;  %v2251_v26 = vrot.slane %v2201_v18, %v4335_v3 }
 0x255   : > { %v5300_v10 = vpop.eup %3837  ;;  %v2049_v19 = vadd.s32 %v2045_v30, %v1807_v56  ;;  %v2349_v9 = vadd.s32 %v2205_v43, %v2045_v30  ;;  %v2213_v58 = vmul.u32 2, %v2209_v36  ;;  %v2417_v13 = vmul.f32 %v2341_v63, %v4898_v7  ;;  %v5312_v56 = vld [vmem:[#allocation7 + $0x28] sm:$0xff] }
 0x256   : > { %v5303_v8 = vpop.eup %3839  ;;  %v2315_v50 = vrot.slane %v2277_v61, %v4335_v3  ;;  %v1613_v28 = vadd.f32 %v1609_v49, %v5209_v54  ;;  %v1839_v38 = vadd.s32 %v4894_v0, %v1819_v12  ;;  %v1945_v62 = vadd.s32 %v4919_v21, %v1819_v12 }
 0x257   : > { %v2053_v47 = vmul.u32 2, %v2049_v19  ;;  %v2353_v32 = vmul.u32 2, %v2349_v9  ;;  %v2217_v43 = vadd.s32 %v2213_v58, %v4894_v0  ;;  %v2281_v27 = vadd.s32 %v2213_v58, %v4919_v21 }
 0x258   : > { %v2391_v48 = vrot.slane %v2345_v23, %v4335_v3  ;;  %v5318_v7 = vadd.f32 %v1613_v28, %v5264_v55  ;;  %v1849_v54 = vrot.slane %v1839_v38, %v4335_v3  ;;  %v1955_v63 = vrot.slane %v1945_v62, %v4335_v3 }
 0x259   : > { %v2057_v2 = vadd.s32 %v2053_v47, %v4894_v0  ;;  %v2121_v18 = vadd.s32 %v2053_v47, %v4919_v21  ;;  %v2227_v49 = vrot.slane %v2217_v43, %v4335_v3  ;;  %v2291_v6 = vrot.slane %v2281_v27, %v4335_v3 }
 0x25a   : > { %v2357_v30 = vadd.s32 %v2353_v32, %v4894_v0  ;;  %v2421_v36 = vadd.s32 %v2353_v32, %v4919_v21  ;;  %vm1859_vm12 = vcmp.eq.s32.totalorder %v1849_v54, %v5310_v24  ;;  %vm1863_vm14 = vcmp.eq.s32.totalorder %v1849_v54, %v5312_v56 }
 0x25b   : > { %vm1965_vm2 = vcmp.eq.s32.totalorder %v1955_v63, %v5310_v24  ;;  %vm1969_vm5 = vcmp.eq.s32.totalorder %v1955_v63, %v5312_v56  ;;  %vm1514_vm6 = vcmp.gt.f32.partialorder %v5251_v22, 2.4142137  ;;  %v1883_v55 = vsel %vm1859_vm12, %v1873_v44, 0.0 }
 0x25c   : > { %v1887_v61 = vsel %vm1863_vm14, %v1873_v44, 0.0  ;;  %v1989_v23 = vsel %vm1965_vm2, %v1979_v33, 0.0  ;;  %v1993_v12 = vsel %vm1969_vm5, %v1979_v33, 0.0  ;;  %v2067_v0 = vrot.slane %v2057_v2, %v4335_v3 }
 0x25d   : > { %v1997_v19 = vadd.f32 %v1989_v23, %v1883_v55  ;;  %v2001_v9 = vadd.f32 %v1993_v12, %v1887_v61  ;;  %v2131_v21 = vrot.slane %v2121_v18, %v4335_v3  ;;  %vm1621_vm3 = vcmp.lt.f32.partialorder %v5082_v60, 0.0 }
 0x25e   : > { %vm1649_vm7 = vcmp.gt.f32.partialorder %v5052_v11, 0.0  ;;  %vm2237_vm9 = vcmp.eq.s32.totalorder %v2227_v49, %v5310_v24  ;;  %vm2241_vm11 = vcmp.eq.s32.totalorder %v2227_v49, %v5312_v56  ;;  %vm2301_vm4 = vcmp.eq.s32.totalorder %v2291_v6, %v5310_v24 }
 0x25f   : > { %vm2305_vm0 = vcmp.eq.s32.totalorder %v2291_v6, %v5312_v56  ;;  %vm1518_vm8 = vcmp.gt.f32.partialorder %v5251_v22, 0.41421357  ;;  %vm2077_vm10 = vcmp.eq.s32.totalorder %v2067_v0, %v5310_v24  ;;  %vm2081_vm1 = vcmp.eq.s32.totalorder %v2067_v0, %v5312_v56 }
 0x260   : > { %vm2141_vm13 = vcmp.eq.s32.totalorder %v2131_v21, %v5310_v24  ;;  %vm2145_vm12 = vcmp.eq.s32.totalorder %v2131_v21, %v5312_v56  ;;  %v2101_v44 = vsel %vm2077_vm10, %v5289_v25, 0.0  ;;  %v2105_v33 = vsel %vm2081_vm1, %v5289_v25, 0.0  ;;  %vm1522_vm10 = vmxor %vm1514_vm6, %vm6023_vm15 }
 0x261   : > { %v2165_v58 = vsel %vm2141_vm13, %v2155_v31, 0.0  ;;  %v2169_v28 = vsel %vm2145_vm12, %v2155_v31, 0.0  ;;  %vm1633_vm14 = vcmp.ge.f32.partialorder %v5052_v11, 0.0  ;;  %v2109_v38 = vadd.f32 %v2101_v44, %v1997_v19 }
 0x262   : > { %v2113_v62 = vadd.f32 %v2105_v33, %v2001_v9  ;;  %v2261_v47 = vsel %vm2237_vm9, %v2251_v26, 0.0  ;;  %v2265_v32 = vsel %vm2241_vm11, %v2251_v26, 0.0  ;;  %vm1669_vm2 = vcmp.lt.f32.partialorder %v4810_v1, 0.0 }
 0x263   : > { %v2325_v43 = vsel %vm2301_vm4, %v2315_v50, 0.0  ;;  %v2329_v25 = vsel %vm2305_vm0, %v2315_v50, 0.0  ;;  %v2367_v31 = vrot.slane %v2357_v30, %v4335_v3  ;;  %v2431_v27 = vrot.slane %v2421_v36, %v4335_v3 }
 0x264   : > { %vm1665_vm5 = vcmp.gt.f32.partialorder %v4810_v1, 0.0  ;;  %v2173_v54 = vadd.f32 %v2165_v58, %v2109_v38  ;;  %v2177_v63 = vadd.f32 %v2169_v28, %v2113_v62  ;;  %v2455_v2 = vrot.slane %v2417_v13, %v4335_v3 }
 0x265   : > { %v1625_v26 = vsub.f32 0.0, %v5318_v7  ;;  %vm2377_vm9 = vcmp.eq.s32.totalorder %v2367_v31, %v5310_v24  ;;  %vm2381_vm11 = vcmp.eq.s32.totalorder %v2367_v31, %v5312_v56  ;;  %vm2441_vm4 = vcmp.eq.s32.totalorder %v2431_v27, %v5310_v24 }
 0x266   : > { %vm2445_vm0 = vcmp.eq.s32.totalorder %v2431_v27, %v5312_v56  ;;  %v2269_v50 = vadd.f32 %v2261_v47, %v2173_v54  ;;  %v2273_v18 = vadd.f32 %v2265_v32, %v2177_v63  ;;  %v2401_v49 = vsel %vm2377_vm9, %v2391_v48, 0.0 }
 0x267   : > { %v2405_v6 = vsel %vm2381_vm11, %v2391_v48, 0.0  ;;  %v2465_v30 = vsel %vm2441_vm4, %v2455_v2, 0.0  ;;  %v2469_v36 = vsel %vm2445_vm0, %v2455_v2, 0.0  ;;  %v1629_v13 = vsel %vm1621_vm3, %v1625_v26, %v5318_v7  ;;  %vm5386_vm3 = vmand %vm1518_vm8, %vm1522_vm10 }
 0x268   : > { %v3357_v55 = vadd.f32 -1.0, %v5251_v22  ;;  %v2333_v61 = vadd.f32 %v2325_v43, %v2269_v50  ;;  %v2337_v24 = vadd.f32 %v2329_v25, %v2273_v18  ;;  %v1637_v23 = vadd.f32 3.1415927, %v1629_v13 }
 0x269   : > { %v3372_v56 = vadd.f32 -3.1415927, %v1629_v13  ;;  %v1661_v48 = vsel %vm1649_vm7, 1.5707964, %v5236_v4  ;;  %v2183_v12 = vadd.s32 1, %v5282_v17  ;;  %v1538_v19 = vsub.f32 0.0, %v5300_v10 }
 0x26a   : > { %v1554_v60 = vmul.f32 %v5303_v8, %v3357_v55  ;;  %v1318_v7 = vadd.f32 %v5260_v37, %v5023_v53  ;;  %v2409_v9 = vadd.f32 %v2401_v49, %v2333_v61  ;;  %v2413_v0 = vadd.f32 %v2405_v6, %v2337_v24 }
 0x26b   : > { %v1645_v21 = vsel %vm1633_vm14, %v1637_v23, %v3372_v56  ;;  %v3376_v10 = vadd.s32 4294967292, %v5282_v17  ;;  %v1412_v8 = vadd.f32 3.1415927, %v5279_v34  ;;  %vm1736_vm7 = vcmp.ge.s32.totalorder %v5282_v17, 4 }
 0x26c   : > { %v1673_v4 = vsel %vm1669_vm2, %v1645_v21, %v1661_v48  ;;  %v1558_v53 = vsel %vm5386_vm3, %v1554_v60, %v5251_v22  ;;  %v2473_v37 = vadd.f32 %v2465_v30, %v2409_v9  ;;  %v2477_v11 = vadd.f32 %v2469_v36, %v2413_v0 }
 0x26d   : > { %v1677_v33 = vsel %vm1665_vm5, %v1629_v13, %v1673_v4  ;;  %v5402_v28 = vrot.slane %v4854_v40, %v4339_v5  ;;  %v3380_v38 = vadd.s32 4294967292, %v2183_v12  ;;  %v5406_v34 = vsel %vm1514_vm6, %v1538_v19, %v1558_v53 }
 0x26e   : > { %v1685_v58 = vmul.f32 0.63661975, %v1677_v33  ;;  %v3588_v62 = vpack.c.bf16 %v2477_v11, %v2473_v37  ;;  %v1701_v47 = vsub.f32 %v5256_v35, %v1692_v41  ;;  %vm2187_vm8 = vcmp.ge.s32.totalorder %v2183_v12, 4 }
 0x26f   : > { %v5413_v1 = vmul.f32 %v5406_v34, %v5406_v34  ;;  %v1744_v43 = vsel %vm1736_vm7, %v3376_v10, %v5282_v17  ;;  %v1919_v25 = vrot.slane %v4840_v14, %v4339_v5  ;;  %v1481_v31 = vmul.f32 %v5295_v51, %v5066_v57 }
 0x270   : > { %v1696_v32 = vfloor.f32 %v1685_v58  ;;  %v5421_v27 = vadd.f32 %v1318_v7, %v5132_v16  ;;  %3589 = vmatprep.subr.bf16.mxu0 %v3588_v62  ;;  %v5425_v35 = vrot.slane %v4860_v45, %v4339_v5  ;;  %v5428_v54 = vmul.f32 0.63661975, %v1412_v8 }
 0x271   : > { %v1578_v41 = vmul.f32 0.080537446, %v5413_v1  ;;  %v2195_v2 = vsel %vm2187_vm8, %v3380_v38, %v2183_v12  ;;  %v5433_v26 = vsel %vm5386_vm3, 0.7853982, %v6022_v46  ;;  %v1719_v51 = vsub.f32 1.0, %v1701_v47 }
 0x272   : > { %v1705_v63 = vsub.f32 %v1685_v58, %v1696_v32  ;;  %v3676_v17 = vtrunc.f32 %v1696_v32  ;;  %v1809_v16 = vmul.u32 2, %v1744_v43  ;;  %vm1482_vm1 = vcmp.eq.f32.partialorder %v5066_v57, inf }
 0x273   : > { %v3361_v50 = vadd.f32 -0.13877685, %v1578_v41  ;;  %v1483_v6 = vsel %vm1482_vm1, %v5066_v57, %v1481_v31  ;;  %v2207_v30 = vmul.u32 2, %v2195_v2  ;;  %v1689_v36 = vfloor.f32 %v5428_v54 }
 0x274   : > { %v3677_v18 = vcvt.f32.s32 %v3676_v17  ;;  %v1723_v5 = vsub.f32 1.0, %v1705_v63  ;;  %v2031_v49 = vrot.slane %v1705_v63, 2  ;;  %vm1484_vm13 = vcmp.eq.f32.partialorder %v5066_v57, 0.0 }
 0x275   : > { %v1485_v13 = vand.u32 2147483648, %v5066_v57  ;;  %v1586_v48 = vmul.f32 %v3361_v50, %v5413_v1 }
 0x276   : > { %vm1751_vm12 = vcmp.gt.s32.totalorder %v3677_v18, 0  ;;  %v1768_v55 = vrot.slane %v1723_v5, 2  ;;  %v2007_v61 = vadd.s32 1, %v3677_v18  ;;  %v2039_v24 = vmul.f32 %v2031_v49, %v1719_v51 }
 0x277   : > { %v1752_v23 = vsel %vm1751_vm12, %v3677_v18, 0  ;;  %v2343_v56 = vmul.f32 %v2031_v49, %v1701_v47  ;;  %v5441_v12 = vsel %vm1484_vm13, %v1485_v13, %v1483_v6  ;;  %v1590_v37 = vadd.f32 0.19977711, %v1586_v48 }
 0x278   : > { %vm1759_vm14 = vcmp.lt.s32.totalorder %v1752_v23, 1  ;;  %v1776_v19 = vmul.f32 %v1768_v55, %v1719_v51  ;;  %vm2014_vm2 = vcmp.gt.s32.totalorder %v2007_v61, 0  ;;  %v2043_v60 = vmul.f32 %v2039_v24, %v5243_v42 }
 0x279   : > { %v1760_v7 = vsel %vm1759_vm14, %v1752_v23, 1  ;;  %v2015_v9 = vsel %vm2014_vm2, %v2007_v61, 0  ;;  %v2119_v0 = vmul.f32 %v2039_v24, %v1919_v25  ;;  %v2199_v21 = vmul.f32 %v1768_v55, %v1701_v47  ;;  %v1728_v55 = vld [vmem:[#allocation7 + $0x18] sm:$0xff] }
 0x27a   : > { %v1805_v57 = vmul.f32 %v5243_v42, %v1776_v19  ;;  %v1813_v44 = vrot.slane %v1760_v7, 2  ;;  %v1927_v4 = vmul.f32 %v1919_v25, %v1776_v19  ;;  %vm2022_vm5 = vcmp.lt.s32.totalorder %v2015_v9, 1  ;;  %v1732_v61 = vld [vmem:[#allocation7 + $0x38] sm:$0xff] }
 0x27b   : > { %v2023_v10 = vsel %vm2022_vm5, %v2015_v9, 1  ;;  %v2099_v8 = vrot.slane %v2043_v60, %v4335_v3  ;;  %v2203_v53 = vmul.f32 %v2199_v21, %v5243_v42  ;;  %v2163_v38 = vrot.slane %v2119_v0, %v4335_v3 }
 0x27c   : > { %v1817_v11 = vadd.s32 %v1813_v44, %v1809_v16  ;;  %v1881_v33 = vrot.slane %v1805_v57, %v4335_v3  ;;  %v2047_v58 = vrot.slane %v2023_v10, 2  ;;  %v1987_v62 = vrot.slane %v1927_v4, %v4335_v3 }
 0x27d   : > { %v2211_v47 = vadd.s32 %v2207_v30, %v1813_v44  ;;  %v2279_v32 = vmul.f32 %v2199_v21, %v1919_v25  ;;  %v2347_v43 = vmul.f32 %v2343_v56, %v5243_v42  ;;  %v2259_v63 = vrot.slane %v2203_v53, %v4335_v3 }
 0x27e   : > { %v1821_v31 = vmul.u32 2, %v1817_v11  ;;  %v2051_v41 = vadd.s32 %v2047_v58, %v1809_v16  ;;  %v2351_v17 = vadd.s32 %v2207_v30, %v2047_v58  ;;  %v2419_v50 = vmul.f32 %v2343_v56, %v1919_v25 }
 0x27f   : > { %v2215_v2 = vmul.u32 2, %v2211_v47  ;;  %v2323_v51 = vrot.slane %v2279_v32, %v4335_v3  ;;  %v1594_v18 = vmul.f32 %v1590_v37, %v5413_v1  ;;  %v2399_v30 = vrot.slane %v2347_v43, %v4335_v3 }
 0x280   : > { %v1841_v5 = vadd.s32 %v5402_v28, %v1821_v31  ;;  %v1947_v49 = vadd.s32 %v5425_v35, %v1821_v31  ;;  %v2055_v6 = vmul.u32 2, %v2051_v41  ;;  %v2355_v13 = vmul.u32 2, %v2351_v17 }
 0x281   : > { %v2219_v42 = vadd.s32 %v2215_v2, %v5402_v28  ;;  %v2283_v16 = vadd.s32 %v2215_v2, %v5425_v35  ;;  %v3365_v24 = vadd.f32 -0.3333295, %v1594_v18 }
 0x282   : > { %v1857_v23 = vrot.slane %v1841_v5, %v4335_v3  ;;  %v1963_v25 = vrot.slane %v1947_v49, %v4335_v3  ;;  %v2059_v56 = vadd.s32 %v2055_v6, %v5402_v28  ;;  %v2123_v48 = vadd.s32 %v2055_v6, %v5425_v35 }
 0x283   : > { %v2235_v19 = vrot.slane %v2219_v42, %v4335_v3  ;;  %v2299_v60 = vrot.slane %v2283_v16, %v4335_v3  ;;  %v2359_v7 = vadd.s32 %v2355_v13, %v5402_v28  ;;  %v2423_v9 = vadd.s32 %v2355_v13, %v5425_v35 }
 0x284   : > { %vm1861_vm9 = vcmp.eq.s32.totalorder %v1857_v23, %v1728_v55  ;;  %vm1865_vm11 = vcmp.eq.s32.totalorder %v1857_v23, %v1732_v61  ;;  %vm1967_vm4 = vcmp.eq.s32.totalorder %v1963_v25, %v1728_v55  ;;  %vm1971_vm0 = vcmp.eq.s32.totalorder %v1963_v25, %v1732_v61 }
 0x285   : > { %v1885_v0 = vsel %vm1861_vm9, %v1881_v33, 0.0  ;;  %v1889_v21 = vsel %vm1865_vm11, %v1881_v33, 0.0  ;;  %v1991_v57 = vsel %vm1967_vm4, %v1987_v62, 0.0  ;;  %v1995_v44 = vsel %vm1971_vm0, %v1987_v62, 0.0 }
 0x286   : > { %v1999_v4 = vadd.f32 %v1991_v57, %v1885_v0  ;;  %v2003_v10 = vadd.f32 %v1995_v44, %v1889_v21  ;;  %v2075_v53 = vrot.slane %v2059_v56, %v4335_v3  ;;  %v2139_v37 = vrot.slane %v2123_v48, %v4335_v3 }
 0x287   : > { %vm2239_vm10 = vcmp.eq.s32.totalorder %v2235_v19, %v1728_v55  ;;  %vm2243_vm3 = vcmp.eq.s32.totalorder %v2235_v19, %v1732_v61  ;;  %vm2303_vm7 = vcmp.eq.s32.totalorder %v2299_v60, %v1728_v55  ;;  %vm2307_vm8 = vcmp.eq.s32.totalorder %v2299_v60, %v1732_v61 }
 0x288   : > { %vm2079_vm1 = vcmp.eq.s32.totalorder %v2075_v53, %v1728_v55  ;;  %vm2083_vm13 = vcmp.eq.s32.totalorder %v2075_v53, %v1732_v61  ;;  %vm2143_vm12 = vcmp.eq.s32.totalorder %v2139_v37, %v1728_v55  ;;  %vm2147_vm14 = vcmp.eq.s32.totalorder %v2139_v37, %v1732_v61  ;;  %v6033_v53 = vld [vmem:[#allocation23_spill] sm:$0xff] }
 0x289   : > { %v2103_v28 = vsel %vm2079_vm1, %v2099_v8, 0.0  ;;  %v2107_v35 = vsel %vm2083_vm13, %v2099_v8, 0.0  ;;  %v2167_v11 = vsel %vm2143_vm12, %v2163_v38, 0.0  ;;  %v2171_v33 = vsel %vm2147_vm14, %v2163_v38, 0.0 }
 0x28a   : > { %v2111_v58 = vadd.f32 %v2103_v28, %v1999_v4  ;;  %v2115_v62 = vadd.f32 %v2107_v35, %v2003_v10  ;;  %v2263_v47 = vsel %vm2239_vm10, %v2259_v63, 0.0  ;;  %v2267_v32 = vsel %vm2243_vm3, %v2259_v63, 0.0 }
 0x28b   : > { %v2327_v43 = vsel %vm2303_vm7, %v2323_v51, 0.0  ;;  %v2331_v31 = vsel %vm2307_vm8, %v2323_v51, 0.0  ;;  %v2375_v41 = vrot.slane %v2359_v7, %v4335_v3  ;;  %v2439_v17 = vrot.slane %v2423_v9, %v4335_v3 }
 0x28c   : > { %v2175_v2 = vadd.f32 %v2167_v11, %v2111_v58  ;;  %v2179_v18 = vadd.f32 %v2171_v33, %v2115_v62  ;;  %v2463_v5 = vrot.slane %v2419_v50, %v4335_v3  ;;  %v1602_v49 = vmul.f32 %v3365_v24, %v5413_v1 }
 0x28d   : > { %vm2379_vm2 = vcmp.eq.s32.totalorder %v2375_v41, %v1728_v55  ;;  %vm2383_vm5 = vcmp.eq.s32.totalorder %v2375_v41, %v1732_v61  ;;  %vm2443_vm9 = vcmp.eq.s32.totalorder %v2439_v17, %v1728_v55  ;;  %vm2447_vm11 = vcmp.eq.s32.totalorder %v2439_v17, %v1732_v61 }
 0x28e   : > { %v2271_v8 = vadd.f32 %v2263_v47, %v2175_v2  ;;  %v2275_v38 = vadd.f32 %v2267_v32, %v2179_v18  ;;  %v2403_v6 = vsel %vm2379_vm2, %v2399_v30, 0.0  ;;  %v2407_v63 = vsel %vm2383_vm5, %v2399_v30, 0.0 }
 0x28f   : > { %v2467_v13 = vsel %vm2443_vm9, %v2463_v5, 0.0  ;;  %v2471_v51 = vsel %vm2447_vm11, %v2463_v5, 0.0  ;;  %v1606_v42 = vmul.f32 %v1602_v49, %v5406_v34  ;;  %v5476_v16 = vmul.f32 %v5202_v59, %v5441_v12 }
 0x290   : > { %v2335_v23 = vadd.f32 %v2327_v43, %v2271_v8  ;;  %v2339_v50 = vadd.f32 %v2331_v31, %v2275_v38  ;;  %v1330_v1 = vsub.f32 0.0, %v5421_v27  ;;  %v1570_v30 = vsel %vm1514_vm6, 1.5707964, %v5433_v26 }
 0x291   : > { %v1610_v24 = vadd.f32 %v1606_v42, %v5406_v34  ;;  %v5481_v55 = vand.u32 2147483647, %v5476_v16  ;;  %v3662_v56 = vtrunc.f32 %v1689_v36  ;;  %vm1326_vm4 = vcmp.lt.f32.partialorder %v4819_v15, 0.0 }
 0x292   : > { %v2411_v61 = vadd.f32 %v2403_v6, %v2335_v23  ;;  %v2415_v25 = vadd.f32 %v2407_v63, %v2339_v50  ;;  %vm1650_vm0 = vcmp.lt.f32.partialorder %v5211_v52, 0.0  ;;  %v5493_v7 = vsel %vm1326_vm4, %v1330_v1, %v5421_v27 }
 0x293   : > { %v1614_v59 = vadd.f32 %v1610_v24, %v1570_v30  ;;  %v1532_v48 = vmax.f32 %v5481_v55, 1e-30  ;;  %v1548_v34 = vadd.f32 1.0, %v5481_v55  ;;  %vm1358_vm10 = vcmp.lt.f32.partialorder %v4784_v39, 0.0 }
 0x294   : > { %v2475_v19 = vadd.f32 %v2467_v13, %v2411_v61  ;;  %v2479_v60 = vadd.f32 %v2471_v51, %v2415_v25  ;;  %vm1618_vm6 = vcmp.lt.f32.partialorder %v5228_v29, 0.0  ;;  %v3663_v15 = vcvt.f32.s32 %v3662_v56  ;;  %v2633_v13 = vld [vmem:[%s6036_s12 + $0x10] sm:$0xff] }
 0x295   : > { %v1622_v22 = vsub.f32 0.0, %v1614_v59  ;;  %3841 = vrcp.f32 %v1532_v48  ;;  %vm1646_vm3 = vcmp.gt.f32.partialorder %v5211_v52, 0.0  ;;  %v1654_v0 = vsel %vm1650_vm0, -1.5707964, %v6022_v46 }
 0x296   : > { %v3592_v26 = vpack.c.bf16 %v2479_v60, %v2475_v19  ;;  %3843 = vrcp.f32 %v1548_v34  ;;  %v1362_v21 = vsel %vm1358_vm10, -1.5707964, %v6022_v46  ;;  %v1342_v44 = vadd.f32 3.1415927, %v5493_v7 }
 0x297   : > { %v1626_v9 = vsel %vm1618_vm6, %v1622_v22, %v1614_v59  ;;  %v3351_v4 = vadd.f32 -3.1415927, %v5493_v7  ;;  %vm1354_vm7 = vcmp.gt.f32.partialorder %v4784_v39, 0.0  ;;  %vm1630_vm8 = vcmp.ge.f32.partialorder %v5211_v52, 0.0 }
 0x298   : > { %3593 = vmatprep.subr.bf16.mxu1 %v3592_v26  ;;  %v1634_v27 = vadd.f32 3.1415927, %v1626_v9  ;;  %v3369_v57 = vadd.f32 -3.1415927, %v1626_v9  ;;  %v1658_v10 = vsel %vm1646_vm3, 1.5707964, %v1654_v0  ;;  %v1698_v52 = vsub.f32 %v5428_v54, %v1689_v36 }
 0x299   : > { %vm1666_vm1 = vcmp.lt.f32.partialorder %v6033_v53, 0.0  ;;  %v2180_v37 = vadd.s32 1, %v3663_v15  ;;  %vm1662_vm13 = vcmp.gt.f32.partialorder %v6033_v53, 0.0  ;;  %vm1338_vm12 = vcmp.ge.f32.partialorder %v4784_v39, 0.0 }
 0x29a   : > { %v1642_v29 = vsel %vm1630_vm8, %v1634_v27, %v3369_v57  ;;  %vm1516_vm14 = vcmp.gt.f32.partialorder %v5481_v55, 2.4142137  ;;  %v1350_v11 = vsel %vm1338_vm12, %v1342_v44, %v3351_v4  ;;  %v1366_v33 = vsel %vm1354_vm7, 1.5707964, %v1362_v21 }
 0x29b   : > { %v1670_v28 = vsel %vm1666_vm1, %v1642_v29, %v1658_v10  ;;  %v3373_v62 = vadd.s32 4294967292, %v3663_v15  ;;  %vm1733_vm2 = vcmp.ge.s32.totalorder %v3663_v15, 4  ;;  %v3377_v47 = vadd.s32 4294967292, %v2180_v37  ;;  %vm1524_vm11 = vmxor %vm1516_vm14, %vm6023_vm15 }
 0x29c   : > { %v1674_v35 = vsel %vm1662_vm13, %v1626_v9, %v1670_v28  ;;  %vm2184_vm5 = vcmp.ge.s32.totalorder %v2180_v37, 4  ;;  %vm1520_vm9 = vcmp.gt.f32.partialorder %v5481_v55, 0.41421357  ;;  %v3359_v31 = vadd.f32 -1.0, %v5481_v55 }
 0x29d   : > { %v1682_v58 = vmul.f32 0.63661975, %v1674_v35  ;;  %v1374_v17 = vrot.slane %v1350_v11, 1  ;;  %v1386_v2 = vrot.slane %v1366_v33, 1  ;;  %v1785_v18 = vrot.slane %v4852_v20, %v4335_v3  ;;  %vm5530_vm15 = vmand %vm1520_vm9, %vm1524_vm11 }
 0x29e   : > { %v1907_v54 = vrot.slane %v4840_v14, %v4335_v3  ;;  %v1741_v49 = vsel %vm1733_vm2, %v3373_v62, %v3663_v15  ;;  %v1716_v38 = vsub.f32 1.0, %v1698_v52  ;;  %v5526_v6 = vrot.slane %v4854_v40, %v4335_v3 }
 0x29f   : > { %v3842_v32 = vpop.eup %3841  ;;  %v1693_v43 = vfloor.f32 %v1682_v58  ;;  %v2192_v63 = vsel %vm2184_vm5, %v3377_v47, %v2180_v37  ;;  %v1806_v24 = vmul.u32 2, %v1741_v49  ;;  %v1931_v61 = vrot.slane %v4860_v45, %v4335_v3 }
 0x2a0   : > { %v3844_v41 = vpop.eup %3843  ;;  %v1540_v51 = vsub.f32 0.0, %v3842_v32  ;;  %v5541_v25 = vsel %vm1358_vm10, %v1374_v17, %v1386_v2  ;;  %v1402_v30 = vrot.slane %v5493_v7, 1  ;;  %v2204_v60 = vmul.u32 2, %v2192_v63 }
 0x2a1   : > { %v1702_v36 = vsub.f32 %v1682_v58, %v1693_v43  ;;  %v3670_v5 = vtrunc.f32 %v1693_v43  ;;  %v1556_v8 = vmul.f32 %v3844_v41, %v3359_v31 }
 0x2a3   : > { %v3671_v42 = vcvt.f32.s32 %v3670_v5  ;;  %v1720_v23 = vsub.f32 1.0, %v1702_v36  ;;  %v2028_v50 = vrot.slane %v1702_v36, 2  ;;  %v1560_v1 = vsel %vm5530_vm15, %v1556_v8, %v5481_v55 }
 0x2a4   : > { %v5546_v22 = vsel %vm1516_vm14, %v1540_v51, %v1560_v1  ;;  %v1725_v51 = vld [vmem:[#allocation7] sm:$0xff] }
 0x2a5   : > { %vm1745_vm4 = vcmp.gt.s32.totalorder %v3671_v42, 0  ;;  %v1765_v56 = vrot.slane %v1720_v23, 2  ;;  %v2004_v59 = vadd.s32 1, %v3671_v42  ;;  %v2036_v48 = vmul.f32 %v2028_v50, %v1716_v38 }
 0x2a6   : > { %v1746_v19 = vsel %vm1745_vm4, %v3671_v42, 0  ;;  %v2340_v34 = vmul.f32 %v2028_v50, %v1698_v52  ;;  %v5551_v37 = vmul.f32 %v5546_v22, %v5546_v22  ;;  %v1729_v42 = vld [vmem:[#allocation7 + $0x20] sm:$0xff] }
 0x2a7   : > { %vm1753_vm0 = vcmp.lt.s32.totalorder %v1746_v19, 1  ;;  %v1773_v26 = vmul.f32 %v1765_v56, %v1716_v38  ;;  %vm2008_vm6 = vcmp.gt.s32.totalorder %v2004_v59, 0  ;;  %v2040_v15 = vmul.f32 %v2036_v48, %v1785_v18 }
 0x2a8   : > { %v1754_v9 = vsel %vm1753_vm0, %v1746_v19, 1  ;;  %v2009_v0 = vsel %vm2008_vm6, %v2004_v59, 0  ;;  %v2116_v21 = vmul.f32 %v2036_v48, %v1907_v54  ;;  %v2196_v27 = vmul.f32 %v1765_v56, %v1698_v52 }
 0x2a9   : > { %v1802_v57 = vmul.f32 %v1785_v18, %v1773_v26  ;;  %v1810_v44 = vrot.slane %v1754_v9, 2  ;;  %v1924_v4 = vmul.f32 %v1907_v54, %v1773_v26  ;;  %vm2016_vm10 = vcmp.lt.s32.totalorder %v2009_v0, 1 }
 0x2aa   : > { %v2017_v29 = vsel %vm2016_vm10, %v2009_v0, 1  ;;  %v2087_v10 = vrot.slane %v2040_v15, %v4335_v3  ;;  %v2200_v53 = vmul.f32 %v2196_v27, %v1785_v18  ;;  %v2151_v33 = vrot.slane %v2116_v21, %v4335_v3 }
 0x2ab   : > { %v1814_v28 = vadd.s32 %v1810_v44, %v1806_v24  ;;  %v1869_v35 = vrot.slane %v1802_v57, %v4335_v3  ;;  %v2044_v11 = vrot.slane %v2017_v29, 2  ;;  %v1975_v58 = vrot.slane %v1924_v4, %v4335_v3 }
 0x2ac   : > { %v2208_v62 = vadd.s32 %v2204_v60, %v1810_v44  ;;  %v2276_v52 = vmul.f32 %v2196_v27, %v1907_v54  ;;  %v2344_v47 = vmul.f32 %v2340_v34, %v1785_v18  ;;  %v2247_v31 = vrot.slane %v2200_v53, %v4335_v3 }
 0x2ad   : > { %v1818_v32 = vmul.u32 2, %v1814_v28  ;;  %v2048_v43 = vadd.s32 %v2044_v11, %v1806_v24  ;;  %v2348_v41 = vadd.s32 %v2204_v60, %v2044_v11  ;;  %v2416_v36 = vmul.f32 %v2340_v34, %v1907_v54 }
 0x2ae   : > { %v2212_v17 = vmul.u32 2, %v2208_v62  ;;  %v2311_v2 = vrot.slane %v2276_v52, %v4335_v3  ;;  %v1580_v5 = vmul.f32 0.080537446, %v5551_v37  ;;  %v2387_v50 = vrot.slane %v2344_v47, %v4335_v3 }
 0x2af   : > { %v1838_v49 = vadd.s32 %v5526_v6, %v1818_v32  ;;  %v1944_v8 = vadd.s32 %v1931_v61, %v1818_v32  ;;  %v2052_v38 = vmul.u32 2, %v2048_v43  ;;  %v2352_v63 = vmul.u32 2, %v2348_v41 }
 0x2b0   : > { %v2216_v18 = vadd.s32 %v2212_v17, %v5526_v6  ;;  %v2280_v23 = vadd.s32 %v2212_v17, %v1931_v61  ;;  %v3363_v1 = vadd.f32 -0.13877685, %v1580_v5  ;;  %v2451_v41 = vrot.slane %v2416_v36, %v4335_v3 }
 0x2b1   : > { %v1845_v24 = vrot.slane %v1838_v49, %v4335_v3  ;;  %v1951_v56 = vrot.slane %v1944_v8, %v4335_v3  ;;  %v2056_v54 = vadd.s32 %v2052_v38, %v5526_v6  ;;  %v2120_v59 = vadd.s32 %v2052_v38, %v1931_v61 }
 0x2b2   : > { %v2223_v48 = vrot.slane %v2216_v18, %v4335_v3  ;;  %v2287_v19 = vrot.slane %v2280_v23, %v4335_v3  ;;  %v2356_v60 = vadd.s32 %v2352_v63, %v5526_v6  ;;  %v2420_v34 = vadd.s32 %v2352_v63, %v1931_v61 }
 0x2b3   : > { %vm1858_vm3 = vcmp.eq.s32.totalorder %v1845_v24, %v1725_v51  ;;  %vm1862_vm8 = vcmp.eq.s32.totalorder %v1845_v24, %v1729_v42  ;;  %vm1964_vm1 = vcmp.eq.s32.totalorder %v1951_v56, %v1725_v51  ;;  %vm1968_vm13 = vcmp.eq.s32.totalorder %v1951_v56, %v1729_v42 }
 0x2b4   : > { %v1882_v26 = vsel %vm1858_vm3, %v1869_v35, 0.0  ;;  %v1886_v15 = vsel %vm1862_vm8, %v1869_v35, 0.0  ;;  %v1988_v9 = vsel %vm1964_vm1, %v1975_v58, 0.0  ;;  %v1992_v0 = vsel %vm1968_vm13, %v1975_v58, 0.0 }
 0x2b5   : > { %v1996_v21 = vadd.f32 %v1988_v9, %v1882_v26  ;;  %v2000_v27 = vadd.f32 %v1992_v0, %v1886_v15  ;;  %v2063_v57 = vrot.slane %v2056_v54, %v4335_v3  ;;  %v2127_v44 = vrot.slane %v2120_v59, %v4335_v3  ;;  %v5606_v26 = vld [vmem:[%s6037_s10] sm:$0xff]  ;;  %s3395_s10 = sshll.u32 %s3026_s17, 7 }
 0x2b6   : > { %vm2236_vm12 = vcmp.eq.s32.totalorder %v2223_v48, %v1725_v51  ;;  %vm2240_vm2 = vcmp.eq.s32.totalorder %v2223_v48, %v1729_v42  ;;  %vm2300_vm5 = vcmp.eq.s32.totalorder %v2287_v19, %v1725_v51  ;;  %vm2304_vm9 = vcmp.eq.s32.totalorder %v2287_v19, %v1729_v42  ;;  %v2649_v48 = vld [vmem:[%s6036_s12 + $0x90] sm:$0xff]  ;;  %v2650_v19 = vld [vmem:[%s6036_s12 + $0x98] sm:$0xff]  ;;  %s5878_s6 = scalar_lea.hbm %s6047_s14, %s3395_s10 }
 0x2b7   : > { %vm2076_vm11 = vcmp.eq.s32.totalorder %v2063_v57, %v1725_v51  ;;  %vm2080_vm4 = vcmp.eq.s32.totalorder %v2063_v57, %v1729_v42  ;;  %vm2140_vm0 = vcmp.eq.s32.totalorder %v2127_v44, %v1725_v51  ;;  %vm2144_vm6 = vcmp.eq.s32.totalorder %v2127_v44, %v1729_v42  ;;  %v2651_v57 = vld [vmem:[%s6036_s12 + $0xa0] sm:$0xff] }
 0x2b8   : > { %v2100_v6 = vsel %vm2076_vm11, %v2087_v10, 0.0  ;;  %v2104_v61 = vsel %vm2080_vm4, %v2087_v10, 0.0  ;;  %v2164_v4 = vsel %vm2140_vm0, %v2151_v33, 0.0  ;;  %v2168_v29 = vsel %vm2144_vm6, %v2151_v33, 0.0 }
 0x2b9   : > { %v2108_v53 = vadd.f32 %v2100_v6, %v1996_v21  ;;  %v2112_v28 = vadd.f32 %v2104_v61, %v2000_v27  ;;  %v2260_v35 = vsel %vm2236_vm12, %v2247_v31, 0.0  ;;  %v2264_v11 = vsel %vm2240_vm2, %v2247_v31, 0.0  ;;  %v2634_v21 = vld [vmem:[%s6036_s12 + $0x18] sm:$0xff] }
 0x2ba   : > { %v2324_v58 = vsel %vm2300_vm5, %v2311_v2, 0.0  ;;  %v2328_v62 = vsel %vm2304_vm9, %v2311_v2, 0.0  ;;  %v2363_v52 = vrot.slane %v2356_v60, %v4335_v3  ;;  %v2427_v47 = vrot.slane %v2420_v34, %v4335_v3 }
 0x2bb   : > { %v2172_v32 = vadd.f32 %v2164_v4, %v2108_v53  ;;  %v2176_v43 = vadd.f32 %v2168_v29, %v2112_v28  ;;  %v1588_v17 = vmul.f32 %v3363_v1, %v5551_v37  ;;  %v1410_v36 = vsel %vm1354_vm7, %v1402_v30, %v5541_v25  ;;  %v2631_v25 = vld [vmem:[%s6036_s12] sm:$0xff]  ;;  %v2632_v30 = vld [vmem:[%s6036_s12 + $0x8] sm:$0xff]  ;;  %v2653_v28 = vld [vmem:[%s6036_s12 + $0xb0] sm:$0xff] }
 0x2bc   : > { %vm2376_vm10 = vcmp.eq.s32.totalorder %v2363_v52, %v1725_v51  ;;  %vm2380_vm3 = vcmp.eq.s32.totalorder %v2363_v52, %v1729_v42  ;;  %vm2440_vm8 = vcmp.eq.s32.totalorder %v2427_v47, %v1725_v51  ;;  %vm2444_vm1 = vcmp.eq.s32.totalorder %v2427_v47, %v1729_v42  ;;  %v2647_v42 = vld [vmem:[%s6036_s12 + $0x80] sm:$0xff]  ;;  %v2636_v53 = vld [vmem:[%s6036_s12 + $0x28] sm:$0xff] }
 0x2bd   : > { %v2268_v10 = vadd.f32 %v2260_v35, %v2172_v32  ;;  %v2272_v33 = vadd.f32 %v2264_v11, %v2176_v43  ;;  %v2400_v5 = vsel %vm2376_vm10, %v2387_v50, 0.0  ;;  %v2404_v31 = vsel %vm2380_vm3, %v2387_v50, 0.0  ;;  %v2648_v50 = vld [vmem:[%s6036_s12 + $0x88] sm:$0xff]  ;;  %v2635_v29 = vld [vmem:[%s6036_s12 + $0x20] sm:$0xff]  ;;  %v2654_v35 = vld [vmem:[%s6036_s12 + $0xb8] sm:$0xff] }
 0x2be   : > { %v2464_v49 = vsel %vm2440_vm8, %v2451_v41, 0.0  ;;  %v2468_v2 = vsel %vm2444_vm1, %v2451_v41, 0.0  ;;  %v1592_v8 = vadd.f32 0.19977711, %v1588_v17  ;;  %v1414_v1 = vadd.f32 3.1415927, %v1410_v36 }
 0x2bf   : > { %v2332_v38 = vadd.f32 %v2324_v58, %v2268_v10  ;;  %v2336_v63 = vadd.f32 %v2328_v62, %v2272_v33  ;;  %v3596_v39 = vpack.c.bf16 %v2648_v50, %v2647_v42  ;;  %vm2481_vm7 = vcmask 130048   ;;  %v2637_v43 = vld [vmem:[%s6036_s12 + $0x30] sm:$0xff]  ;;  %v2638_v41 = vld [vmem:[%s6036_s12 + $0x38] sm:$0xff]  ;;  %v2655_v33 = vld [vmem:[%s6036_s12 + $0xc0] sm:$0xff] }
 0x2c0   : > { %v1596_v18 = vmul.f32 %v1592_v8, %v5551_v37  ;;  %v1680_v34 = vmul.f32 0.63661975, %v1414_v1  ;;  %v3598_v15 = vpack.c.bf16 %v2632_v30, %v2631_v25  ;;  %v3600_v0 = vpack.c.bf16 %v2650_v19, %v2649_v48  ;;  %v2640_v36 = vld [vmem:[%s6036_s12 + $0x48] sm:$0xff]  ;;  %v2659_v30 = vld [vmem:[%s6036_s12 + $0xe0] sm:$0xff] }
 0x2c1   : > { %v2408_v23 = vadd.f32 %v2400_v5, %v2332_v38  ;;  %v2412_v51 = vadd.f32 %v2404_v31, %v2336_v63  ;;  %v3602_v61 = vpack.c.bf16 %v2634_v21, %v2633_v13  ;;  %vm1648_vm13 = vcmp.gt.f32.partialorder %v5441_v12, 0.0  ;;  %v2639_v63 = vld [vmem:[%s6036_s12 + $0x40] sm:$0xff] }
 0x2c2   : > { %v3367_v24 = vadd.f32 -0.3333295, %v1596_v18  ;;  %v1691_v6 = vfloor.f32 %v1680_v34  ;;  %v3606_v32 = vpack.c.bf16 %v2636_v53, %v2635_v29  ;;  %vm1632_vm12 = vcmp.ge.f32.partialorder %v5441_v12, 0.0  ;;  %v2657_v18 = vld [vmem:[%s6036_s12 + $0xd0] sm:$0xff]  ;;  %v2643_v21 = vld [vmem:[%s6036_s12 + $0x60] sm:$0xff] }
 0x2c3   : > { %v2472_v56 = vadd.f32 %v2464_v49, %v2408_v23  ;;  %v2476_v54 = vadd.f32 %v2468_v2, %v2412_v51  ;;  %v3610_v2 = vpack.c.bf16 %v2638_v41, %v2637_v43  ;;  %v2658_v23 = vld [vmem:[%s6036_s12 + $0xd8] sm:$0xff]  ;;  %v3614_v1 = vpack.c.bf16 %v2640_v36, %v2639_v63  ;;  %v5707_v63 = vld [vmem:[#allocation7 + $0x30] sm:$0xff] }
 0x2c4   : > { %v1604_v7 = vmul.f32 %v3367_v24, %v5551_v37  ;;  %v1568_v37 = vsel %vm5530_vm15, 0.7853982, %v6022_v46  ;;  %vm1652_vm15 = vcmp.lt.f32.partialorder %v5441_v12, 0.0  ;;  %v3666_v62 = vtrunc.f32 %v1691_v6  ;;  %v2656_v12 = vld [vmem:[%s6036_s12 + $0xc8] sm:$0xff] }
 0x2c5   : > { %v3590_v59 = vpack.c.bf16 %v2476_v54, %v2472_v56  ;;  %v1572_v27 = vsel %vm1516_vm14, 1.5707964, %v1568_v37  ;;  %vm1620_vm14 = vcmp.lt.f32.partialorder %v5476_v16, 0.0  ;;  %v1656_v58 = vsel %vm1652_vm15, -1.5707964, %v6022_v46  ;;  %v6038_v46 = vld [vmem:[#allocation24_spill] sm:$0xff] }
 0x2c6   : > { %v1608_v60 = vmul.f32 %v1604_v7, %v5546_v22  ;;  %v3608_v16 = vpack.c.bf16 %v2654_v35, %v2653_v28  ;;  %v1660_v10 = vsel %vm1648_vm13, 1.5707964, %v1656_v58  ;;  %vm1668_vm2 = vcmp.lt.f32.partialorder %v6038_v46, 0.0  ;;  %v2641_v7 = vld [vmem:[%s6036_s12 + $0x50] sm:$0xff] }
 0x2c7   : > { %3591 = vmatpush1.bf16.msra.mxu0 %v3590_v59  ;;  %vm1664_vm5 = vcmp.gt.f32.partialorder %v6038_v46, 0.0  ;;  %v3667_v31 = vcvt.f32.s32 %v3666_v62  ;;  %v3612_v38 = vpack.c.bf16 %v2656_v12, %v2655_v33  ;;  %v1700_v50 = vsub.f32 %v1680_v34, %v1691_v6  ;;  %v2660_v59 = vld [vmem:[%s6036_s12 + $0xe8] sm:$0xff] }
 0x2c8   : > { %v1612_v9 = vadd.f32 %v1608_v60, %v5546_v22  ;;  %3597 = vmatprep.subr.bf16.mxu0 %v3596_v39  ;;  %v2652_v22 = vld [vmem:[%s6036_s12 + $0xa8] sm:$0xff]  ;;  %v3616_v54 = vpack.c.bf16 %v2658_v23, %v2657_v18  ;;  %v2642_v39 = vld [vmem:[%s6036_s12 + $0x58] sm:$0xff]  ;;  %v3620_v13 = vpack.c.bf16 %v2660_v59, %v2659_v30 }
 0x2c9   : > { %v3604_v55 = vpack.c.bf16 %v2652_v22, %v2651_v57  ;;  %v2182_v42 = vadd.s32 1, %v3667_v31  ;;  %vm1735_vm9 = vcmp.ge.s32.totalorder %v3667_v31, 4  ;;  %v3375_v25 = vadd.s32 4294967292, %v3667_v31 }
 0x2ca   : > { %v1616_v44 = vadd.f32 %v1612_v9, %v1572_v27  ;;  %3381 = vmatmul.mubr.msk.f32.vlgmr.msra.gmra.mrb[6].mxu0 %vm2481_vm7, %v5606_v26  ;;  %v1718_v34 = vsub.f32 1.0, %v1700_v50  ;;  %v2644_v27 = vld [vmem:[%s6036_s12 + $0x68] sm:$0xff] }
 0x2cb   : > { %3599 = vmatpush3.bf16.msra.mxu0 %v3598_v15  ;;  %v3379_v60 = vadd.s32 4294967292, %v2182_v42  ;;  %vm2186_vm11 = vcmp.ge.s32.totalorder %v2182_v42, 4  ;;  %v3618_v15 = vpack.c.bf16 %v2642_v39, %v2641_v7  ;;  %v1743_v57 = vsel %vm1735_vm9, %v3375_v25, %v3667_v31 }
 0x2cc   : > { %v1624_v4 = vsub.f32 0.0, %v1616_v44  ;;  %3601 = vmatprep.subr.bf16.mxu0 %v3600_v0  ;;  %v3622_v35 = vpack.c.bf16 %v2644_v27, %v2643_v21 }
 0x2ce   : > { %v1628_v11 = vsel %vm1620_vm14, %v1624_v4, %v1616_v44  ;;  %v6039_v44 = vld [vmem:[#allocation18_spill] sm:$0xff] }
 0x2cf   : > { %v1636_v52 = vadd.f32 3.1415927, %v1628_v11  ;;  %v3371_v47 = vadd.f32 -3.1415927, %v1628_v11  ;;  %3603 = vmatpush3.bf16.msra.mxu0 %v3602_v61  ;;  %v5689_v6 = vrot.slane %v4852_v20, %v6039_v44  ;;  %v5693_v61 = vrot.slane %v4840_v14, %v6039_v44 }
 0x2d0   : > { %3605 = vmatprep.subr.bf16.mxu0 %v3604_v55  ;;  %v2194_v55 = vsel %vm2186_vm11, %v3379_v60, %v2182_v42  ;;  %v1833_v20 = vrot.slane %v4854_v40, %v6039_v44 }
 0x2d1   : > { %v1644_v17 = vsel %vm1632_vm12, %v1636_v52, %v3371_v47  ;;  %v2206_v14 = vmul.u32 2, %v2194_v55  ;;  %v1939_v47 = vrot.slane %v4860_v45, %v6039_v44 }
 0x2d2   : > { %v1672_v5 = vsel %vm1668_vm2, %v1644_v17, %v1660_v10 }
 0x2d3   : > { %v1676_v49 = vsel %vm1664_vm5, %v1628_v11, %v1672_v5  ;;  %3607 = vmatpush3.bf16.msra.mxu0 %v3606_v32  ;;  %v1808_v11 = vmul.u32 2, %v1743_v57 }
 0x2d4   : > { %v1684_v8 = vmul.f32 0.63661975, %v1676_v49  ;;  %3609 = vmatprep.subr.bf16.mxu0 %v3608_v16 }
 0x2d6   : > { %v1695_v51 = vfloor.f32 %v1684_v8 }
 0x2d7   : > { %3611 = vmatpush3.bf16.msra.mxu0 %v3610_v2 }
 0x2d8   : > { %v1704_v24 = vsub.f32 %v1684_v8, %v1695_v51  ;;  %v3674_v56 = vtrunc.f32 %v1695_v51  ;;  %3613 = vmatprep.subr.bf16.mxu0 %v3612_v38  ;;  %v5705_v38 = vld [vmem:[#allocation7 + $0x10] sm:$0xff] }
 0x2da   : > { %v3675_v48 = vcvt.f32.s32 %v3674_v56  ;;  %v1722_v19 = vsub.f32 1.0, %v1704_v24  ;;  %v2030_v37 = vrot.slane %v1704_v24, 2 }
 0x2db   : > { %3615 = vmatpush3.bf16.msra.mxu0 %v3614_v1 }
 0x2dc   : > { %vm1749_vm4 = vcmp.gt.s32.totalorder %v3675_v48, 0  ;;  %v1767_v9 = vrot.slane %v1722_v19, 2  ;;  %v2006_v0 = vadd.s32 1, %v3675_v48  ;;  %3617 = vmatprep.subr.bf16.mxu0 %v3616_v54  ;;  %v2038_v4 = vmul.f32 %v2030_v37, %v1718_v34 }
 0x2dd   : > { %v1750_v22 = vsel %vm1749_vm4, %v3675_v48, 0  ;;  %v2342_v5 = vmul.f32 %v2030_v37, %v1700_v50 }
 0x2de   : > { %vm1757_vm0 = vcmp.lt.s32.totalorder %v1750_v22, 1  ;;  %vm2012_vm6 = vcmp.gt.s32.totalorder %v2006_v0, 0  ;;  %v1775_v53 = vmul.f32 %v1767_v9, %v1718_v34  ;;  %v2042_v32 = vmul.f32 %v2038_v4, %v5689_v6 }
 0x2df   : > { %v1758_v29 = vsel %vm1757_vm0, %v1750_v22, 1  ;;  %v2013_v28 = vsel %vm2012_vm6, %v2006_v0, 0  ;;  %3619 = vmatpush3.bf16.msra.mxu0 %v3618_v15  ;;  %v2118_v41 = vmul.f32 %v2038_v4, %v5693_v61  ;;  %v2198_v17 = vmul.f32 %v1767_v9, %v1700_v50 }
 0x2e0   : > { %v1812_v58 = vrot.slane %v1758_v29, 2  ;;  %vm2020_vm10 = vcmp.lt.s32.totalorder %v2013_v28, 1  ;;  %3621 = vmatprep.subr.bf16.mxu0 %v3620_v13  ;;  %v1804_v43 = vmul.f32 %v5689_v6, %v1775_v53  ;;  %v1926_v40 = vmul.f32 %v5693_v61, %v1775_v53 }
 0x2e1   : > { %v2021_v62 = vsel %vm2020_vm10, %v2013_v28, 1  ;;  %v2095_v8 = vrot.slane %v2042_v32, %v4335_v3  ;;  %v2159_v18 = vrot.slane %v2118_v41, %v4335_v3  ;;  %v2202_v23 = vmul.f32 %v2198_v17, %v5689_v6 }
 0x2e2   : > { %v1816_v52 = vadd.s32 %v1812_v58, %v1808_v11  ;;  %v2046_v16 = vrot.slane %v2021_v62, 2  ;;  %v2210_v10 = vadd.s32 %v2206_v14, %v1812_v58  ;;  %v1877_v36 = vrot.slane %v1804_v43, %v4335_v3 }
 0x2e3   : > { %3623 = vmatpush3.bf16.msra.mxu0 %v3622_v35  ;;  %v1983_v56 = vrot.slane %v1926_v40, %v4335_v3  ;;  %v2255_v15 = vrot.slane %v2202_v23, %v4335_v3  ;;  %v2278_v57 = vmul.f32 %v2198_v17, %v5693_v61  ;;  %v2346_v22 = vmul.f32 %v2342_v5, %v5689_v6  ;;  %v2679_v40 = vld [vmem:[%s6036_s12 + $0x180] sm:$0xff] }
 0x2e4   : > { %v1820_v46 = vmul.u32 2, %v1816_v52  ;;  %v2050_v33 = vadd.s32 %v2046_v16, %v1808_v11  ;;  %v2214_v12 = vmul.u32 2, %v2210_v10  ;;  %v2350_v31 = vadd.s32 %v2206_v14, %v2046_v16 }
 0x2e5   : > { %v2418_v62 = vmul.f32 %v2342_v5, %v5693_v61  ;;  %v2395_v16 = vrot.slane %v2346_v22, %v4335_v3  ;;  %v2674_v22 = vld [vmem:[%s6036_s12 + $0x158] sm:$0xff] }
 0x2e6   : > { %v1840_v49 = vadd.s32 %v1833_v20, %v1820_v46  ;;  %v1946_v2 = vadd.s32 %v1939_v47, %v1820_v46  ;;  %v2054_v45 = vmul.u32 2, %v2050_v33  ;;  %v2218_v51 = vadd.s32 %v2214_v12, %v1833_v20 }
 0x2e7   : > { %v2282_v7 = vadd.s32 %v2214_v12, %v1939_v47  ;;  %v2354_v39 = vmul.u32 2, %v2350_v31  ;;  %v2459_v61 = vrot.slane %v2418_v62, %v4335_v3  ;;  %v2680_v12 = vld [vmem:[%s6036_s12 + $0x188] sm:$0xff]  ;;  %v2694_v62 = vld [vmem:[%s6036_s12 + $0x1f8] sm:$0xff] }
 0x2e8   : > { %v1853_v42 = vrot.slane %v1840_v49, %v4335_v3  ;;  %v1959_v50 = vrot.slane %v1946_v2, %v4335_v3  ;;  %v2058_v1 = vadd.s32 %v2054_v45, %v1833_v20  ;;  %v2122_v24 = vadd.s32 %v2054_v45, %v1939_v47 }
 0x2e9   : > { %v2231_v54 = vrot.slane %v2218_v51, %v4335_v3  ;;  %v2295_v9 = vrot.slane %v2282_v7, %v4335_v3  ;;  %v2358_v0 = vadd.s32 %v2354_v39, %v1833_v20  ;;  %v2422_v13 = vadd.s32 %v2354_v39, %v1939_v47  ;;  %v2665_v51 = vld [vmem:[%s6036_s12 + $0x110] sm:$0xff]  ;;  %v2668_v7 = vld [vmem:[%s6036_s12 + $0x128] sm:$0xff] }
 0x2ea   : > { %vm1860_vm3 = vcmp.eq.s32.totalorder %v1853_v42, %v5705_v38  ;;  %vm1864_vm8 = vcmp.eq.s32.totalorder %v1853_v42, %v5707_v63  ;;  %vm1966_vm1 = vcmp.eq.s32.totalorder %v1959_v50, %v5705_v38  ;;  %vm1970_vm15 = vcmp.eq.s32.totalorder %v1959_v50, %v5707_v63  ;;  %v2666_v42 = vld [vmem:[%s6036_s12 + $0x118] sm:$0xff]  ;;  %v2683_v50 = vld [vmem:[%s6036_s12 + $0x1a0] sm:$0xff]  ;;  %v2685_v39 = vld [vmem:[%s6036_s12 + $0x1b0] sm:$0xff] }
 0x2eb   : > { %v1884_v25 = vsel %vm1860_vm3, %v1877_v36, 0.0  ;;  %v1888_v30 = vsel %vm1864_vm8, %v1877_v36, 0.0  ;;  %v1990_v59 = vsel %vm1966_vm1, %v1983_v56, 0.0  ;;  %v1994_v48 = vsel %vm1970_vm15, %v1983_v56, 0.0  ;;  %v2682_v36 = vld [vmem:[%s6036_s12 + $0x198] sm:$0xff] }
 0x2ec   : > { %v1998_v19 = vadd.f32 %v1990_v59, %v1884_v25  ;;  %v2002_v37 = vadd.f32 %v1994_v48, %v1888_v30  ;;  %v2071_v60 = vrot.slane %v2058_v1, %v4335_v3  ;;  %v2135_v34 = vrot.slane %v2122_v24, %v4335_v3  ;;  %v2684_v1 = vld [vmem:[%s6036_s12 + $0x1a8] sm:$0xff]  ;;  %v2669_v59 = vld [vmem:[%s6036_s12 + $0x130] sm:$0xff]  ;;  %v2670_v48 = vld [vmem:[%s6036_s12 + $0x138] sm:$0xff] }
 0x2ed   : > { %vm2238_vm5 = vcmp.eq.s32.totalorder %v2231_v54, %v5705_v38  ;;  %vm2242_vm9 = vcmp.eq.s32.totalorder %v2231_v54, %v5707_v63  ;;  %vm2302_vm11 = vcmp.eq.s32.totalorder %v2295_v9, %v5705_v38  ;;  %v2371_v53 = vrot.slane %v2358_v0, %v4335_v3  ;;  %v2667_v54 = vld [vmem:[%s6036_s12 + $0x120] sm:$0xff]  ;;  %v2689_v0 = vld [vmem:[%s6036_s12 + $0x1d0] sm:$0xff] }
 0x2ee   : > { %vm2078_vm14 = vcmp.eq.s32.totalorder %v2071_v60, %v5705_v38  ;;  %vm2082_vm13 = vcmp.eq.s32.totalorder %v2071_v60, %v5707_v63  ;;  %vm2142_vm12 = vcmp.eq.s32.totalorder %v2135_v34, %v5705_v38  ;;  %vm2146_vm2 = vcmp.eq.s32.totalorder %v2135_v34, %v5707_v63 }
 0x2ef   : > { %v2102_v21 = vsel %vm2078_vm14, %v2095_v8, 0.0  ;;  %v2106_v27 = vsel %vm2082_vm13, %v2095_v8, 0.0  ;;  %v2166_v55 = vsel %vm2142_vm12, %v2159_v18, 0.0  ;;  %v2170_v29 = vsel %vm2146_vm2, %v2159_v18, 0.0  ;;  %v2663_v8 = vld [vmem:[%s6036_s12 + $0x100] sm:$0xff] }
 0x2f0   : > { %v2110_v44 = vadd.f32 %v2102_v21, %v1998_v19  ;;  %v2114_v4 = vadd.f32 %v2106_v27, %v2002_v37  ;;  %vm2306_vm4 = vcmp.eq.s32.totalorder %v2295_v9, %v5707_v63  ;;  %v2435_v11 = vrot.slane %v2422_v13, %v4335_v3  ;;  %v2687_v19 = vld [vmem:[%s6036_s12 + $0x1c0] sm:$0xff]  ;;  %v2688_v37 = vld [vmem:[%s6036_s12 + $0x1c8] sm:$0xff]  ;;  %v2690_v13 = vld [vmem:[%s6036_s12 + $0x1d8] sm:$0xff] }
 0x2f1   : > { %v2262_v58 = vsel %vm2238_vm5, %v2255_v15, 0.0  ;;  %v2266_v6 = vsel %vm2242_vm9, %v2255_v15, 0.0  ;;  %v2319_v20 = vrot.slane %v2278_v57, %v4335_v3  ;;  %vm2378_vm0 = vcmp.eq.s32.totalorder %v2371_v53, %v5705_v38  ;;  %v2664_v3 = vld [vmem:[%s6036_s12 + $0x108] sm:$0xff]  ;;  %v2671_v15 = vld [vmem:[%s6036_s12 + $0x140] sm:$0xff]  ;;  %v2673_v57 = vld [vmem:[%s6036_s12 + $0x150] sm:$0xff] }
 0x2f2   : > { %v2174_v28 = vadd.f32 %v2166_v55, %v2110_v44  ;;  %v2178_v35 = vadd.f32 %v2170_v29, %v2114_v4  ;;  %vm2382_vm6 = vcmp.eq.s32.totalorder %v2371_v53, %v5707_v63  ;;  %vm2442_vm10 = vcmp.eq.s32.totalorder %v2435_v11, %v5705_v38  ;;  %v2672_v9 = vld [vmem:[%s6036_s12 + $0x148] sm:$0xff]  ;;  %v2691_v44 = vld [vmem:[%s6036_s12 + $0x1e0] sm:$0xff] }
 0x2f3   : > { %v2326_v47 = vsel %vm2302_vm11, %v2319_v20, 0.0  ;;  %v2330_v32 = vsel %vm2306_vm4, %v2319_v20, 0.0  ;;  %vm2446_vm3 = vcmp.eq.s32.totalorder %v2435_v11, %v5707_v63  ;;  %v2402_v17 = vsel %vm2378_vm0, %v2395_v16, 0.0  ;;  %v2681_v63 = vld [vmem:[%s6036_s12 + $0x190] sm:$0xff]  ;;  %v2692_v4 = vld [vmem:[%s6036_s12 + $0x1e8] sm:$0xff]  ;;  %v2675_v53 = vld [vmem:[%s6036_s12 + $0x160] sm:$0xff] }
 0x2f4   : > { %v2270_v14 = vadd.f32 %v2262_v58, %v2174_v28  ;;  %v2274_v52 = vadd.f32 %v2266_v6, %v2178_v35  ;;  %v2406_v10 = vsel %vm2382_vm6, %v2395_v16, 0.0  ;;  %v2466_v5 = vsel %vm2442_vm10, %v2459_v61, 0.0  ;;  %v2676_v28 = vld [vmem:[%s6036_s12 + $0x168] sm:$0xff]  ;;  %v2661_v11 = vld [vmem:[%s6036_s12 + $0xf0] sm:$0xff]  ;;  %v2662_v58 = vld [vmem:[%s6036_s12 + $0xf8] sm:$0xff] }
 0x2f5   : > { %v2470_v31 = vsel %vm2446_vm3, %v2459_v61, 0.0  ;;  %v3628_v45 = vpack.c.bf16 %v2680_v12, %v2679_v40  ;;  %v3630_v18 = vpack.c.bf16 %v2664_v3, %v2663_v8  ;;  %v3632_v23 = vpack.c.bf16 %v2682_v36, %v2681_v63  ;;  %v2693_v6 = vld [vmem:[%s6036_s12 + $0x1f0] sm:$0xff] }
 0x2f6   : > { %v2334_v43 = vadd.f32 %v2326_v47, %v2270_v14  ;;  %v2338_v41 = vadd.f32 %v2330_v32, %v2274_v52  ;;  %v3634_v24 = vpack.c.bf16 %v2666_v42, %v2665_v51  ;;  %v3636_v56 = vpack.c.bf16 %v2684_v1, %v2683_v50  ;;  %v2645_v14 = vld [vmem:[%s6036_s12 + $0x70] sm:$0xff]  ;;  %v2646_v52 = vld [vmem:[%s6036_s12 + $0x78] sm:$0xff]  ;;  %v2867_v51 = vld [vmem:[%s6044_s20] sm:$0xff]  ;;  %s3937_s20 = sshll.u32 %s4049_s25, 4  ;;  %s3938_s20 = int_to_ptr.vmem [resolvable:$false] %s3937_s20 }
 0x2f7   : > { %v3638_v25 = vpack.c.bf16 %v2668_v7, %v2667_v54  ;;  %v3642_v60 = vpack.c.bf16 %v2670_v48, %v2669_v59  ;;  %v3644_v34 = vpack.c.bf16 %v2688_v37, %v2687_v19  ;;  %v3646_v21 = vpack.c.bf16 %v2672_v9, %v2671_v15  ;;  %v2677_v16 = vld [vmem:[%s6036_s12 + $0x170] sm:$0xff]  ;;  %s3939_s7 = scalar_lea.vmem %s3938_s20, 2048  ;;  %p3940_p9 = scmp.lt.s32.totalorder %s5880_s11, %s3938_s20 }
 0x2f8   : > { %v2410_v46 = vadd.f32 %v2402_v17, %v2334_v43  ;;  %v2414_v33 = vadd.f32 %v2406_v10, %v2338_v41  ;;  %v3648_v27 = vpack.c.bf16 %v2690_v13, %v2689_v0  ;;  %v3650_v55 = vpack.c.bf16 %v2674_v22, %v2673_v57  ;;  %v2678_v43 = vld [vmem:[%s6036_s12 + $0x178] sm:$0xff]  ;;  %v6040_v10 = vld [vmem:[#allocation21_spill] sm:$0xff]  ;;  %p3941_p6 = scmp.lt.s32.totalorder %s3939_s7, %s3933_s13 }
 0x2f9   : > { %v3652_v29 = vpack.c.bf16 %v2692_v4, %v2691_v44  ;;  %v3654_v35 = vpack.c.bf16 %v2676_v28, %v2675_v53  ;;  %v3624_v20 = vpack.c.bf16 %v2662_v58, %v2661_v11  ;;  %v3656_v47 = vpack.c.bf16 %v2694_v62, %v2693_v6 }
 0x2fa   : > { %v2474_v49 = vadd.f32 %v2466_v5, %v2410_v46  ;;  %v2478_v2 = vadd.f32 %v2470_v31, %v2414_v33  ;;  %v3626_v32 = vpack.c.bf16 %v2646_v52, %v2645_v14  ;;  %v3658_v41 = vpack.c.bf16 %v2678_v43, %v2677_v16  ;;  %v6041_v33 = vld [vmem:[#allocation22_spill] sm:$0xff]  ;;  %v6042_v5 = vld [vmem:[#allocation19_spill] sm:$0xff]  ;;  %p3942_p10 = por %p3941_p6, %p3940_p9 }
 0x2fb   : > { %3625 = vmatprep.subr.bf16.mxu0 %v3624_v20 }
 0x2fc   : > { %v3594_v38 = vpack.c.bf16 %v2478_v2, %v2474_v49  ;;  %3627 = vmatpush3.bf16.msra.mxu0 %v3626_v32  ;;  %v6043_v2 = vld [vmem:[#allocation20_spill] sm:$0xff]  ;;  %p3943_p12 = pnand %p3942_p10, %p3936_p4 }
 0x2fd   : > { %3478 = vmatprep.subr.mxu0 %v2867_v51 }
 0x2fe   : > { %3595 = vmatpush1.bf16.msra.mxu1 %v3594_v38 }
 0x2ff   : > { %3629 = vmatprep.subr.bf16.mxu1 %v3628_v45 }
 0x301   : > { %3382 = vmatmul.mubr.msk.f32.vlgmr.msra.gmra.mrb[6].mxu1 %vm2481_vm7, %v5606_v26  ;;  %v2686_v26 = vld [vmem:[%s6036_s12 + $0x1b8] sm:$0xff]  ;;  %vm2875_vm7 = vcmask 64512  }
 0x302   : > { %3631 = vmatpush3.bf16.msra.mxu1 %v3630_v18  ;;  %v3640_v30 = vpack.c.bf16 %v2686_v26, %v2685_v39  ;;  %v3383_v26 = vld [vmem:[%s6045_s26] ss:$0 sm:$0xff] }
 0x303   : > { %3633 = vmatprep.subr.bf16.mxu1 %v3632_v23 }
 0x306   : > { %3635 = vmatpush3.bf16.msra.mxu1 %v3634_v24 }
 0x307   : > { %3637 = vmatprep.subr.bf16.mxu1 %v3636_v56 }
 0x30a   : > { %3639 = vmatpush3.bf16.msra.mxu1 %v3638_v25 }
 0x30b   : > { %3641 = vmatprep.subr.bf16.mxu1 %v3640_v30 }
 0x30e   : > { %3643 = vmatpush3.bf16.msra.mxu1 %v3642_v60 }
 0x30f   : > { %3645 = vmatprep.subr.bf16.mxu1 %v3644_v34 }
 0x312   : > { %3647 = vmatpush3.bf16.msra.mxu1 %v3646_v21 }
 0x313   : > { %3649 = vmatprep.subr.bf16.mxu1 %v3648_v27 }
 0x316   : > { %3651 = vmatpush3.bf16.msra.mxu1 %v3650_v55 }
 0x317   : > { %3653 = vmatprep.subr.bf16.mxu1 %v3652_v29 }
 0x31a   : > { %3655 = vmatpush3.bf16.msra.mxu1 %v3654_v35 }
 0x31b   : > { %3657 = vmatprep.subr.bf16.mxu1 %v3656_v47 }
 0x31e   : > { %3659 = vmatpush3.bf16.msra.mxu1 %v3658_v41 }
 0x31f   : > { %3660 = vmatprep.subr.mxu1 %v2867_v51 }
 0x39d   : > { %v2551_v17 = vpop.f32.mrb[6].mxu0 }
 0x39e   : > { %v2627_v61 = vmul.f32 %v2551_v17, %v6040_v10  ;;  %v2553_v46 = vpop.f32.mrb[7].mxu0 }
 0x39f   : > { %v2628_v40 = vmul.f32 %v2553_v46, %v6041_v33 }
 0x3a1   : > { %2759 = vmatprep.mubr.f32.mxu0 %v2628_v40 }
 0x3a2   : > { %2760 = vmatmul.mubr.f32.vlgmr.msra.gmra.mrb[8].mxu0 %v2627_v61 }
 0x3a3   : > { %3479 = vmatpush3.msra.mxu0 %v2867_v51 }
 0x3d4   : > { %v2622_v12 = vpop.f32.mrb[6].mxu1 }
 0x3d5   : > { %v2629_v31 = vmul.f32 %v2622_v12, %v6042_v5  ;;  %v2624_v49 = vpop.f32.mrb[7].mxu1 }
 0x3d6   : > { %v2630_v45 = vmul.f32 %v2624_v49, %v6043_v2 }
 0x3d8   : > { %2829 = vmatprep.mubr.f32.mxu1 %v2630_v45 }
 0x3d9   : > { %2830 = vmatmul.mubr.f32.vlgmr.msra.gmra.mrb[8].mxu1 %v2629_v31 }
 0x3da   : > { %3661 = vmatpush3.msra.mxu1 %v2867_v51 }
 0x475   : > { %v3431_v8 = vpop.f32.mrb[8].mxu0 }
 0x476   : > { %v3432_v3 = vpop.f32.mrb[9].mxu0 }
 0x477   : > { %v3433_v38 = vadd.f32 %v3432_v3, %v3431_v8 }
 0x4ac   : > { %v3466_v63 = vpop.f32.mrb[8].mxu1 }
 0x4ad   : > { %v3467_v36 = vpop.f32.mrb[9].mxu1 }
 0x4ae   : > { %v3468_v18 = vadd.f32 %v3467_v36, %v3466_v63 }
 0x4b0   : > { %v2832_v23 = vadd.f32 %v3468_v18, %v3433_v38 }
 0x4b2   : > { %2835 = vxpose.xlu1.b32.start.end [1/1] (short) (narrow) %v2832_v23, 64 }
 0x532   : > { %v2851_v42 = vpop.trf.xlu1 }
 0x533   : > { %3480 = vmatprep.mubr.msk.f32.mxu0 %vm2875_vm7, %v2851_v42 }
 0x536   : > { %v2852_v50 = vpop.trf.xlu1 }
 0x537   : > { %3481 = vmatmul.mubr.msk.f32.vlgmr.msra.gmra.mrb[10].mxu0 %vm2875_vm7, %v2852_v50 }
 0x53a   : > { %v2853_v1 = vpop.trf.xlu1 }
 0x53b   : > { %3483 = vmatprep.mubr.msk.f32.mxu0 %vm2875_vm7, %v2853_v1 }
 0x53e   : > { %v2854_v24 = vpop.trf.xlu1 }
 0x53f   : > { %3484 = vmatmul.mubr.msk.f32.gmra.mrb[12].mxu0 %vm2875_vm7, %v2854_v24 }
 0x542   : > { %v2855_v56 = vpop.trf.xlu1 }
 0x543   : > { %3486 = vmatprep.mubr.msk.f32.mxu1 %vm2875_vm7, %v2855_v56 }
 0x546   : > { %v2856_v54 = vpop.trf.xlu1 }
 0x547   : > { %3487 = vmatmul.mubr.msk.f32.vlgmr.msra.gmra.mrb[10].mxu1 %vm2875_vm7, %v2856_v54 }
 0x54a   : > { %v2857_v7 = vpop.trf.xlu1 }
 0x54b   : > { %3489 = vmatprep.mubr.msk.f32.mxu1 %vm2875_vm7, %v2857_v7 }
 0x54e   : > { %v2858_v39 = vpop.trf.xlu1 }
 0x54f   : > { %3490 = vmatmul.mubr.msk.f32.gmra.mrb[12].mxu1 %vm2875_vm7, %v2858_v39 }
 0x60a   : > { %v3482_v25 = vpop.f32.mrb[10].mxu0 }
 0x60b   : > { %v2972_v30 = vadd.f32 %v3482_v25, %v3383_v26  ;;  %v2966_v59 = vpop.f32.mrb[11].mxu0 }
 0x60c   : > { %v2967_v48 = vadd.f32 %v3383_v26, %v2966_v59 }
 0x60d   : > { %3006 = vst [vmem:[%s517_s27 + $0x8] sm:$0xff] %v2972_v30 }
 0x60e   : > { %3005 = vst [vmem:[%s517_s27] sm:$0xff] %v2967_v48 }
 0x612   : > { %v3485_v19 = vpop.f32.mrb[12].mxu0 }
 0x613   : > { %v2982_v37 = vadd.f32 %v3485_v19, %v3383_v26  ;;  %v2976_v60 = vpop.f32.mrb[13].mxu0 }
 0x614   : > { %v2977_v34 = vadd.f32 %v3383_v26, %v2976_v60 }
 0x615   : > { %3008 = vst [vmem:[%s517_s27 + $0x18] sm:$0xff] %v2982_v37 }
 0x616   : > { %3007 = vst [vmem:[%s517_s27 + $0x10] sm:$0xff] %v2977_v34 }
 0x61a   : > { %v3488_v15 = vpop.f32.mrb[10].mxu1 }
 0x61b   : > { %v2992_v9 = vadd.f32 %v3488_v15, %v3383_v26  ;;  %v2986_v0 = vpop.f32.mrb[11].mxu1 }
 0x61c   : > { %v2987_v13 = vadd.f32 %v3383_v26, %v2986_v0 }
 0x61d   : > { %3010 = vst [vmem:[%s517_s27 + $0x28] sm:$0xff] %v2992_v9 }
 0x61e   : > { %3009 = vst [vmem:[%s517_s27 + $0x20] sm:$0xff] %v2987_v13 }
 0x622   : > { %v3491_v21 = vpop.f32.mrb[12].mxu1 }
 0x623   : > { %v3002_v27 = vadd.f32 %v3491_v21, %v3383_v26  ;;  %v2996_v57 = vpop.f32.mrb[13].mxu1 }
 0x624   : > { %v2997_v22 = vadd.f32 %v3383_v26, %v2996_v57 }
 0x625   : > { %3012 = vst [vmem:[%s517_s27 + $0x38] sm:$0xff] %v3002_v27 }
 0x626   : > { %3011 = vst [vmem:[%s517_s27 + $0x30] sm:$0xff] %v2997_v22 }
 0x627   : > { %3946 = shalt.err (!%p3943_p12)
}
 0x628   : > { %s3947_s30 = scalar_lea.hbm %s5878_s6, 1024  ;;  %s3951_s27 = scalar_lea.hbm %s6047_s14, 4096 }
 0x629   : > { %p3948_p8 = scmp.ne.s32.totalorder %s5878_s6, %s3947_s30  ;;  %p3952_p0 = scmp.lt.u32.totalorder %s5878_s6, %s6047_s14 }
 0x62a   : > { %p3953_p13 = scmp.lt.u32.totalorder %s3951_s27, %s3947_s30  ;;  %p3955_p7 = scmp.lt.u32.totalorder %s3947_s30, %s5878_s6 }
 0x62b   : > { %p3949_p5 = pnand %p3948_p8, %p6048_p1 }
 0x62c   : > { %p3954_p3 = por %p3953_p13, %p3952_p0 }
 0x62d   : > { %p3950_p11 = pneg %p3949_p5 }
 0x62e   : > { %p3956_p2 = por %p3955_p7, %p3954_p3 }
 0x630   : > { %p3957_p4 = pnand %p3956_p2, %p3950_p11 }
 0x632   : > { %3960 = shalt.err (!%p3957_p4)
}
 0x633   : > { %s4050_s10 = smov 128   ;;  %s4051_s29 = smov 8  }
 0x634   : > { %3688 = dma.vmem_to_hbm [thread:$0]  (%p6048_p1), %s5880_s11, 1024, %s5878_s6, %s3014_s21, %s4050_s10, %s4050_s10, %s4051_s29  }
 0x635 PF: > { %s6049_s16 = sld [smem:[#allocation13_spill]]  ;;  %s6050_s13 = sld [smem:[#allocation14_spill]] }
 0x636   : > { %p3708_p9 = scmp.ge.s32.totalorder %s4039_s24, 2 }
 0x63b   : > { %s3044_s25 = sand.u32 1, %s6049_s16   ;;  %p6051_p6 = scmp.ne.s32.totalorder %s6050_s13, 0 }
 0x63c   : > { %s3045_s20 = scalar_lea.sflag [#allocation4], %s3044_s25 }
 0x63d   : > { %p3702_p10 = pnand %p3708_p9, %p6051_p6 }
 0x63f   : > { %4006 = dma.done.wait (!%p3702_p10), %s3045_s20, 1024  }
 0x640   : > { %4008 = vsyncadd (!%p3702_p10), %s3045_s20, 4294966272  ;;  %s30_s24 = sadd.s32 1, %s4039_s24   ;;  %s6052_s0 = sld [smem:[#allocation15_spill]] }
 0x641   : > { %p27_p12 = scmp.ge.s32.totalorder %s30_s24, 6   ;;  %s6053_s5 = sld [smem:[#allocation17_spill]] }
 0x642   : > { %s6054_s17 = smov %s4015_s18  ;;  %s6055_s18 = smov %s4019_s19 }
 0x643   : > { %s6056_s19 = smov %s4233_s9  ;;  %s6057_s20 = smov %s4031_s22 }
 0x644   : > { %s6058_s21 = smov %s4035_s23  ;;  %29 = sbr.rel (!%p27_p12) target bundleno = 18 (0x12), region = 132 }
 0x646   : > { %s6059_s22 = smov %s6052_s0 }
 0x647   : > { %s6060_s23 = smov %s6053_s5 }
 0x64b   :  { %3050 = vsyncpa [#allocation3], 1 }
 0x64c   :  { %3052 = vsyncpa [#allocation3 + $0x1], 1 }
 0x64d   :  { %3053 = vsyncpa [#allocation6], 1 }
 0x64e   :  { %3055 = vsyncpa [#allocation6 + $0x1], 1 }
 0x64f   :  { %3056 = vsyncpa [#allocation4], 1 }
 0x650   :  { %3058 = vsyncpa [#allocation4 + $0x1], 1 }

</bundles_post_ra>
